<compile_context>
chip_gen: v7x
topology: tpu7x:2x2x1
jax: 0.10.0
libtpu: 0.0.40
codegen_flags: <defaults>
</compile_context>

<pallas_src>
import math

import jax
import jax.numpy as jnp
from jax.experimental import pallas as pl
from jax.experimental.pallas import tpu as pltpu


# ---------------------------------------------------------------------------
# Fused 3x3 conv + (folded) BN + ReLU kernel
# ---------------------------------------------------------------------------
def _conv3x3_bn_relu_kernel(x_ref, w_ref, b_ref, o_ref, acc_ref):
    # x_ref  : (H+2, W+2, tk)  bf16  zero-padded activation tile (halo incl.)
    # w_ref  : (3, 3, tk, tn)  bf16  BN-scale-folded conv weights
    # b_ref  : (1, tn)         f32   folded BN bias
    # o_ref  : (H, W, tn)      f32   output tile
    # acc_ref: (H*W, tn)       f32   accumulator, resident across the Cin axis
    k = pl.program_id(2)

    @pl.when(k == 0)
    def _init():
        acc_ref[...] = jnp.zeros_like(acc_ref)

    h, wo, tn = o_ref.shape
    tk = x_ref.shape[-1]

    xt = x_ref[...]        # (H+2, W+2, tk)
    wt = w_ref[...]        # (3, 3, tk, tn)

    acc = acc_ref[...]     # (H*W, tn) f32
    # 9 shifted GEMMs replace im2col (keeps HBM traffic at ~1x activations).
    for dy in range(3):
        for dx in range(3):
            x_tap = xt[dy:dy + h, dx:dx + wo, :].reshape(h * wo, tk)
            acc = acc + jnp.dot(x_tap, wt[dy, dx],
                                preferred_element_type=jnp.float32)
    acc_ref[...] = acc

    @pl.when(k == pl.num_programs(2) - 1)
    def _finalize():
        y = acc_ref[...] + b_ref[...]            # f32 epilogue (v5e-safe)
        o_ref[...] = jnp.maximum(y, 0.0).reshape(h, wo, tn).astype(o_ref.dtype)


# ---------------------------------------------------------------------------
# Wrappers
# ---------------------------------------------------------------------------
def _channel_tile(c, pref=128):
    # 128-aligned tiles suit all of v5e/v6e/v7x; fall back to the full channel
    # dim when it is small or not 128-aligned (then it equals the array dim,
    # which satisfies the (8,128) BlockSpec rule).
    return pref if (c >= pref and c % pref == 0) else c


def conv3x3_bn_relu(x, w, bias, *, channel_tile=128,
                    vmem_limit_bytes=32 * 1024 * 1024):
    """Fused 3x3 conv (pad=1, no conv bias) + folded-BN affine + ReLU.

    x:    (N, H, W, Cin)   float (cast to bf16 for the MXU)
    w:    (3, 3, Cin, Cout) bf16, BN scale already folded in
    bias: (1, Cout)         f32 folded BN bias
    returns (N, H, W, Cout) f32
    """
    n, h, wd, cin = x.shape
    cout = w.shape[-1]
    tk = _channel_tile(cin, channel_tile)
    tn = _channel_tile(cout, channel_tile)

    # Zero halo in plain JAX (cheap glue); the 9-tap accumulation is in-kernel.
    xp = jnp.pad(x.astype(jnp.bfloat16), ((0, 0), (1, 1), (1, 1), (0, 0)))

    # TODO(synk): for large H*W add an H-tile grid axis with halo handling
    # (overlapping row windows via manual DMA); here batch/Cout/Cin are tiled.
    grid = (n, cout // tn, cin // tk)

    return pl.pallas_call(
        _conv3x3_bn_relu_kernel,
        out_shape=jax.ShapeDtypeStruct((n, h, wd, cout), jnp.float32),
        grid_spec=pltpu.PrefetchScalarGridSpec(
            num_scalar_prefetch=0,
            grid=grid,
            in_specs=[
                pl.BlockSpec((None, h + 2, wd + 2, tk),
                             lambda b, j, k: (b, 0, 0, k)),
                pl.BlockSpec((3, 3, tk, tn), lambda b, j, k: (0, 0, k, j)),
                pl.BlockSpec((1, tn), lambda b, j, k: (0, j)),
            ],
            out_specs=pl.BlockSpec((None, h, wd, tn),
                                   lambda b, j, k: (b, 0, 0, j)),
            scratch_shapes=[pltpu.VMEM((h * wd, tn), jnp.float32)],
        ),
        compiler_params=pltpu.CompilerParams(
            dimension_semantics=("parallel", "parallel", "arbitrary"),
            vmem_limit_bytes=vmem_limit_bytes,
        ),
    )(xp, w, bias)


def double_conv(x_nhwc, params):
    y = conv3x3_bn_relu(x_nhwc, params["w1"], params["b1"])
    y = conv3x3_bn_relu(y, params["w2"], params["b2"])
    return y


def double_conv_forward(x_nchw, params):
    """PyTorch-convention entry point: NCHW in, NCHW out."""
    x = jnp.transpose(x_nchw, (0, 2, 3, 1)).astype(jnp.float32)   # NCHW->NHWC
    y = double_conv(x, params)
    return jnp.transpose(y, (0, 3, 1, 2))                         # NHWC->NCHW


# ---------------------------------------------------------------------------
# Deterministic parameters (Conv2d weights + inference-mode BN, folded)
# ---------------------------------------------------------------------------
def init_double_conv_params(key, in_ch, out_ch, eps=1e-5):
    k1, k2 = jax.random.split(key)

    def layer(k, cin, cout):
        # Deterministic kaiming-style normal conv init (fan_out, relu).
        std = math.sqrt(2.0 / (cout * 9))
        w = jax.random.normal(k, (3, 3, cin, cout), jnp.float32) * std
        # BatchNorm2d at default stats: gamma=1, beta=0, mean=0, var=1.
        gamma = jnp.ones((cout,), jnp.float32)
        beta = jnp.zeros((cout,), jnp.float32)
        mean = jnp.zeros((cout,), jnp.float32)
        var = jnp.ones((cout,), jnp.float32)
        scale = gamma / jnp.sqrt(var + eps)
        w_folded = (w * scale[None, None, None, :]).astype(jnp.bfloat16)
        bias = (beta - mean * scale).reshape(1, cout).astype(jnp.float32)
        return w_folded, bias

    w1, b1 = layer(k1, in_ch, out_ch)
    w2, b2 = layer(k2, out_ch, out_ch)
    return {"w1": w1, "b1": b1, "w2": w2, "b2": b2}


# ---------------------------------------------------------------------------
# Plain-JAX/XLA reference (same bf16 quantization) for validation
# ---------------------------------------------------------------------------
def _reference_forward(x_nchw, params):
    x = jnp.transpose(x_nchw, (0, 2, 3, 1)).astype(jnp.float32)

    def layer(x, w_bf16, bias):
        y = jax.lax.conv_general_dilated(
            x.astype(jnp.bfloat16).astype(jnp.float32),
            w_bf16.astype(jnp.float32),
            window_strides=(1, 1), padding="SAME",
            dimension_numbers=("NHWC", "HWIO", "NHWC"),
            precision=jax.lax.Precision.HIGHEST)
        return jnp.maximum(y + bias.reshape(1, 1, 1, -1), 0.0)

    y = layer(x, params["w1"], params["b1"])
    y = layer(y, params["w2"], params["b2"])
    return jnp.transpose(y, (0, 3, 1, 2))


if __name__ == "__main__":
    key = jax.random.PRNGKey(0)
    pkey, xkey = jax.random.split(key)

    in_ch, out_ch = 4, 32
    params = init_double_conv_params(pkey, in_ch, out_ch)

    # Small deterministic input, NCHW like PyTorch: (batch=2, in_ch=4, 16, 16)
    x = jax.random.normal(xkey, (2, in_ch, 16, 16), jnp.float32)

    fwd = jax.jit(double_conv_forward)
    y = jax.block_until_ready(fwd(x, params))

    assert y.shape == (2, out_ch, 16, 16), y.shape
    assert bool(jnp.all(jnp.isfinite(y)))
    assert bool(jnp.all(y >= 0.0))            # ReLU output range

    y_ref = _reference_forward(x, params)
    err = float(jnp.max(jnp.abs(y - y_ref)))
    assert err < 5e-3, f"max abs error vs reference: {err}"

    print("KERNEL_OK")
</pallas_src>

<mosaic_0001>
module attributes {stable_mosaic.version = 11 : i64} {
  func.func @_conv3x3_bn_relu_kernel(%arg0: i32, %arg1: i32, %arg2: i32, %arg3: memref<1x18x18x4xbf16, #tpu.memory_space<vmem>>, %arg4: memref<3x3x4x32xbf16, #tpu.memory_space<vmem>>, %arg5: memref<1x32xf32, #tpu.memory_space<vmem>>, %arg6: memref<1x16x16x32xf32, #tpu.memory_space<vmem>>, %arg7: memref<256x32xf32, #tpu.memory_space<vmem>>) attributes {dimension_semantics = [#tpu.dimension_semantics<parallel>, #tpu.dimension_semantics<parallel>, #tpu.dimension_semantics<arbitrary>], iteration_bounds = array<i64: 2, 1, 1>, scalar_prefetch = 0 : i64, scratch_operands = 1 : i64, tpu.core_type = #tpu.core_type<tc>, window_params = [{transform_indices = @transform_0, window_bounds = array<i64: 1, 18, 18, 4>}, {transform_indices = @transform_1, window_bounds = array<i64: 3, 3, 4, 32>}, {transform_indices = @transform_2, window_bounds = array<i64: 1, 32>}, {transform_indices = @transform_3, window_bounds = array<i64: 1, 16, 16, 32>}]} {
    %c0_i32 = arith.constant 0 : i32
    %0 = arith.cmpi eq, %arg2, %c0_i32 : i32
    %1 = arith.extui %0 : i1 to i32
    %c0_i32_0 = arith.constant 0 : i32
    %2 = arith.cmpi ne, %1, %c0_i32_0 : i32
    scf.if %2 {
      %cst_22 = arith.constant 0.000000e+00 : f32
      %65 = vector.broadcast %cst_22 : f32 to vector<256x32xf32>
      %c0_23 = arith.constant 0 : index
      %c0_24 = arith.constant 0 : index
      %66 = vector.load %arg7[%c0_23, %c0_24] : memref<256x32xf32, #tpu.memory_space<vmem>>, vector<256x32xf32>
      tpu.vector_store %arg7[%c0_23, %c0_24], %65 {strides = array<i32>} : memref<256x32xf32, #tpu.memory_space<vmem>>, vector<256x32xf32>,
    } else {
    }
    %c0 = arith.constant 0 : index
    %c0_1 = arith.constant 0 : index
    %c0_2 = arith.constant 0 : index
    %c0_3 = arith.constant 0 : index
    %3 = vector.load %arg3[%c0, %c0_1, %c0_2, %c0_3] : memref<1x18x18x4xbf16, #tpu.memory_space<vmem>>, vector<1x18x18x4xbf16>
    %4 = vector.shape_cast %3 : vector<1x18x18x4xbf16> to vector<18x18x4xbf16>
    %c0_4 = arith.constant 0 : index
    %c0_5 = arith.constant 0 : index
    %c0_6 = arith.constant 0 : index
    %c0_7 = arith.constant 0 : index
    %5 = vector.load %arg4[%c0_4, %c0_5, %c0_6, %c0_7] : memref<3x3x4x32xbf16, #tpu.memory_space<vmem>>, vector<3x3x4x32xbf16>
    %c0_8 = arith.constant 0 : index
    %c0_9 = arith.constant 0 : index
    %6 = vector.load %arg7[%c0_8, %c0_9] : memref<256x32xf32, #tpu.memory_space<vmem>>, vector<256x32xf32>
    %7 = vector.extract_strided_slice %4 {offsets = [0, 0, 0], sizes = [16, 16, 4], strides = [1, 1, 1]} : vector<18x18x4xbf16> to vector<16x16x4xbf16>
    %8 = vector.shape_cast %7 : vector<16x16x4xbf16> to vector<256x4xbf16>
    %9 = vector.extract_strided_slice %5 {offsets = [0, 0, 0, 0], sizes = [1, 1, 4, 32], strides = [1, 1, 1, 1]} : vector<3x3x4x32xbf16> to vector<1x1x4x32xbf16>
    %10 = vector.shape_cast %9 : vector<1x1x4x32xbf16> to vector<4x32xbf16>
    %cst = arith.constant dense<0.000000e+00> : vector<256x32xf32>
    %11 = tpu.matmul %8, %10, %cst {dimension_numbers = #tpu.dot_dimension_numbers<[1], [0], [0], [1], [0, 0, 1, 1], [], []>} : vector<256x4xbf16>, vector<4x32xbf16>, vector<256x32xf32> -> vector<256x32xf32>
    %12 = arith.addf %6, %11 : vector<256x32xf32>
    %13 = vector.extract_strided_slice %4 {offsets = [0, 1, 0], sizes = [16, 16, 4], strides = [1, 1, 1]} : vector<18x18x4xbf16> to vector<16x16x4xbf16>
    %14 = vector.shape_cast %13 : vector<16x16x4xbf16> to vector<256x4xbf16>
    %15 = vector.extract_strided_slice %5 {offsets = [0, 1, 0, 0], sizes = [1, 1, 4, 32], strides = [1, 1, 1, 1]} : vector<3x3x4x32xbf16> to vector<1x1x4x32xbf16>
    %16 = vector.shape_cast %15 : vector<1x1x4x32xbf16> to vector<4x32xbf16>
    %cst_10 = arith.constant dense<0.000000e+00> : vector<256x32xf32>
    %17 = tpu.matmul %14, %16, %cst_10 {dimension_numbers = #tpu.dot_dimension_numbers<[1], [0], [0], [1], [0, 0, 1, 1], [], []>} : vector<256x4xbf16>, vector<4x32xbf16>, vector<256x32xf32> -> vector<256x32xf32>
    %18 = arith.addf %12, %17 : vector<256x32xf32>
    %19 = vector.extract_strided_slice %4 {offsets = [0, 2, 0], sizes = [16, 16, 4], strides = [1, 1, 1]} : vector<18x18x4xbf16> to vector<16x16x4xbf16>
    %20 = vector.shape_cast %19 : vector<16x16x4xbf16> to vector<256x4xbf16>
    %21 = vector.extract_strided_slice %5 {offsets = [0, 2, 0, 0], sizes = [1, 1, 4, 32], strides = [1, 1, 1, 1]} : vector<3x3x4x32xbf16> to vector<1x1x4x32xbf16>
    %22 = vector.shape_cast %21 : vector<1x1x4x32xbf16> to vector<4x32xbf16>
    %cst_11 = arith.constant dense<0.000000e+00> : vector<256x32xf32>
    %23 = tpu.matmul %20, %22, %cst_11 {dimension_numbers = #tpu.dot_dimension_numbers<[1], [0], [0], [1], [0, 0, 1, 1], [], []>} : vector<256x4xbf16>, vector<4x32xbf16>, vector<256x32xf32> -> vector<256x32xf32>
    %24 = arith.addf %18, %23 : vector<256x32xf32>
    %25 = vector.extract_strided_slice %4 {offsets = [1, 0, 0], sizes = [16, 16, 4], strides = [1, 1, 1]} : vector<18x18x4xbf16> to vector<16x16x4xbf16>
    %26 = vector.shape_cast %25 : vector<16x16x4xbf16> to vector<256x4xbf16>
    %27 = vector.extract_strided_slice %5 {offsets = [1, 0, 0, 0], sizes = [1, 1, 4, 32], strides = [1, 1, 1, 1]} : vector<3x3x4x32xbf16> to vector<1x1x4x32xbf16>
    %28 = vector.shape_cast %27 : vector<1x1x4x32xbf16> to vector<4x32xbf16>
    %cst_12 = arith.constant dense<0.000000e+00> : vector<256x32xf32>
    %29 = tpu.matmul %26, %28, %cst_12 {dimension_numbers = #tpu.dot_dimension_numbers<[1], [0], [0], [1], [0, 0, 1, 1], [], []>} : vector<256x4xbf16>, vector<4x32xbf16>, vector<256x32xf32> -> vector<256x32xf32>
    %30 = arith.addf %24, %29 : vector<256x32xf32>
    %31 = vector.extract_strided_slice %4 {offsets = [1, 1, 0], sizes = [16, 16, 4], strides = [1, 1, 1]} : vector<18x18x4xbf16> to vector<16x16x4xbf16>
    %32 = vector.shape_cast %31 : vector<16x16x4xbf16> to vector<256x4xbf16>
    %33 = vector.extract_strided_slice %5 {offsets = [1, 1, 0, 0], sizes = [1, 1, 4, 32], strides = [1, 1, 1, 1]} : vector<3x3x4x32xbf16> to vector<1x1x4x32xbf16>
    %34 = vector.shape_cast %33 : vector<1x1x4x32xbf16> to vector<4x32xbf16>
    %cst_13 = arith.constant dense<0.000000e+00> : vector<256x32xf32>
    %35 = tpu.matmul %32, %34, %cst_13 {dimension_numbers = #tpu.dot_dimension_numbers<[1], [0], [0], [1], [0, 0, 1, 1], [], []>} : vector<256x4xbf16>, vector<4x32xbf16>, vector<256x32xf32> -> vector<256x32xf32>
    %36 = arith.addf %30, %35 : vector<256x32xf32>
    %37 = vector.extract_strided_slice %4 {offsets = [1, 2, 0], sizes = [16, 16, 4], strides = [1, 1, 1]} : vector<18x18x4xbf16> to vector<16x16x4xbf16>
    %38 = vector.shape_cast %37 : vector<16x16x4xbf16> to vector<256x4xbf16>
    %39 = vector.extract_strided_slice %5 {offsets = [1, 2, 0, 0], sizes = [1, 1, 4, 32], strides = [1, 1, 1, 1]} : vector<3x3x4x32xbf16> to vector<1x1x4x32xbf16>
    %40 = vector.shape_cast %39 : vector<1x1x4x32xbf16> to vector<4x32xbf16>
    %cst_14 = arith.constant dense<0.000000e+00> : vector<256x32xf32>
    %41 = tpu.matmul %38, %40, %cst_14 {dimension_numbers = #tpu.dot_dimension_numbers<[1], [0], [0], [1], [0, 0, 1, 1], [], []>} : vector<256x4xbf16>, vector<4x32xbf16>, vector<256x32xf32> -> vector<256x32xf32>
    %42 = arith.addf %36, %41 : vector<256x32xf32>
    %43 = vector.extract_strided_slice %4 {offsets = [2, 0, 0], sizes = [16, 16, 4], strides = [1, 1, 1]} : vector<18x18x4xbf16> to vector<16x16x4xbf16>
    %44 = vector.shape_cast %43 : vector<16x16x4xbf16> to vector<256x4xbf16>
    %45 = vector.extract_strided_slice %5 {offsets = [2, 0, 0, 0], sizes = [1, 1, 4, 32], strides = [1, 1, 1, 1]} : vector<3x3x4x32xbf16> to vector<1x1x4x32xbf16>
    %46 = vector.shape_cast %45 : vector<1x1x4x32xbf16> to vector<4x32xbf16>
    %cst_15 = arith.constant dense<0.000000e+00> : vector<256x32xf32>
    %47 = tpu.matmul %44, %46, %cst_15 {dimension_numbers = #tpu.dot_dimension_numbers<[1], [0], [0], [1], [0, 0, 1, 1], [], []>} : vector<256x4xbf16>, vector<4x32xbf16>, vector<256x32xf32> -> vector<256x32xf32>
    %48 = arith.addf %42, %47 : vector<256x32xf32>
    %49 = vector.extract_strided_slice %4 {offsets = [2, 1, 0], sizes = [16, 16, 4], strides = [1, 1, 1]} : vector<18x18x4xbf16> to vector<16x16x4xbf16>
    %50 = vector.shape_cast %49 : vector<16x16x4xbf16> to vector<256x4xbf16>
    %51 = vector.extract_strided_slice %5 {offsets = [2, 1, 0, 0], sizes = [1, 1, 4, 32], strides = [1, 1, 1, 1]} : vector<3x3x4x32xbf16> to vector<1x1x4x32xbf16>
    %52 = vector.shape_cast %51 : vector<1x1x4x32xbf16> to vector<4x32xbf16>
    %cst_16 = arith.constant dense<0.000000e+00> : vector<256x32xf32>
    %53 = tpu.matmul %50, %52, %cst_16 {dimension_numbers = #tpu.dot_dimension_numbers<[1], [0], [0], [1], [0, 0, 1, 1], [], []>} : vector<256x4xbf16>, vector<4x32xbf16>, vector<256x32xf32> -> vector<256x32xf32>
    %54 = arith.addf %48, %53 : vector<256x32xf32>
    %55 = vector.extract_strided_slice %4 {offsets = [2, 2, 0], sizes = [16, 16, 4], strides = [1, 1, 1]} : vector<18x18x4xbf16> to vector<16x16x4xbf16>
    %56 = vector.shape_cast %55 : vector<16x16x4xbf16> to vector<256x4xbf16>
    %57 = vector.extract_strided_slice %5 {offsets = [2, 2, 0, 0], sizes = [1, 1, 4, 32], strides = [1, 1, 1, 1]} : vector<3x3x4x32xbf16> to vector<1x1x4x32xbf16>
    %58 = vector.shape_cast %57 : vector<1x1x4x32xbf16> to vector<4x32xbf16>
    %cst_17 = arith.constant dense<0.000000e+00> : vector<256x32xf32>
    %59 = tpu.matmul %56, %58, %cst_17 {dimension_numbers = #tpu.dot_dimension_numbers<[1], [0], [0], [1], [0, 0, 1, 1], [], []>} : vector<256x4xbf16>, vector<4x32xbf16>, vector<256x32xf32> -> vector<256x32xf32>
    %60 = arith.addf %54, %59 : vector<256x32xf32>
    %c0_18 = arith.constant 0 : index
    %c0_19 = arith.constant 0 : index
    %61 = vector.load %arg7[%c0_18, %c0_19] : memref<256x32xf32, #tpu.memory_space<vmem>>, vector<256x32xf32>
    tpu.vector_store %arg7[%c0_18, %c0_19], %60 {strides = array<i32>} : memref<256x32xf32, #tpu.memory_space<vmem>>, vector<256x32xf32>,
    %c0_i32_20 = arith.constant 0 : i32
    %62 = arith.cmpi eq, %arg2, %c0_i32_20 : i32
    %63 = arith.extui %62 : i1 to i32
    %c0_i32_21 = arith.constant 0 : i32
    %64 = arith.cmpi ne, %63, %c0_i32_21 : i32
    scf.if %64 {
      %c0_22 = arith.constant 0 : index
      %c0_23 = arith.constant 0 : index
      %65 = vector.load %arg7[%c0_22, %c0_23] : memref<256x32xf32, #tpu.memory_space<vmem>>, vector<256x32xf32>
      %c0_24 = arith.constant 0 : index
      %c0_25 = arith.constant 0 : index
      %66 = vector.load %arg5[%c0_24, %c0_25] : memref<1x32xf32, #tpu.memory_space<vmem>>, vector<1x32xf32>
      %67 = vector.broadcast %66 : vector<1x32xf32> to vector<256x32xf32>
      %68 = arith.addf %65, %67 : vector<256x32xf32>
      %cst_26 = arith.constant 0.000000e+00 : f32
      %69 = vector.broadcast %cst_26 : f32 to vector<256x32xf32>
      %70 = arith.maximumf %68, %69 : vector<256x32xf32>
      %71 = vector.shape_cast %70 : vector<256x32xf32> to vector<16x16x32xf32>
      %c0_27 = arith.constant 0 : index
      %c0_28 = arith.constant 0 : index
      %c0_29 = arith.constant 0 : index
      %c0_30 = arith.constant 0 : index
      %72 = vector.load %arg6[%c0_27, %c0_28, %c0_29, %c0_30] : memref<1x16x16x32xf32, #tpu.memory_space<vmem>>, vector<1x16x16x32xf32>
      %73 = vector.shape_cast %72 : vector<1x16x16x32xf32> to vector<16x16x32xf32>
      %74 = vector.shape_cast %71 : vector<16x16x32xf32> to vector<1x16x16x32xf32>
      tpu.vector_store %arg6[%c0_27, %c0_28, %c0_29, %c0_30], %74 {strides = array<i32>} : memref<1x16x16x32xf32, #tpu.memory_space<vmem>>, vector<1x16x16x32xf32>,
    } else {
    }
    return
  }
  func.func @transform_0(%arg0: i32, %arg1: i32, %arg2: i32) -> (i32, i32, i32, i32) {
    %c0_i32 = arith.constant 0 : i32
    %c0_i32_0 = arith.constant 0 : i32
    %c0_i32_1 = arith.constant 0 : i32
    return %arg0, %c0_i32, %c0_i32_0, %arg2 : i32, i32, i32, i32
  }
  func.func @transform_1(%arg0: i32, %arg1: i32, %arg2: i32) -> (i32, i32, i32, i32) {
    %c0_i32 = arith.constant 0 : i32
    %c0_i32_0 = arith.constant 0 : i32
    %c0_i32_1 = arith.constant 0 : i32
    return %c0_i32, %c0_i32_0, %arg2, %arg1 : i32, i32, i32, i32
  }
  func.func @transform_2(%arg0: i32, %arg1: i32, %arg2: i32) -> (i32, i32) {
    %c0_i32 = arith.constant 0 : i32
    %c0_i32_0 = arith.constant 0 : i32
    return %c0_i32, %arg1 : i32, i32
  }
  func.func @transform_3(%arg0: i32, %arg1: i32, %arg2: i32) -> (i32, i32, i32, i32) {
    %c0_i32 = arith.constant 0 : i32
    %c0_i32_0 = arith.constant 0 : i32
    %c0_i32_1 = arith.constant 0 : i32
    return %arg0, %c0_i32, %c0_i32_0, %arg1 : i32, i32, i32, i32
  }
}

module attributes {stable_mosaic.version = 11 : i64} {
  func.func @_conv3x3_bn_relu_kernel(%arg0: i32, %arg1: i32, %arg2: i32, %arg3: memref<1x18x18x32xbf16, #tpu.memory_space<vmem>>, %arg4: memref<3x3x32x32xbf16, #tpu.memory_space<vmem>>, %arg5: memref<1x32xf32, #tpu.memory_space<vmem>>, %arg6: memref<1x16x16x32xf32, #tpu.memory_space<vmem>>, %arg7: memref<256x32xf32, #tpu.memory_space<vmem>>) attributes {dimension_semantics = [#tpu.dimension_semantics<parallel>, #tpu.dimension_semantics<parallel>, #tpu.dimension_semantics<arbitrary>], iteration_bounds = array<i64: 2, 1, 1>, scalar_prefetch = 0 : i64, scratch_operands = 1 : i64, tpu.core_type = #tpu.core_type<tc>, window_params = [{transform_indices = @transform_0, window_bounds = array<i64: 1, 18, 18, 32>}, {transform_indices = @transform_1, window_bounds = array<i64: 3, 3, 32, 32>}, {transform_indices = @transform_2, window_bounds = array<i64: 1, 32>}, {transform_indices = @transform_3, window_bounds = array<i64: 1, 16, 16, 32>}]} {
    %c0_i32 = arith.constant 0 : i32
    %0 = arith.cmpi eq, %arg2, %c0_i32 : i32
    %1 = arith.extui %0 : i1 to i32
    %c0_i32_0 = arith.constant 0 : i32
    %2 = arith.cmpi ne, %1, %c0_i32_0 : i32
    scf.if %2 {
      %cst_22 = arith.constant 0.000000e+00 : f32
      %65 = vector.broadcast %cst_22 : f32 to vector<256x32xf32>
      %c0_23 = arith.constant 0 : index
      %c0_24 = arith.constant 0 : index
      %66 = vector.load %arg7[%c0_23, %c0_24] : memref<256x32xf32, #tpu.memory_space<vmem>>, vector<256x32xf32>
      tpu.vector_store %arg7[%c0_23, %c0_24], %65 {strides = array<i32>} : memref<256x32xf32, #tpu.memory_space<vmem>>, vector<256x32xf32>,
    } else {
    }
    %c0 = arith.constant 0 : index
    %c0_1 = arith.constant 0 : index
    %c0_2 = arith.constant 0 : index
    %c0_3 = arith.constant 0 : index
    %3 = vector.load %arg3[%c0, %c0_1, %c0_2, %c0_3] : memref<1x18x18x32xbf16, #tpu.memory_space<vmem>>, vector<1x18x18x32xbf16>
    %4 = vector.shape_cast %3 : vector<1x18x18x32xbf16> to vector<18x18x32xbf16>
    %c0_4 = arith.constant 0 : index
    %c0_5 = arith.constant 0 : index
    %c0_6 = arith.constant 0 : index
    %c0_7 = arith.constant 0 : index
    %5 = vector.load %arg4[%c0_4, %c0_5, %c0_6, %c0_7] : memref<3x3x32x32xbf16, #tpu.memory_space<vmem>>, vector<3x3x32x32xbf16>
    %c0_8 = arith.constant 0 : index
    %c0_9 = arith.constant 0 : index
    %6 = vector.load %arg7[%c0_8, %c0_9] : memref<256x32xf32, #tpu.memory_space<vmem>>, vector<256x32xf32>
    %7 = vector.extract_strided_slice %4 {offsets = [0, 0, 0], sizes = [16, 16, 32], strides = [1, 1, 1]} : vector<18x18x32xbf16> to vector<16x16x32xbf16>
    %8 = vector.shape_cast %7 : vector<16x16x32xbf16> to vector<256x32xbf16>
    %9 = vector.extract_strided_slice %5 {offsets = [0, 0, 0, 0], sizes = [1, 1, 32, 32], strides = [1, 1, 1, 1]} : vector<3x3x32x32xbf16> to vector<1x1x32x32xbf16>
    %10 = vector.shape_cast %9 : vector<1x1x32x32xbf16> to vector<32x32xbf16>
    %cst = arith.constant dense<0.000000e+00> : vector<256x32xf32>
    %11 = tpu.matmul %8, %10, %cst {dimension_numbers = #tpu.dot_dimension_numbers<[1], [0], [0], [1], [0, 0, 1, 1], [], []>} : vector<256x32xbf16>, vector<32x32xbf16>, vector<256x32xf32> -> vector<256x32xf32>
    %12 = arith.addf %6, %11 : vector<256x32xf32>
    %13 = vector.extract_strided_slice %4 {offsets = [0, 1, 0], sizes = [16, 16, 32], strides = [1, 1, 1]} : vector<18x18x32xbf16> to vector<16x16x32xbf16>
    %14 = vector.shape_cast %13 : vector<16x16x32xbf16> to vector<256x32xbf16>
    %15 = vector.extract_strided_slice %5 {offsets = [0, 1, 0, 0], sizes = [1, 1, 32, 32], strides = [1, 1, 1, 1]} : vector<3x3x32x32xbf16> to vector<1x1x32x32xbf16>
    %16 = vector.shape_cast %15 : vector<1x1x32x32xbf16> to vector<32x32xbf16>
    %cst_10 = arith.constant dense<0.000000e+00> : vector<256x32xf32>
    %17 = tpu.matmul %14, %16, %cst_10 {dimension_numbers = #tpu.dot_dimension_numbers<[1], [0], [0], [1], [0, 0, 1, 1], [], []>} : vector<256x32xbf16>, vector<32x32xbf16>, vector<256x32xf32> -> vector<256x32xf32>
    %18 = arith.addf %12, %17 : vector<256x32xf32>
    %19 = vector.extract_strided_slice %4 {offsets = [0, 2, 0], sizes = [16, 16, 32], strides = [1, 1, 1]} : vector<18x18x32xbf16> to vector<16x16x32xbf16>
    %20 = vector.shape_cast %19 : vector<16x16x32xbf16> to vector<256x32xbf16>
    %21 = vector.extract_strided_slice %5 {offsets = [0, 2, 0, 0], sizes = [1, 1, 32, 32], strides = [1, 1, 1, 1]} : vector<3x3x32x32xbf16> to vector<1x1x32x32xbf16>
    %22 = vector.shape_cast %21 : vector<1x1x32x32xbf16> to vector<32x32xbf16>
    %cst_11 = arith.constant dense<0.000000e+00> : vector<256x32xf32>
    %23 = tpu.matmul %20, %22, %cst_11 {dimension_numbers = #tpu.dot_dimension_numbers<[1], [0], [0], [1], [0, 0, 1, 1], [], []>} : vector<256x32xbf16>, vector<32x32xbf16>, vector<256x32xf32> -> vector<256x32xf32>
    %24 = arith.addf %18, %23 : vector<256x32xf32>
    %25 = vector.extract_strided_slice %4 {offsets = [1, 0, 0], sizes = [16, 16, 32], strides = [1, 1, 1]} : vector<18x18x32xbf16> to vector<16x16x32xbf16>
    %26 = vector.shape_cast %25 : vector<16x16x32xbf16> to vector<256x32xbf16>
    %27 = vector.extract_strided_slice %5 {offsets = [1, 0, 0, 0], sizes = [1, 1, 32, 32], strides = [1, 1, 1, 1]} : vector<3x3x32x32xbf16> to vector<1x1x32x32xbf16>
    %28 = vector.shape_cast %27 : vector<1x1x32x32xbf16> to vector<32x32xbf16>
    %cst_12 = arith.constant dense<0.000000e+00> : vector<256x32xf32>
    %29 = tpu.matmul %26, %28, %cst_12 {dimension_numbers = #tpu.dot_dimension_numbers<[1], [0], [0], [1], [0, 0, 1, 1], [], []>} : vector<256x32xbf16>, vector<32x32xbf16>, vector<256x32xf32> -> vector<256x32xf32>
    %30 = arith.addf %24, %29 : vector<256x32xf32>
    %31 = vector.extract_strided_slice %4 {offsets = [1, 1, 0], sizes = [16, 16, 32], strides = [1, 1, 1]} : vector<18x18x32xbf16> to vector<16x16x32xbf16>
    %32 = vector.shape_cast %31 : vector<16x16x32xbf16> to vector<256x32xbf16>
    %33 = vector.extract_strided_slice %5 {offsets = [1, 1, 0, 0], sizes = [1, 1, 32, 32], strides = [1, 1, 1, 1]} : vector<3x3x32x32xbf16> to vector<1x1x32x32xbf16>
    %34 = vector.shape_cast %33 : vector<1x1x32x32xbf16> to vector<32x32xbf16>
    %cst_13 = arith.constant dense<0.000000e+00> : vector<256x32xf32>
    %35 = tpu.matmul %32, %34, %cst_13 {dimension_numbers = #tpu.dot_dimension_numbers<[1], [0], [0], [1], [0, 0, 1, 1], [], []>} : vector<256x32xbf16>, vector<32x32xbf16>, vector<256x32xf32> -> vector<256x32xf32>
    %36 = arith.addf %30, %35 : vector<256x32xf32>
    %37 = vector.extract_strided_slice %4 {offsets = [1, 2, 0], sizes = [16, 16, 32], strides = [1, 1, 1]} : vector<18x18x32xbf16> to vector<16x16x32xbf16>
    %38 = vector.shape_cast %37 : vector<16x16x32xbf16> to vector<256x32xbf16>
    %39 = vector.extract_strided_slice %5 {offsets = [1, 2, 0, 0], sizes = [1, 1, 32, 32], strides = [1, 1, 1, 1]} : vector<3x3x32x32xbf16> to vector<1x1x32x32xbf16>
    %40 = vector.shape_cast %39 : vector<1x1x32x32xbf16> to vector<32x32xbf16>
    %cst_14 = arith.constant dense<0.000000e+00> : vector<256x32xf32>
    %41 = tpu.matmul %38, %40, %cst_14 {dimension_numbers = #tpu.dot_dimension_numbers<[1], [0], [0], [1], [0, 0, 1, 1], [], []>} : vector<256x32xbf16>, vector<32x32xbf16>, vector<256x32xf32> -> vector<256x32xf32>
    %42 = arith.addf %36, %41 : vector<256x32xf32>
    %43 = vector.extract_strided_slice %4 {offsets = [2, 0, 0], sizes = [16, 16, 32], strides = [1, 1, 1]} : vector<18x18x32xbf16> to vector<16x16x32xbf16>
    %44 = vector.shape_cast %43 : vector<16x16x32xbf16> to vector<256x32xbf16>
    %45 = vector.extract_strided_slice %5 {offsets = [2, 0, 0, 0], sizes = [1, 1, 32, 32], strides = [1, 1, 1, 1]} : vector<3x3x32x32xbf16> to vector<1x1x32x32xbf16>
    %46 = vector.shape_cast %45 : vector<1x1x32x32xbf16> to vector<32x32xbf16>
    %cst_15 = arith.constant dense<0.000000e+00> : vector<256x32xf32>
    %47 = tpu.matmul %44, %46, %cst_15 {dimension_numbers = #tpu.dot_dimension_numbers<[1], [0], [0], [1], [0, 0, 1, 1], [], []>} : vector<256x32xbf16>, vector<32x32xbf16>, vector<256x32xf32> -> vector<256x32xf32>
    %48 = arith.addf %42, %47 : vector<256x32xf32>
    %49 = vector.extract_strided_slice %4 {offsets = [2, 1, 0], sizes = [16, 16, 32], strides = [1, 1, 1]} : vector<18x18x32xbf16> to vector<16x16x32xbf16>
    %50 = vector.shape_cast %49 : vector<16x16x32xbf16> to vector<256x32xbf16>
    %51 = vector.extract_strided_slice %5 {offsets = [2, 1, 0, 0], sizes = [1, 1, 32, 32], strides = [1, 1, 1, 1]} : vector<3x3x32x32xbf16> to vector<1x1x32x32xbf16>
    %52 = vector.shape_cast %51 : vector<1x1x32x32xbf16> to vector<32x32xbf16>
    %cst_16 = arith.constant dense<0.000000e+00> : vector<256x32xf32>
    %53 = tpu.matmul %50, %52, %cst_16 {dimension_numbers = #tpu.dot_dimension_numbers<[1], [0], [0], [1], [0, 0, 1, 1], [], []>} : vector<256x32xbf16>, vector<32x32xbf16>, vector<256x32xf32> -> vector<256x32xf32>
    %54 = arith.addf %48, %53 : vector<256x32xf32>
    %55 = vector.extract_strided_slice %4 {offsets = [2, 2, 0], sizes = [16, 16, 32], strides = [1, 1, 1]} : vector<18x18x32xbf16> to vector<16x16x32xbf16>
    %56 = vector.shape_cast %55 : vector<16x16x32xbf16> to vector<256x32xbf16>
    %57 = vector.extract_strided_slice %5 {offsets = [2, 2, 0, 0], sizes = [1, 1, 32, 32], strides = [1, 1, 1, 1]} : vector<3x3x32x32xbf16> to vector<1x1x32x32xbf16>
    %58 = vector.shape_cast %57 : vector<1x1x32x32xbf16> to vector<32x32xbf16>
    %cst_17 = arith.constant dense<0.000000e+00> : vector<256x32xf32>
    %59 = tpu.matmul %56, %58, %cst_17 {dimension_numbers = #tpu.dot_dimension_numbers<[1], [0], [0], [1], [0, 0, 1, 1], [], []>} : vector<256x32xbf16>, vector<32x32xbf16>, vector<256x32xf32> -> vector<256x32xf32>
    %60 = arith.addf %54, %59 : vector<256x32xf32>
    %c0_18 = arith.constant 0 : index
    %c0_19 = arith.constant 0 : index
    %61 = vector.load %arg7[%c0_18, %c0_19] : memref<256x32xf32, #tpu.memory_space<vmem>>, vector<256x32xf32>
    tpu.vector_store %arg7[%c0_18, %c0_19], %60 {strides = array<i32>} : memref<256x32xf32, #tpu.memory_space<vmem>>, vector<256x32xf32>,
    %c0_i32_20 = arith.constant 0 : i32
    %62 = arith.cmpi eq, %arg2, %c0_i32_20 : i32
    %63 = arith.extui %62 : i1 to i32
    %c0_i32_21 = arith.constant 0 : i32
    %64 = arith.cmpi ne, %63, %c0_i32_21 : i32
    scf.if %64 {
      %c0_22 = arith.constant 0 : index
      %c0_23 = arith.constant 0 : index
      %65 = vector.load %arg7[%c0_22, %c0_23] : memref<256x32xf32, #tpu.memory_space<vmem>>, vector<256x32xf32>
      %c0_24 = arith.constant 0 : index
      %c0_25 = arith.constant 0 : index
      %66 = vector.load %arg5[%c0_24, %c0_25] : memref<1x32xf32, #tpu.memory_space<vmem>>, vector<1x32xf32>
      %67 = vector.broadcast %66 : vector<1x32xf32> to vector<256x32xf32>
      %68 = arith.addf %65, %67 : vector<256x32xf32>
      %cst_26 = arith.constant 0.000000e+00 : f32
      %69 = vector.broadcast %cst_26 : f32 to vector<256x32xf32>
      %70 = arith.maximumf %68, %69 : vector<256x32xf32>
      %71 = vector.shape_cast %70 : vector<256x32xf32> to vector<16x16x32xf32>
      %c0_27 = arith.constant 0 : index
      %c0_28 = arith.constant 0 : index
      %c0_29 = arith.constant 0 : index
      %c0_30 = arith.constant 0 : index
      %72 = vector.load %arg6[%c0_27, %c0_28, %c0_29, %c0_30] : memref<1x16x16x32xf32, #tpu.memory_space<vmem>>, vector<1x16x16x32xf32>
      %73 = vector.shape_cast %72 : vector<1x16x16x32xf32> to vector<16x16x32xf32>
      %74 = vector.shape_cast %71 : vector<16x16x32xf32> to vector<1x16x16x32xf32>
      tpu.vector_store %arg6[%c0_27, %c0_28, %c0_29, %c0_30], %74 {strides = array<i32>} : memref<1x16x16x32xf32, #tpu.memory_space<vmem>>, vector<1x16x16x32xf32>,
    } else {
    }
    return
  }
  func.func @transform_0(%arg0: i32, %arg1: i32, %arg2: i32) -> (i32, i32, i32, i32) {
    %c0_i32 = arith.constant 0 : i32
    %c0_i32_0 = arith.constant 0 : i32
    %c0_i32_1 = arith.constant 0 : i32
    return %arg0, %c0_i32, %c0_i32_0, %arg2 : i32, i32, i32, i32
  }
  func.func @transform_1(%arg0: i32, %arg1: i32, %arg2: i32) -> (i32, i32, i32, i32) {
    %c0_i32 = arith.constant 0 : i32
    %c0_i32_0 = arith.constant 0 : i32
    %c0_i32_1 = arith.constant 0 : i32
    return %c0_i32, %c0_i32_0, %arg2, %arg1 : i32, i32, i32, i32
  }
  func.func @transform_2(%arg0: i32, %arg1: i32, %arg2: i32) -> (i32, i32) {
    %c0_i32 = arith.constant 0 : i32
    %c0_i32_0 = arith.constant 0 : i32
    return %c0_i32, %arg1 : i32, i32
  }
  func.func @transform_3(%arg0: i32, %arg1: i32, %arg2: i32) -> (i32, i32, i32, i32) {
    %c0_i32 = arith.constant 0 : i32
    %c0_i32_0 = arith.constant 0 : i32
    %c0_i32_1 = arith.constant 0 : i32
    return %arg0, %c0_i32, %c0_i32_0, %arg1 : i32, i32, i32, i32
  }
}

</mosaic_0001>

<bundles_post_ra>
// kernel: double_conv_forward.2
= control target key start
LH: loop header
LB: loop body
LE: loop exit
PB: predicated region body
PF: predicated region fallthrough
CT: control target
= control target key end

     0   :  { %s4459_s12 = smov 0   ;;  %s4461_s13 = smov 0   ;;  %s5773_s0 = inlined_call_operand.vmem [shape: bf16[2,18,18,4], index: 0, kind: input, shape index: {}]   ;;  %s5774_s1 = inlined_call_operand.vmem [shape: bf16[3,3,4,32], index: 1, kind: input, shape index: {}]   ;;  %s5775_s2 = inlined_call_operand.vmem [shape: f32[1,32], index: 2, kind: input, shape index: {}]   ;;  %s5776_s3 = inlined_call_operand.vmem [shape: f32[2,16,16,32], index: 3, kind: output, shape index: {}]  }
   0x1   :  { %s4463_s14 = smov 0  }
   0x2 LB: > { %s32_s15 = sadd.s32 1, %s4432_s13  ;;  %p3386_p0 = scmp.ge.s32.totalorder %s4436_s14, 1  ;;  %s4436_s14 = sphi %s4463_s14, %s13_s14   ;;  %s4432_s13 = sphi %s4461_s13, %s5905_s13   ;;  %s4428_s12 = sphi %s4459_s12, %s5904_s12  }
   0x3   : > { %p34_p1 = scmp.ge.s32.totalorder %s32_s15, 2  ;;  %p185_p2 = scmp.lt.s32.totalorder %s4436_s14, 3 }
   0x5   : > { %s5907_s15 = smov (%p34_p1, %s32_s15), 0  ;;  %p186_p3 = pnand %p3386_p0, %p185_p2 }
   0x7   : > { %189 = sbr.rel (%p186_p3) target bundleno = 552 (0x228), region = 32 }
   0xe   : > { %v343_v0 = vld [vmem:[%s5774_s1] sm:$0x3]  ;;  %vm513_vm0 = vcmask 1041408   ;;  %p225_p4 = scmp.lt.s32.totalorder %s4428_s12, 1  ;;  %v347_v2 = vld [vmem:[%s5774_s1 + $0x8] sm:$0x3] }
   0xf   : > { %4359 = vmatprep.subr.msk.bf16.mxu1 %vm513_vm0, %v343_v0  ;;  %v515_v1 = vsel %vm513_vm0, %v343_v0, 0  ;;  %v344_v3 = vld [vmem:[%s5774_s1 + $0x2] sm:$0x3]  ;;  %4363 = vmatprep.subr.msk.bf16.mxu0 %vm513_vm0, %v347_v2  ;;  %v4492_v4 = vsel %vm513_vm0, %v347_v2, 0  ;;  %v348_v5 = vld [vmem:[%s5774_s1 + $0xa] sm:$0x3] }
  0x10   : > { %3764 = vmatpush3.bf16.msra.mxu1 %v515_v1  ;;  %s5909_s12 = smov (!%p225_p4, %s4428_s12), 1  ;;  %5823 = vst [vmem:[#allocation3_spill] sm:$0xff] %v4492_v4  ;;  %3900 = vmatpush3.bf16.msra.mxu0 %v4492_v4  ;;  %vm464_vm1 = vcmask 31744   ;;  %v1194_v13 = vsel %vm513_vm0, %v344_v3, 0  ;;  %v4535_v15 = vld [vmem:[%s5774_s1 + $0x4] sm:$0x3] }
  0x11   : > { %4360 = vmatprep.subr.msk.bf16.mxu1 %vm513_vm0, %v344_v3  ;;  %s4369_s24 = smul.u32 216, %s5909_s12  ;;  %4365 = vmatprep.subr.msk.bf16.mxu0 %vm513_vm0, %v348_v5  ;;  %vm710_vm2 = vsmask.f32 3328  ;;  %vm711_vm3 = vsmask.f32 7440  ;;  %v4557_v22 = vsel %vm513_vm0, %v348_v5, 0 }
  0x12   : > { %vm4597_vm4 = vmor %vm710_vm2, %vm711_vm3  ;;  %vm1405_vm5 = vcmask 1042432   ;;  %vm1406_vm6 = vcmask 1046532   ;;  %vm256_vm8 = vcmask 261120   ;;  %s3609_s19 = sshll.u32 %s5909_s12, 8 }
  0x13   : > { %s4504_s27 = scalar_lea.vmem %s5773_s0, %s4369_s24  ;;  %vm4808_vm7 = vmor %vm1405_vm5, %vm1406_vm6  ;;  %s5586_s12 = scalar_lea.vmem %s5776_s3, %s3609_s19 }
  0x14   : > { %v4507_v6 = vld [vmem:[%s4504_s27] sm:$0xf]  ;;  %v4510_v7 = vld [vmem:[%s4504_s27 + $0x4] sm:$0xf]  ;;  %v4513_v8 = vld [vmem:[%s4504_s27 + $0xc] sm:$0xf] }
  0x15   : > { %v3390_v9 = vcombine.low %v4507_v6, %v4510_v7  ;;  %v4518_v10 = vld [vmem:[%s4504_s27 + $0x10] sm:$0xf]  ;;  %v4525_v12 = vld [vmem:[%s4504_s27 + $0x18] sm:$0xf]  ;;  %v4530_v14 = vld [vmem:[%s4504_s27 + $0x1c] sm:$0xf] }
  0x16   : > { %v4522_v11 = vcombine.low %v4513_v8, %v4518_v10  ;;  %v4541_v16 = vcombine.low %v4525_v12, %v4530_v14  ;;  %v762_v17 = vshrl.u32 %v4525_v12, 16  ;;  %v4545_v18 = vld [vmem:[%s4504_s27 + $0x24] sm:$0xf]  ;;  %v4548_v19 = vld [vmem:[%s4504_s27 + $0x28] sm:$0xf]  ;;  %v765_v20 = vshll.u32 %v4525_v12, 16 }
  0x17   : > { %3765 = vmatprep.mubr.msk.bf16.mxu1 %vm464_vm1, %v3390_v9  ;;  %v4554_v21 = vld [vmem:[%s4504_s27 + $0x14] sm:$0x1]  ;;  %v775_v25 = vshrl.u32 %v4530_v14, 16  ;;  %v738_v26 = vshrl.u32 %v4513_v8, 16  ;;  %v4567_v27 = vcombine.low %v4545_v18, %v4548_v19  ;;  %v741_v28 = vshll.u32 %v4513_v8, 16 }
  0x18   : > { %5824 = vst [vmem:[#allocation4_spill] sm:$0xff] %v4522_v11  ;;  %3766 = vmatmul.mubr.msk.bf16.vlgmr.msra.gmra.mrb[0].mxu1 %vm464_vm1, %v4522_v11  ;;  %5825 = vst [vmem:[#allocation5_spill] sm:$0xff] %v4541_v16  ;;  %v747_v29 = vshll.u32 %v4518_v10, 16  ;;  %v751_v30 = vshrl.u32 %v4518_v10, 16  ;;  %v4573_v31 = vld [vmem:[%s4504_s27 + $0x20] sm:$0x1] }
  0x19   : > { %3798 = vmatpush3.bf16.msra.mxu1 %v1194_v13  ;;  %3769 = vmatprep.mubr.msk.bf16.mxu1 %vm464_vm1, %v4541_v16  ;;  %5826 = vst [vmem:[#allocation6_spill] sm:$0xff] %v4567_v27  ;;  %v786_v32 = vshrl.u32 %v4545_v18, 16  ;;  %v740_v33 = vrot.slane %v738_v26, 4  ;;  %v757_v34 = vshll.u32 %v4554_v21, 16  ;;  %v764_v35 = vrot.slane %v762_v17, 4 }
  0x1a   : > { %4361 = vmatprep.subr.msk.bf16.mxu1 %vm513_vm0, %v4535_v15  ;;  %v743_v36 = vrot.slane %v741_v28, 5  ;;  %v749_v37 = vrot.slane %v747_v29, 5  ;;  %v753_v38 = vrot.slane %v751_v30, 4  ;;  %v767_v39 = vrot.slane %v765_v20, 5  ;;  %v4578_v40 = vld [vmem:[%s4504_s27 + $0x30] sm:$0xf] }
  0x1b   : > { %v789_v41 = vshll.u32 %v4545_v18, 16  ;;  %v771_v42 = vshll.u32 %v4530_v14, 16  ;;  %v777_v43 = vrot.slane %v775_v25, 4  ;;  %v781_v44 = vshll.u32 %v4573_v31, 16  ;;  %v4584_v45 = vld [vmem:[%s4504_s27 + $0x34] sm:$0xf] }
  0x1c   : > { %v744_v46 = vor.u32 %v743_v36, %v740_v33  ;;  %v754_v47 = vor.u32 %v753_v38, %v749_v37  ;;  %v759_v48 = vrot.slane %v757_v34, 5  ;;  %v768_v49 = vor.u32 %v767_v39, %v764_v35  ;;  %v4589_v50 = vld [vmem:[%s4504_s27 + $0x3c] sm:$0xf]  ;;  %v4592_v51 = vld [vmem:[%s4504_s27 + $0x40] sm:$0xf] }
  0x1d   : > { %v799_v52 = vshrl.u32 %v4548_v19, 16  ;;  %v773_v54 = vrot.slane %v771_v42, 5  ;;  %v783_v55 = vrot.slane %v781_v44, 5  ;;  %v4603_v56 = vcombine.low %v4578_v40, %v4584_v45  ;;  %v4615_v1 = vld [vmem:[%s4504_s27 + $0x2c] sm:$0x1] }
  0x1e   : > { %v745_v57 = vrot.slane %v744_v46, 4  ;;  %v755_v58 = vrot.slane %v754_v47, 4  ;;  %v769_v59 = vrot.slane %v768_v49, 4  ;;  %v810_v60 = vshrl.u32 %v4578_v40, 16  ;;  %v4630_v33 = vld [vmem:[%s4504_s27 + $0x38] sm:$0x1] }
  0x1f   : > { %5829 = vst [vmem:[#allocation7_spill] sm:$0xff] %v4603_v56  ;;  %v778_v61 = vor.u32 %v777_v43, %v773_v54  ;;  %v813_v62 = vshll.u32 %v4578_v40, 16  ;;  %v823_v63 = vshrl.u32 %v4584_v45, 16  ;;  %v4612_v0 = vcombine.low %v4589_v50, %v4592_v51  ;;  %v4643_v38 = vld [vmem:[%s5774_s1 + $0xc] sm:$0x3] }
  0x20   : > { %3770 = vmatmul.mubr.msk.bf16.gmra.mrb[4].mxu1 %vm464_vm1, %v4567_v27  ;;  %v750_v2 = vsel %vm4597_vm4, %v745_v57, %v749_v37  ;;  %v760_v3 = vsel %vm4597_vm4, %v755_v58, %v759_v48  ;;  %v774_v5 = vsel %vm4597_vm4, %v769_v59, %v773_v54  ;;  %v834_v9 = vshrl.u32 %v4589_v50, 16  ;;  %v4638_v37 = vld [vmem:[%s4504_s27 + $0x48] sm:$0xf]  ;;  %v4651_v44 = vld [vmem:[%s4504_s27 + $0x4c] sm:$0xf] }
  0x21   : > { %3773 = vmatprep.mubr.msk.bf16.mxu1 %vm464_vm1, %v4603_v56  ;;  %5830 = vst [vmem:[#allocation8_spill] sm:$0xff] %v4612_v0  ;;  %v4624_v13 = vcombine.low %v750_v2, %v760_v3  ;;  %v779_v17 = vrot.slane %v778_v61, 4  ;;  %v837_v20 = vshll.u32 %v4589_v50, 16  ;;  %v788_v25 = vrot.slane %v786_v32, 4  ;;  %v4654_v46 = vld [vmem:[%s4504_s27 + $0x54] sm:$0xf] }
  0x22   : > { %v791_v26 = vrot.slane %v789_v41, 5  ;;  %v795_v28 = vshll.u32 %v4548_v19, 16  ;;  %v801_v29 = vrot.slane %v799_v52, 4  ;;  %v805_v30 = vshll.u32 %v4615_v1, 16  ;;  %v4658_v54 = vld [vmem:[%s4504_s27 + $0x58] sm:$0xf] }
  0x23   : > { %3901 = vmatprep.mubr.msk.bf16.mxu0 %vm464_vm1, %v4624_v13  ;;  %v784_v34 = vsel %vm4597_vm4, %v779_v17, %v783_v55  ;;  %v812_v35 = vrot.slane %v810_v60, 4  ;;  %v815_v36 = vrot.slane %v813_v62, 5  ;;  %v819_v32 = vshll.u32 %v4584_v45, 16 }
  0x24   : > { %v4645_v39 = vcombine.low %v774_v5, %v784_v34  ;;  %v847_v41 = vshrl.u32 %v4592_v51, 16  ;;  %v792_v42 = vor.u32 %v791_v26, %v788_v25  ;;  %v797_v43 = vrot.slane %v795_v28, 5 }
  0x25   : > { %v816_v47 = vor.u32 %v815_v36, %v812_v35  ;;  %v821_v48 = vrot.slane %v819_v32, 5  ;;  %v825_v49 = vrot.slane %v823_v63, 4  ;;  %v829_v52 = vshll.u32 %v4630_v33, 16 }
  0x26   : > { %5831 = vst [vmem:[#allocation9_spill] sm:$0xff] %v4645_v39  ;;  %3902 = vmatmul.mubr.msk.bf16.vlgmr.msra.gmra.mrb[0].mxu0 %vm464_vm1, %v4645_v39  ;;  %v793_v55 = vrot.slane %v792_v42, 4  ;;  %v802_v57 = vor.u32 %v801_v29, %v797_v43  ;;  %v807_v58 = vrot.slane %v805_v30, 5  ;;  %v4664_v59 = vcombine.low %v4638_v37, %v4651_v44  ;;  %v4684_v29 = vld [vmem:[%s4504_s27 + $0x44] sm:$0x1] }
  0x27   : > { %3934 = vmatpush3.bf16.msra.mxu0 %v4557_v22  ;;  %v817_v60 = vrot.slane %v816_v47, 4  ;;  %v826_v61 = vor.u32 %v825_v49, %v821_v48  ;;  %v831_v62 = vrot.slane %v829_v52, 5  ;;  %v858_v63 = vshrl.u32 %v4638_v37, 16 }
  0x28   : > { %3774 = vmatmul.mubr.msk.bf16.gmra.mrb[8].mxu1 %vm464_vm1, %v4612_v0  ;;  %5832 = vst [vmem:[#allocation10_spill] sm:$0xff] %v4664_v59  ;;  %v798_v2 = vsel %vm4597_vm4, %v793_v55, %v797_v43  ;;  %v803_v3 = vrot.slane %v802_v57, 4  ;;  %v861_v5 = vshll.u32 %v4638_v37, 16  ;;  %v4675_v17 = vcombine.low %v4654_v46, %v4658_v54  ;;  %4366 = vmatprep.subr.msk.bf16.mxu0 %vm513_vm0, %v4643_v38  ;;  %v4703_v55 = vld [vmem:[%s4504_s27 + $0x60] sm:$0xf] }
  0x29   : > { %3777 = vmatprep.mubr.msk.bf16.mxu1 %vm464_vm1, %v4664_v59  ;;  %v822_v22 = vsel %vm4597_vm4, %v817_v60, %v821_v48  ;;  %v827_v25 = vrot.slane %v826_v61, 4  ;;  %v871_v26 = vshrl.u32 %v4651_v44, 16  ;;  %v882_v28 = vshrl.u32 %v4654_v46, 16  ;;  %v4695_v48 = vld [vmem:[%s4504_s27 + $0x50] sm:$0x1] }
  0x2a   : > { %5833 = vst [vmem:[#allocation11_spill] sm:$0xff] %v4675_v17  ;;  %v808_v30 = vsel %vm4597_vm4, %v803_v3, %v807_v58  ;;  %v885_v34 = vshll.u32 %v4654_v46, 16  ;;  %v836_v35 = vrot.slane %v834_v9, 4  ;;  %v839_v36 = vrot.slane %v837_v20, 5  ;;  %v4706_v57 = vld [vmem:[%s4504_s27 + $0x64] sm:$0xf] }
  0x2b   : > { %v4689_v32 = vcombine.low %v798_v2, %v808_v30  ;;  %v832_v42 = vsel %vm4597_vm4, %v827_v25, %v831_v62  ;;  %v843_v43 = vshll.u32 %v4592_v51, 16  ;;  %v849_v47 = vrot.slane %v847_v41, 4  ;;  %v4712_v62 = vld [vmem:[%s4504_s27 + $0x6c] sm:$0xf]  ;;  %v4723_v25 = vld [vmem:[%s4504_s27 + $0x70] sm:$0xf] }
  0x2c   : > { %v4697_v49 = vcombine.low %v822_v22, %v832_v42  ;;  %v840_v52 = vor.u32 %v839_v36, %v836_v35  ;;  %v853_v9 = vshll.u32 %v4684_v29, 16  ;;  %v860_v20 = vrot.slane %v858_v63, 4  ;;  %v4776_v59 = vld [vmem:[%s4504_s27 + $0x88] sm:$0xf] }
  0x2d   : > { %3905 = vmatprep.mubr.msk.bf16.mxu0 %vm464_vm1, %v4689_v32  ;;  %v845_v41 = vrot.slane %v843_v43, 5  ;;  %v863_v58 = vrot.slane %v861_v5, 5  ;;  %v867_v60 = vshll.u32 %v4651_v44, 16  ;;  %v873_v61 = vrot.slane %v871_v26, 4 }
  0x2e   : > { %3906 = vmatmul.mubr.msk.bf16.gmra.mrb[4].mxu0 %vm464_vm1, %v4697_v49  ;;  %v895_v2 = vshrl.u32 %v4658_v54, 16  ;;  %v841_v63 = vrot.slane %v840_v52, 4  ;;  %v877_v3 = vshll.u32 %v4695_v48, 16  ;;  %v4720_v22 = vcombine.low %v4703_v55, %v4706_v57 }
  0x2f   : > { %v850_v5 = vor.u32 %v849_v47, %v845_v41  ;;  %v855_v30 = vrot.slane %v853_v9, 5  ;;  %v864_v26 = vor.u32 %v863_v58, %v860_v20  ;;  %v869_v35 = vrot.slane %v867_v60, 5  ;;  %v4736_v9 = vld [vmem:[%s4504_s27 + $0x5c] sm:$0x1] }
  0x30   : > { %3778 = vmatmul.mubr.msk.bf16.gmra.mrb[12].mxu1 %vm464_vm1, %v4675_v17  ;;  %5834 = vst [vmem:[#allocation12_spill] sm:$0xff] %v4720_v22  ;;  %v846_v36 = vsel %vm4597_vm4, %v841_v63, %v845_v41  ;;  %v879_v42 = vrot.slane %v877_v3, 5  ;;  %v906_v43 = vshrl.u32 %v4703_v55, 16  ;;  %v909_v52 = vshll.u32 %v4703_v55, 16  ;;  %v4752_v17 = vld [vmem:[%s4504_s27 + $0x68] sm:$0x1] }
  0x31   : > { %3781 = vmatprep.mubr.msk.bf16.mxu1 %vm464_vm1, %v4720_v22  ;;  %v851_v24 = vrot.slane %v850_v5, 4  ;;  %v865_v23 = vrot.slane %v864_v26, 4  ;;  %v874_v4 = vor.u32 %v873_v61, %v869_v35  ;;  %v4733_v47 = vcombine.low %v4712_v62, %v4723_v25 }
  0x32   : > { %v723_v20 = vshll.u32 %v4510_v7, 16  ;;  %v727_v41 = vshrl.u32 %v4510_v7, 16  ;;  %v919_v58 = vshrl.u32 %v4706_v57, 16  ;;  %v884_v60 = vrot.slane %v882_v28, 4 }
  0x33   : > { %5835 = vst [vmem:[#allocation13_spill] sm:$0xff] %v4733_v47  ;;  %v856_v63 = vsel %vm4597_vm4, %v851_v24, %v855_v30  ;;  %v870_v61 = vsel %vm4597_vm4, %v865_v23, %v869_v35  ;;  %v875_v3 = vrot.slane %v874_v4, 4  ;;  %v887_v5 = vrot.slane %v885_v34, 5  ;;  %v4757_v30 = vld [vmem:[%s4504_s27 + $0x78] sm:$0xf] }
  0x34   : > { %v4745_v26 = vcombine.low %v846_v36, %v856_v63  ;;  %v891_v11 = vshll.u32 %v4658_v54, 16  ;;  %v897_v22 = vrot.slane %v895_v2, 4  ;;  %v901_v28 = vshll.u32 %v4736_v9, 16  ;;  %v4760_v35 = vld [vmem:[%s4504_s27 + $0x7c] sm:$0xf] }
  0x35   : > { %v880_v24 = vsel %vm4597_vm4, %v875_v3, %v879_v42  ;;  %v888_v23 = vor.u32 %v887_v5, %v884_v60  ;;  %v908_v4 = vrot.slane %v906_v43, 4  ;;  %v911_v34 = vrot.slane %v909_v52, 5  ;;  %v4772_v3 = vld [vmem:[%s4504_s27 + $0x84] sm:$0xf] }
  0x36   : > { %5836 = vst [vmem:[#allocation14_spill] sm:$0xff] %v4745_v26  ;;  %v5837_v36 = vshrl.u32 %v4507_v6, 16  ;;  %3909 = vmatprep.mubr.msk.bf16.mxu0 %vm464_vm1, %v4745_v26  ;;  %v4768_v2 = vcombine.low %v870_v61, %v880_v24  ;;  %v915_v42 = vshll.u32 %v4706_v57, 16  ;;  %v921_v60 = vrot.slane %v919_v58, 4 }
  0x37   : > { %v889_v43 = vrot.slane %v888_v23, 4  ;;  %v912_v52 = vor.u32 %v911_v34, %v908_v4  ;;  %v925_v5 = vshll.u32 %v4752_v17, 16  ;;  %v903_v61 = vrot.slane %v901_v28, 5  ;;  %v4796_v28 = vld [vmem:[%s4504_s27 + $0x90] sm:$0xf] }
  0x38   : > { %3782 = vmatmul.mubr.msk.bf16.gmra.mrb[16].mxu1 %vm464_vm1, %v4733_v47  ;;  %v4764_v63 = vrot.slane %v5837_v36, 4  ;;  %5838 = vst [vmem:[#allocation15_spill] sm:$0xff] %v4768_v2  ;;  %v893_v47 = vrot.slane %v891_v11, 5  ;;  %3910 = vmatmul.mubr.msk.bf16.gmra.mrb[8].mxu0 %vm464_vm1, %v4768_v2  ;;  %v917_v24 = vrot.slane %v915_v42, 5  ;;  %v4782_v11 = vcombine.low %v4757_v30, %v4760_v35  ;;  %v4799_v42 = vld [vmem:[%s4504_s27 + $0x94] sm:$0xf] }
  0x39   : > { %v5840_v23 = vshll.u32 %v4507_v6, 16  ;;  %v1424_v58 = vrot.slane %v4530_v14, 5  ;;  %v913_v0 = vrot.slane %v912_v52, 4  ;;  %v927_v16 = vrot.slane %v925_v5, 5 }
  0x3a   : > { %v898_v36 = vor.u32 %v897_v22, %v893_v47  ;;  %5839 = vst [vmem:[#allocation16_spill] sm:$0xff] %v4782_v11  ;;  %v894_v34 = vsel %vm4597_vm4, %v889_v43, %v893_v47  ;;  %v922_v27 = vor.u32 %v921_v60, %v917_v24  ;;  %3785 = vmatprep.mubr.msk.bf16.mxu1 %vm464_vm1, %v4782_v11  ;;  %v4801_v14 = vrot.slane %v723_v20, 5 }
  0x3b   : > { %v719_v4 = vrot.slane %v5840_v23, 5  ;;  %v4793_v22 = vcombine.low %v4772_v3, %v4776_v59  ;;  %v729_v47 = vrot.slane %v727_v41, 4  ;;  %v1420_v43 = vrot.slane %v4554_v21, 5 }
  0x3c   : > { %v899_v56 = vrot.slane %v898_v36, 4  ;;  %v918_v52 = vsel %vm4597_vm4, %v913_v0, %v917_v24  ;;  %v923_v36 = vrot.slane %v922_v27, 4  ;;  %v3455_v20 = vrot.slane %v4513_v8, 9  ;;  %v4829_v27 = vld [vmem:[%s4504_s27 + $0xa0] sm:$0xf] }
  0x3d   : > { %5841 = vst [vmem:[#allocation17_spill] sm:$0xff] %v4793_v22  ;;  %v1417_v21 = vrot.slane %v4518_v10, 5  ;;  %v3456_v41 = vrot.slane %v4525_v12, 9  ;;  %v1426_v0 = vrot.slane %v1424_v58, 4  ;;  %v4823_v23 = vcombine.low %v4796_v28, %v4799_v42 }
  0x3e   : > { %v904_v5 = vsel %vm4597_vm4, %v899_v56, %v903_v61  ;;  %v4826_v56 = vld [vmem:[%s4504_s27 + $0x9c] sm:$0xf]  ;;  %v1427_v61 = vrot.slane %v4573_v31, 5  ;;  %v928_v8 = vsel %vm4597_vm4, %v923_v36, %v927_v16  ;;  %v4851_v36 = vld [vmem:[%s4504_s27 + $0xa8] sm:$0xf] }
  0x3f   : > { %v4819_v24 = vcombine.low %v894_v34, %v904_v5  ;;  %5845 = vst [vmem:[#allocation19_spill] sm:$0xff] %v4823_v23  ;;  %v1418_v10 = vsel %vm4808_vm7, %v3455_v20, %v1417_v21  ;;  %v1419_v12 = vrot.slane %v1417_v21, 4  ;;  %v4838_v34 = vcombine.low %v918_v52, %v928_v8  ;;  %v4854_v20 = vld [vmem:[%s4504_s27 + $0xac] sm:$0xf] }
  0x40   : > { %3786 = vmatmul.mubr.msk.bf16.gmra.mrb[20].mxu1 %vm464_vm1, %v4793_v22  ;;  %v720_v5 = vor.u32 %v719_v4, %v4764_v63  ;;  %v5797_v22 = vrot.slane %v4510_v7, 5  ;;  %v4848_v16 = vcombine.low %v4826_v56, %v4829_v27  ;;  %v730_v52 = vor.u32 %v729_v47, %v4801_v14 }
  0x41   : > { %5844 = vst [vmem:[#allocation18_spill] sm:$0xff] %v4819_v24  ;;  %3913 = vmatprep.mubr.msk.bf16.mxu0 %vm464_vm1, %v4819_v24  ;;  %5846 = vst [vmem:[#allocation20_spill] sm:$0xff] %v4838_v34  ;;  %3789 = vmatprep.mubr.msk.bf16.mxu1 %vm464_vm1, %v4823_v23  ;;  %v1421_v31 = vsel %vm4808_vm7, %v1419_v12, %v1420_v43  ;;  %v3457_v4 = vrot.slane %v4545_v18, 9  ;;  %v1431_v43 = vrot.slane %v4548_v19, 5  ;;  %v1434_v12 = vrot.slane %v4615_v1, 5 }
  0x42   : > { %5847 = vst [vmem:[#allocation21_spill] sm:$0xff] %v4848_v16  ;;  %3914 = vmatmul.mubr.msk.bf16.gmra.mrb[12].mxu0 %vm464_vm1, %v4838_v34  ;;  %v4859_v63 = vcombine.low %v1418_v10, %v1421_v31  ;;  %v1425_v21 = vsel %vm4808_vm7, %v3456_v41, %v1424_v58  ;;  %v1428_v8 = vsel %vm4808_vm7, %v1426_v0, %v1427_v61  ;;  %v1438_v47 = vrot.slane %v4584_v45, 5  ;;  %v4887_v41 = vld [vmem:[%s4504_s27 + $0xb4] sm:$0xf]  ;;  %v4904_v58 = vld [vmem:[%s4504_s27 + $0x8] sm:$0x1] }
  0x43   : > { %v1432_v18 = vsel %vm4808_vm7, %v3457_v4, %v1431_v43  ;;  %v1433_v10 = vrot.slane %v1431_v43, 4  ;;  %v4875_v19 = vcombine.low %v4851_v36, %v4854_v20  ;;  %v4880_v1 = vrot.slane %v5797_v22, 4 }
  0x44   : > { %3935 = vmatprep.mubr.msk.bf16.mxu0 %vm464_vm1, %v4859_v63  ;;  %v2461_v45 = vsel %vm513_vm0, %v4643_v38, 0  ;;  %v4891_v0 = vsel %vm513_vm0, %v4535_v15, 0  ;;  %v721_v61 = vrot.slane %v720_v5, 4  ;;  %v4893_v31 = vcombine.low %v1425_v21, %v1428_v8  ;;  %v4901_v38 = vld [vmem:[%s4504_s27 + $0xb8] sm:$0xf] }
  0x45   : > { %5848 = vst [vmem:[#allocation22_spill] sm:$0xff] %v4875_v19  ;;  %v1435_v4 = vsel %vm4808_vm7, %v1433_v10, %v1434_v12  ;;  %v3458_v43 = vrot.slane %v4578_v40, 9  ;;  %v731_v22 = vrot.slane %v730_v52, 4  ;;  %v1440_v15 = vrot.slane %v1438_v47, 4 }
  0x46   : > { %v1441_v5 = vrot.slane %v4630_v33, 5  ;;  %v3459_v8 = vrot.slane %v4589_v50, 9  ;;  %v1445_v12 = vrot.slane %v4592_v51, 5  ;;  %v1448_v40 = vrot.slane %v4684_v29, 5  ;;  %v4923_v33 = vld [vmem:[%s5774_s1 + $0xe] sm:$0x3] }
  0x47   : > { %v4917_v52 = vcombine.low %v4887_v41, %v4901_v38  ;;  %v1439_v29 = vsel %vm4808_vm7, %v3458_v43, %v1438_v47  ;;  %v1452_v10 = vrot.slane %v4651_v44, 5  ;;  %v726_v51 = vsel %vm4597_vm4, %v721_v61, %v4801_v14 }
  0x48   : > { %3790 = vmatmul.mubr.msk.bf16.gmra.mrb[24].mxu1 %vm464_vm1, %v4848_v16  ;;  %v4906_v16 = vcombine.low %v1432_v18, %v1435_v4  ;;  %v733_v18 = vshll.u32 %v4904_v58, 16  ;;  %v1447_v4 = vrot.slane %v1445_v12, 4  ;;  %v1446_v47 = vsel %vm4808_vm7, %v3459_v8, %v1445_v12 }
  0x49   : > { %3793 = vmatprep.mubr.msk.bf16.mxu1 %vm464_vm1, %v4875_v19  ;;  %5850 = vst [vmem:[#allocation24_spill] sm:$0xff] %v4917_v52  ;;  %v1442_v19 = vsel %vm4808_vm7, %v1440_v15, %v1441_v5  ;;  %v1459_v43 = vrot.slane %v4658_v54, 5  ;;  %v3460_v54 = vrot.slane %v4638_v37, 9  ;;  %v3461_v14 = vrot.slane %v4654_v46, 9  ;;  %v4988_v46 = vld [vmem:[%s4504_s27 + $0x80] sm:$0x1] }
  0x4a   : > { %5849 = vst [vmem:[#allocation23_spill] sm:$0xff] %v4906_v16  ;;  %3936 = vmatmul.mubr.msk.bf16.vlgmr.msra.gmra.mrb[0].mxu0 %vm464_vm1, %v4893_v31  ;;  %v735_v50 = vrot.slane %v733_v18, 5  ;;  %v4955_v8 = vcombine.low %v1439_v29, %v1442_v19  ;;  %v1454_v18 = vrot.slane %v1452_v10, 4  ;;  %v1466_v19 = vrot.slane %v4706_v57, 5  ;;  %v5020_v15 = vld [vmem:[%s4504_s27 + $0x98] sm:$0x1] }
  0x4b   : > { %3968 = vmatpush3.bf16.msra.mxu0 %v2461_v45  ;;  %3939 = vmatprep.mubr.msk.bf16.mxu0 %vm464_vm1, %v4906_v16  ;;  %v1449_v45 = vsel %vm4808_vm7, %v1447_v4, %v1448_v40  ;;  %v1455_v4 = vrot.slane %v4695_v48, 5  ;;  %v1461_v44 = vrot.slane %v1459_v43, 4  ;;  %v1453_v57 = vsel %vm4808_vm7, %v3460_v54, %v1452_v10  ;;  %v4998_v54 = vld [vmem:[%s5774_s1 + $0x6] sm:$0x3] }
  0x4c   : > { %4367 = vmatprep.subr.msk.bf16.mxu0 %vm513_vm0, %v4923_v33  ;;  %v736_v61 = vsel %vm4597_vm4, %v731_v22, %v735_v50  ;;  %5851 = vst [vmem:[#allocation25_spill] sm:$0xff] %v4955_v8  ;;  %v4958_v40 = vcombine.low %v1446_v47, %v1449_v45  ;;  %v1462_v22 = vrot.slane %v4736_v9, 5  ;;  %v1473_v47 = vrot.slane %v4723_v25, 5 }
  0x4d   : > { %v3422_v12 = vcombine.low %v726_v51, %v736_v61  ;;  %v1456_v45 = vsel %vm4808_vm7, %v1454_v18, %v1455_v4  ;;  %v1460_v61 = vsel %vm4808_vm7, %v3461_v14, %v1459_v43  ;;  %v1480_v9 = vrot.slane %v4760_v35, 5 }
  0x4e   : > { %5852 = vst [vmem:[#allocation26_spill] sm:$0xff] %v4958_v40  ;;  %v1463_v29 = vsel %vm4808_vm7, %v1461_v44, %v1462_v22  ;;  %v3462_v48 = vrot.slane %v4703_v55, 9  ;;  %v1468_v51 = vrot.slane %v1466_v19, 4  ;;  %v1469_v10 = vrot.slane %v4752_v17, 5 }
  0x4f   : > { %v3463_v14 = vrot.slane %v4712_v62, 9  ;;  %v3464_v44 = vrot.slane %v4757_v30, 9  ;;  %v1487_v55 = vrot.slane %v4776_v59, 5  ;;  %v5007_v17 = vcombine.low %v1453_v57, %v1456_v45 }
  0x50   : > { %3794 = vmatmul.mubr.msk.bf16.gmra.mrb[28].mxu1 %vm464_vm1, %v4917_v52  ;;  %v1475_v4 = vrot.slane %v1473_v47, 4  ;;  %v5016_v43 = vcombine.low %v1460_v61, %v1463_v29  ;;  %v1482_v50 = vrot.slane %v1480_v9, 4  ;;  %v1483_v37 = vrot.slane %v4988_v46, 5  ;;  %v5037_v52 = vld [vmem:[%s4504_s27 + $0xa4] sm:$0x1] }
  0x51   : > { %3799 = vmatprep.mubr.msk.bf16.mxu1 %vm464_vm1, %v3422_v12  ;;  %v4985_v12 = vld [vmem:[%s4504_s27 + $0x74] sm:$0x1]  ;;  %5853 = vst [vmem:[#allocation27_spill] sm:$0xff] %v5007_v17  ;;  %v1494_v57 = vrot.slane %v4799_v42, 5  ;;  %v1467_v45 = vsel %vm4808_vm7, %v3462_v48, %v1466_v19  ;;  %v1470_v18 = vsel %vm4808_vm7, %v1468_v51, %v1469_v10  ;;  %v1501_v29 = vrot.slane %v4829_v27, 5 }
  0x52   : > { %3940 = vmatmul.mubr.msk.bf16.gmra.mrb[4].mxu0 %vm464_vm1, %v4955_v8  ;;  %v1476_v22 = vrot.slane %v4985_v12, 5  ;;  %5854 = vst [vmem:[#allocation28_spill] sm:$0xff] %v5016_v43  ;;  %v1474_v61 = vsel %vm4808_vm7, %v3463_v14, %v1473_v47  ;;  %v1481_v5 = vsel %vm4808_vm7, %v3464_v44, %v1480_v9  ;;  %v3465_v21 = vrot.slane %v4772_v3, 9 }
  0x53   : > { %3943 = vmatprep.mubr.msk.bf16.mxu0 %vm464_vm1, %v4958_v40  ;;  %v3466_v48 = vrot.slane %v4796_v28, 9  ;;  %v1497_v47 = vrot.slane %v5020_v15, 5  ;;  %v1484_v9 = vsel %vm4808_vm7, %v1482_v50, %v1483_v37  ;;  %v1496_v10 = vrot.slane %v1494_v57, 4 }
  0x54   : > { %v1477_v19 = vsel %vm4808_vm7, %v1475_v4, %v1476_v22  ;;  %v3467_v14 = vrot.slane %v4826_v56, 9  ;;  %v1508_v44 = vrot.slane %v4854_v20, 5  ;;  %v1504_v4 = vrot.slane %v5037_v52, 5  ;;  %v5054_v22 = vld [vmem:[%s4504_s27 + $0xb0] sm:$0x1] }
  0x55   : > { %v5855_v23 = vshrl.u32 %v4712_v62, 16  ;;  %v5856_v40 = vshll.u32 %v4712_v62, 16  ;;  %v5064_v37 = vcombine.low %v1474_v61, %v1477_v19  ;;  %v1488_v50 = vsel %vm4808_vm7, %v3465_v21, %v1487_v55 }
  0x56   : > { %v939_v8 = vshll.u32 %v4723_v25, 16  ;;  %v5069_v16 = vcombine.low %v1481_v5, %v1484_v9  ;;  %v1502_v21 = vsel %vm4808_vm7, %v3467_v14, %v1501_v29  ;;  %v1510_v5 = vrot.slane %v1508_v44, 4 }
  0x57   : > { %v935_v11 = vrot.slane %v5856_v40, 5  ;;  %v3468_v40 = vrot.slane %v4851_v36, 9 }
  0x58   : > { %3800 = vmatmul.mubr.msk.bf16.vlgmr.msra.gmra.mrb[0].mxu1 %vm464_vm1, %v4624_v13  ;;  %v5014_v13 = vld [vmem:[%s4504_s27 + $0x8c] sm:$0x1]  ;;  %v5087_v19 = vrot.slane %v939_v8, 5 }
  0x59   : > { %3803 = vmatprep.mubr.msk.bf16.mxu1 %vm464_vm1, %v4645_v39  ;;  %3832 = vmatpush3.bf16.msra.mxu1 %v4891_v0  ;;  %v1489_v39 = vrot.slane %v1487_v55, 4  ;;  %v1490_v51 = vrot.slane %v5014_v13, 5  ;;  %v1503_v0 = vrot.slane %v1501_v29, 4  ;;  %v1511_v55 = vrot.slane %v5054_v22, 5 }
  0x5a   : > { %4362 = vmatprep.subr.msk.bf16.mxu1 %vm513_vm0, %v4998_v54  ;;  %3944 = vmatmul.mubr.msk.bf16.gmra.mrb[8].mxu0 %vm464_vm1, %v5007_v17  ;;  %v932_v17 = vrot.slane %v5855_v23, 4  ;;  %v1495_v23 = vsel %vm4808_vm7, %v3466_v48, %v1494_v57  ;;  %v963_v57 = vshll.u32 %v4760_v35, 16  ;;  %v5859_v29 = vshll.u32 %v4757_v30, 16 }
  0x5b   : > { %3947 = vmatprep.mubr.msk.bf16.mxu0 %vm464_vm1, %v5016_v43  ;;  %v5060_v43 = vcombine.low %v1467_v45, %v1470_v18  ;;  %v1491_v62 = vsel %vm4808_vm7, %v1489_v39, %v1490_v51  ;;  %v1498_v18 = vsel %vm4808_vm7, %v1496_v10, %v1497_v47  ;;  %v1505_v45 = vsel %vm4808_vm7, %v1503_v0, %v1504_v4 }
  0x5c   : > { %v936_v61 = vor.u32 %v935_v11, %v932_v17  ;;  %v1515_v39 = vrot.slane %v4901_v38, 5  ;;  %v5857_v51 = vshrl.u32 %v4723_v25, 16  ;;  %v5858_v47 = vshrl.u32 %v4757_v30, 16  ;;  %v5102_v17 = vld [vmem:[%s4504_s27 + $0xbc] sm:$0x1] }
  0x5d   : > { %v959_v10 = vrot.slane %v5859_v29, 5  ;;  %v5097_v0 = vcombine.low %v1488_v50, %v1491_v62  ;;  %v5099_v11 = vcombine.low %v1495_v23, %v1498_v18  ;;  %v5104_v8 = vrot.slane %v963_v57, 5  ;;  %v5134_v29 = vld [vmem:[%s4504_s27 + $0xc0] sm:$0xf] }
  0x5e   : > { %v945_v48 = vrot.slane %v5857_v51, 4  ;;  %v956_v9 = vrot.slane %v5858_v47, 4  ;;  %v5860_v25 = vshrl.u32 %v4760_v35, 16  ;;  %v5110_v4 = vcombine.low %v1502_v21, %v1505_v45 }
  0x5f   : > { %v1509_v30 = vsel %vm4808_vm7, %v3468_v40, %v1508_v44  ;;  %v949_v50 = vshll.u32 %v4985_v12, 16  ;;  %v3469_v62 = vrot.slane %v4887_v41, 9  ;;  %v1512_v23 = vsel %vm4808_vm7, %v1510_v5, %v1511_v55 }
  0x60   : > { %3804 = vmatmul.mubr.msk.bf16.gmra.mrb[4].mxu1 %vm464_vm1, %v4689_v32  ;;  %v969_v14 = vrot.slane %v5860_v25, 4  ;;  %v937_v18 = vrot.slane %v936_v61, 4  ;;  %v1517_v57 = vrot.slane %v1515_v39, 4  ;;  %v987_v35 = vshll.u32 %v4776_v59, 16 }
  0x61   : > { %3807 = vmatprep.mubr.msk.bf16.mxu1 %vm464_vm1, %v4697_v49  ;;  %v946_v21 = vor.u32 %v945_v48, %v5087_v19  ;;  %v1518_v45 = vrot.slane %v5102_v17, 5  ;;  %v960_v44 = vor.u32 %v959_v10, %v956_v9  ;;  %v973_v12 = vshll.u32 %v4988_v46, 16 }
  0x62   : > { %3948 = vmatmul.mubr.msk.bf16.gmra.mrb[12].mxu0 %vm464_vm1, %v5060_v43  ;;  %v970_v40 = vor.u32 %v969_v14, %v5104_v8  ;;  %v5861_v5 = vshrl.u32 %v4772_v3, 16  ;;  %v5862_v61 = vshll.u32 %v4772_v3, 16  ;;  %v5863_v47 = vshrl.u32 %v4776_v59, 16 }
  0x63   : > { %3951 = vmatprep.mubr.msk.bf16.mxu0 %vm464_vm1, %v5064_v37  ;;  %v5136_v9 = vrot.slane %v987_v35, 5  ;;  %v5864_v46 = vshrl.u32 %v4796_v28, 16  ;;  %v5865_v25 = vshll.u32 %v4796_v28, 16  ;;  %v951_v3 = vrot.slane %v949_v50, 5 }
  0x64   : > { %v980_v55 = vrot.slane %v5861_v5, 4  ;;  %v983_v51 = vrot.slane %v5862_v61, 5  ;;  %v993_v48 = vrot.slane %v5863_v47, 4  ;;  %v5143_v5 = vcombine.low %v1509_v30, %v1512_v23 }
  0x65   : > { %v1004_v10 = vrot.slane %v5864_v46, 4  ;;  %v1007_v14 = vrot.slane %v5865_v25, 5  ;;  %v1516_v59 = vsel %vm4808_vm7, %v3469_v62, %v1515_v39  ;;  %v5866_v61 = vshrl.u32 %v4799_v42, 16  ;;  %v5153_v46 = vld [vmem:[%s4504_s27 + $0xc4] sm:$0xf] }
  0x66   : > { %v942_v35 = vsel %vm4597_vm4, %v937_v18, %v5087_v19  ;;  %v961_v28 = vrot.slane %v960_v44, 4  ;;  %v1519_v30 = vsel %vm4808_vm7, %v1517_v57, %v1518_v45  ;;  %v5162_v39 = vld [vmem:[%s4504_s27 + $0xc8] sm:$0x1]  ;;  %v984_v50 = vor.u32 %v983_v51, %v980_v55 }
  0x67   : > { %v1017_v47 = vrot.slane %v5866_v61, 4  ;;  %v997_v62 = vshll.u32 %v5014_v13, 16  ;;  %v971_v19 = vrot.slane %v970_v40, 4  ;;  %v975_v23 = vrot.slane %v973_v12, 5 }
  0x68   : > { %3808 = vmatmul.mubr.msk.bf16.gmra.mrb[8].mxu1 %vm464_vm1, %v4745_v26  ;;  %v947_v26 = vrot.slane %v946_v21, 4  ;;  %v1008_v18 = vor.u32 %v1007_v14, %v1004_v10  ;;  %v2245_v21 = vrot.slane %v5153_v46, 5  ;;  %v1021_v57 = vshll.u32 %v5020_v15, 16 }
  0x69   : > { %3811 = vmatprep.mubr.msk.bf16.mxu1 %vm464_vm1, %v4768_v2  ;;  %v1011_v2 = vshll.u32 %v4799_v42, 16  ;;  %v3536_v42 = vrot.slane %v5134_v29, 9  ;;  %v1035_v45 = vshll.u32 %v4829_v27, 16  ;;  %v5177_v55 = vcombine.low %v1516_v59, %v1519_v30 }
  0x6a   : > { %3952 = vmatmul.mubr.msk.bf16.gmra.mrb[16].mxu0 %vm464_vm1, %v5069_v16  ;;  %v952_v13 = vsel %vm4597_vm4, %v947_v26, %v951_v3  ;;  %v2248_v12 = vrot.slane %v5162_v39, 5  ;;  %v966_v40 = vsel %vm4597_vm4, %v961_v28, %v5104_v8  ;;  %v985_v15 = vrot.slane %v984_v50, 4 }
  0x6b   : > { %v5155_v25 = vrot.slane %v1011_v2, 5  ;;  %3955 = vmatprep.mubr.msk.bf16.mxu0 %vm464_vm1, %v5097_v0  ;;  %v994_v2 = vor.u32 %v993_v48, %v5136_v9  ;;  %v999_v51 = vrot.slane %v997_v62, 5  ;;  %v5867_v48 = vshrl.u32 %v4826_v56, 16 }
  0x6c   : > { %v5868_v14 = vshll.u32 %v4826_v56, 16  ;;  %v976_v26 = vsel %vm4597_vm4, %v971_v19, %v975_v23  ;;  %v1009_v59 = vrot.slane %v1008_v18, 4  ;;  %v1023_v8 = vrot.slane %v1021_v57, 5 }
  0x6d   : > { %v1018_v44 = vor.u32 %v1017_v47, %v5155_v25  ;;  %v1028_v10 = vrot.slane %v5867_v48, 4  ;;  %v995_v3 = vrot.slane %v994_v2, 4  ;;  %v1059_v47 = vshll.u32 %v4854_v20, 16 }
  0x6e   : > { %v1031_v61 = vrot.slane %v5868_v14, 5  ;;  %v5192_v28 = vrot.slane %v1035_v45, 5  ;;  %v5869_v50 = vshrl.u32 %v4829_v27, 16  ;;  %v2247_v48 = vrot.slane %v2245_v21, 4 }
  0x6f   : > { %v1019_v30 = vrot.slane %v1018_v44, 4  ;;  %v5870_v56 = vshrl.u32 %v4851_v36, 16  ;;  %v5204_v23 = vcombine.low %v966_v40, %v976_v26  ;;  %v990_v2 = vsel %vm4597_vm4, %v985_v15, %v5136_v9 }
  0x70   : > { %3812 = vmatmul.mubr.msk.bf16.gmra.mrb[12].mxu1 %vm464_vm1, %v4819_v24  ;;  %v1041_v62 = vrot.slane %v5869_v50, 4  ;;  %v5871_v24 = vshll.u32 %v4851_v36, 16  ;;  %v1032_v27 = vor.u32 %v1031_v61, %v1028_v10  ;;  %v1000_v18 = vsel %vm4597_vm4, %v995_v3, %v999_v51 }
  0x71   : > { %3815 = vmatprep.mubr.msk.bf16.mxu1 %vm464_vm1, %v4838_v34  ;;  %v5196_v34 = vcombine.low %v942_v35, %v952_v13  ;;  %v1052_v14 = vrot.slane %v5870_v56, 4  ;;  %v1045_v35 = vshll.u32 %v5037_v52, 16  ;;  %v1061_v36 = vrot.slane %v1059_v47, 5 }
  0x72   : > { %v1055_v19 = vrot.slane %v5871_v24, 5  ;;  %3956 = vmatmul.mubr.msk.bf16.gmra.mrb[20].mxu0 %vm464_vm1, %v5099_v11  ;;  %v5872_v24 = vshrl.u32 %v4854_v20, 16  ;;  %v5873_v57 = vrot.slane %v4510_v7, 5  ;;  %v5874_v45 = vrot.slane %v4507_v6, 9 }
  0x73   : > { %3959 = vmatprep.mubr.msk.bf16.mxu0 %vm464_vm1, %v5110_v4  ;;  %v1014_v52 = vsel %vm4597_vm4, %v1009_v59, %v5155_v25  ;;  %v1024_v13 = vsel %vm4597_vm4, %v1019_v30, %v1023_v8  ;;  %v1042_v40 = vor.u32 %v1041_v62, %v5192_v28  ;;  %v1069_v20 = vshll.u32 %v5054_v22, 16 }
  0x74   : > { %v1065_v44 = vrot.slane %v5872_v24, 4  ;;  %v5222_v9 = vsel %vm4808_vm7, %v5874_v45, %v5873_v57  ;;  %v2246_v6 = vsel %vm4808_vm7, %v3536_v42, %v2245_v21  ;;  %v2249_v7 = vsel %vm4808_vm7, %v2247_v48, %v2248_v12 }
  0x75   : > { %v1056_v15 = vor.u32 %v1055_v19, %v1052_v14  ;;  %v1413_v51 = vrot.slane %v4904_v58, 5  ;;  %v5240_v25 = vcombine.low %v990_v2, %v1000_v18  ;;  %v1033_v10 = vrot.slane %v1032_v27, 4 }
  0x76   : > { %v1047_v61 = vrot.slane %v1045_v35, 5  ;;  %v1083_v22 = vshll.u32 %v4901_v38, 16  ;;  %v5243_v26 = vcombine.low %v1014_v52, %v1024_v13  ;;  %v1066_v3 = vor.u32 %v1065_v44, %v1061_v36 }
  0x77   : > { %v5875_v42 = vshrl.u32 %v4887_v41, 16  ;;  %v1414_v12 = vsel %vm4808_vm7, %v4880_v1, %v1413_v51  ;;  %v1043_v58 = vrot.slane %v1042_v40, 4  ;;  %v1071_v59 = vrot.slane %v1069_v20, 5 }
  0x78   : > { %3816 = vmatmul.mubr.msk.bf16.gmra.mrb[16].mxu1 %vm464_vm1, %v5196_v34  ;;  %v5876_v47 = vshll.u32 %v4887_v41, 16  ;;  %v3470_v8 = vcombine.low %v5222_v9, %v1414_v12  ;;  %v1057_v50 = vrot.slane %v1056_v15, 4  ;;  %v2017_v62 = vshrl.u32 %v5134_v29, 16 }
  0x79   : > { %3819 = vmatprep.mubr.msk.bf16.mxu1 %vm464_vm1, %v5204_v23  ;;  %v1076_v21 = vrot.slane %v5875_v42, 4  ;;  %v2020_v48 = vshll.u32 %v5134_v29, 16  ;;  %v2026_v56 = vshll.u32 %v5153_v46, 16  ;;  %v1085_v14 = vrot.slane %v1083_v22, 5  ;;  %v5878_v42 = vld [vmem:[#allocation5_spill] sm:$0xff] }
  0x7a   : > { %v1079_v30 = vrot.slane %v5876_v47, 5  ;;  %3960 = vmatmul.mubr.msk.bf16.gmra.mrb[24].mxu0 %vm464_vm1, %v5143_v5  ;;  %v5877_v1 = vshrl.u32 %v4901_v38, 16  ;;  %v2030_v2 = vshrl.u32 %v5153_v46, 16  ;;  %v2036_v41 = vshll.u32 %v5162_v39, 16 }
  0x7b   : > { %3963 = vmatprep.mubr.msk.bf16.mxu0 %vm464_vm1, %v5177_v55  ;;  %v1067_v27 = vrot.slane %v1066_v3, 4  ;;  %v2019_v35 = vrot.slane %v2017_v62, 4  ;;  %v2022_v18 = vrot.slane %v2020_v48, 5  ;;  %v2028_v24 = vrot.slane %v2026_v56, 5  ;;  %v5880_v62 = vld [vmem:[#allocation7_spill] sm:$0xff]  ;;  %v5882_v48 = vld [vmem:[#allocation10_spill] sm:$0xff] }
  0x7c   : > { %v1089_v19 = vrot.slane %v5877_v1, 4  ;;  %v5264_v44 = vcombine.low %v2246_v6, %v2249_v7  ;;  %v2032_v57 = vrot.slane %v2030_v2, 4  ;;  %v1038_v38 = vsel %vm4597_vm4, %v1033_v10, %v5192_v28  ;;  %v5884_v1 = vld [vmem:[#allocation12_spill] sm:$0xff] }
  0x7d   : > { %v1048_v39 = vsel %vm4597_vm4, %v1043_v58, %v1047_v61  ;;  %v1093_v45 = vshll.u32 %v5102_v17, 16  ;;  %v2023_v9 = vor.u32 %v2022_v18, %v2019_v35  ;;  %v1080_v52 = vor.u32 %v1079_v30, %v1076_v21  ;;  %v5309_v30 = vld [vmem:[%s5774_s1 + $0x10] sm:$0x3]  ;;  %v5888_v2 = vld [vmem:[#allocation16_spill] sm:$0xff]  ;;  %v5892_v18 = vld [vmem:[#allocation19_spill] sm:$0xff] }
  0x7e   : > { %v1090_v13 = vor.u32 %v1089_v19, %v1085_v14  ;;  %v2033_v40 = vor.u32 %v2032_v57, %v2028_v24  ;;  %v2038_v20 = vrot.slane %v2036_v41, 5  ;;  %v1062_v6 = vsel %vm4597_vm4, %v1057_v50, %v1061_v36  ;;  %v5879_v50 = vld [vmem:[#allocation6_spill] sm:$0xff]  ;;  %v5887_v19 = vld [vmem:[#allocation13_spill] sm:$0xff] }
  0x7f   : > { %v1072_v7 = vsel %vm4597_vm4, %v1067_v27, %v1071_v59  ;;  %v2024_v28 = vrot.slane %v2023_v9, 4  ;;  %v5280_v51 = vcombine.low %v1038_v38, %v1048_v39  ;;  %v1095_v10 = vrot.slane %v1093_v45, 5  ;;  %v5889_v41 = vld [vmem:[#allocation26_spill] sm:$0xff]  ;;  %v5890_v27 = vld [vmem:[#allocation27_spill] sm:$0xff]  ;;  %v5891_v35 = vld [vmem:[#allocation17_spill] sm:$0xff] }
  0x80   : > { %3820 = vmatmul.mubr.msk.bf16.gmra.mrb[20].mxu1 %vm464_vm1, %v5240_v25  ;;  %v2034_v15 = vrot.slane %v2033_v40, 4  ;;  %v5286_v61 = vcombine.low %v1062_v6, %v1072_v7  ;;  %v1081_v22 = vrot.slane %v1080_v52, 4  ;;  %v1091_v3 = vrot.slane %v1090_v13, 4  ;;  %v5894_v57 = vld [vmem:[#allocation21_spill] sm:$0xff]  ;;  %v5895_v38 = vld [vmem:[#allocation22_spill] sm:$0xff]  ;;  %v5896_v45 = vld [vmem:[#allocation24_spill] sm:$0xff] }
  0x81   : > { %3823 = vmatprep.mubr.msk.bf16.mxu1 %vm464_vm1, %v5243_v26  ;;  %v2029_v17 = vsel %vm4597_vm4, %v2024_v28, %v2028_v24  ;;  %v2687_v59 = vsel %vm513_vm0, %v4923_v33, 0  ;;  %v5881_v33 = vld [vmem:[#allocation8_spill] sm:$0xff]  ;;  %v1821_v56 = vsel %vm513_vm0, %v4998_v54, 0  ;;  %v5885_v54 = vld [vmem:[#allocation23_spill] sm:$0xff]  ;;  %v5368_v39 = vcombine.low %v5134_v29, %v5153_v46  ;;  %v5378_v52 = vld [vmem:[%s4504_s27 + $0xd0] sm:$0xf] }
  0x82   : > { %3964 = vmatmul.mubr.msk.bf16.gmra.mrb[28].mxu0 %vm464_vm1, %v5264_v44  ;;  %v2039_v36 = vsel %vm4597_vm4, %v2034_v15, %v2038_v20  ;;  %v1086_v12 = vsel %vm4597_vm4, %v1081_v22, %v1085_v14  ;;  %v1096_v58 = vsel %vm4597_vm4, %v1091_v3, %v1095_v10  ;;  %v5883_v14 = vld [vmem:[#allocation11_spill] sm:$0xff]  ;;  %v5893_v24 = vld [vmem:[#allocation28_spill] sm:$0xff]  ;;  %v5897_v29 = vld [vmem:[#allocation9_spill] sm:$0xff]  ;;  %v4438_v46 = vmov 0.0  }
  0x83   : > { %3969 = vmatprep.mubr.msk.bf16.mxu0 %vm464_vm1, %v5878_v42  ;;  %v5292_v21 = vcombine.low %v2029_v17, %v2039_v36  ;;  %v5304_v47 = vcombine.low %v1086_v12, %v1096_v58  ;;  %v5375_v9 = vld [vmem:[%s4504_s27 + $0xcc] sm:$0xf]  ;;  %259 = vst.msk [vmem:[#allocation2 + $0x10] sm:$0xff] %vm256_vm8, %v4438_v46  ;;  %257 = vst.msk [vmem:[#allocation2] sm:$0xff] %vm256_vm8, %v4438_v46  ;;  %v2897_v40 = vsel %vm513_vm0, %v5309_v30, 0  ;;  %v5899_v6 = vld [vmem:[#allocation14_spill] sm:$0xff] }
  0x84   : > { %v3554_v13 = vcombine.low %v5375_v9, %v5378_v52  ;;  %258 = vst.msk [vmem:[#allocation2 + $0x8] sm:$0xff] %vm256_vm8, %v4438_v46  ;;  %260 = vst.msk [vmem:[#allocation2 + $0x18] sm:$0xff] %vm256_vm8, %v4438_v46  ;;  %v5898_v20 = vld [vmem:[#allocation4_spill] sm:$0xff]  ;;  %v5900_v7 = vld [vmem:[#allocation15_spill] sm:$0xff]  ;;  %v2657_v15 = vshrl.u32 %v5375_v9, 16  ;;  %v2660_v10 = vshll.u32 %v5375_v9, 16 }
  0x85   : > { %261 = vst.msk [vmem:[#allocation2 + $0x20] sm:$0xff] %vm256_vm8, %v4438_v46  ;;  %262 = vst.msk [vmem:[#allocation2 + $0x28] sm:$0xff] %vm256_vm8, %v4438_v46  ;;  %v5903_v28 = vld [vmem:[#allocation20_spill] sm:$0xff]  ;;  %v2670_v17 = vshrl.u32 %v5378_v52, 16  ;;  %v2666_v22 = vshll.u32 %v5378_v52, 16  ;;  %v2885_v53 = vrot.slane %v5378_v52, 5 }
  0x86   : > { %263 = vst.msk [vmem:[#allocation2 + $0x30] sm:$0xff] %vm256_vm8, %v4438_v46  ;;  %264 = vst.msk [vmem:[#allocation2 + $0x38] sm:$0xff] %vm256_vm8, %v4438_v46  ;;  %v2659_v3 = vrot.slane %v2657_v15, 4  ;;  %v2662_v36 = vrot.slane %v2660_v10, 5  ;;  %v342_v58 = vld [vmem:[%s4504_s27 + $0xd4] sm:$0x1] }
  0x87   : > { %265 = vst.msk [vmem:[#allocation2 + $0x40] sm:$0xff] %vm256_vm8, %v4438_v46  ;;  %266 = vst.msk [vmem:[#allocation2 + $0x48] sm:$0xff] %vm256_vm8, %v4438_v46  ;;  %v2672_v12 = vrot.slane %v2670_v17, 4 }
  0x88   : > { %3824 = vmatmul.mubr.msk.bf16.gmra.mrb[24].mxu1 %vm464_vm1, %v5280_v51  ;;  %267 = vst.msk [vmem:[#allocation2 + $0x50] sm:$0xff] %vm256_vm8, %v4438_v46  ;;  %268 = vst.msk [vmem:[#allocation2 + $0x58] sm:$0xff] %vm256_vm8, %v4438_v46 }
  0x89   : > { %3827 = vmatprep.mubr.msk.bf16.mxu1 %vm464_vm1, %v5286_v61  ;;  %269 = vst.msk [vmem:[#allocation2 + $0x60] sm:$0xff] %vm256_vm8, %v4438_v46  ;;  %270 = vst.msk [vmem:[#allocation2 + $0x68] sm:$0xff] %vm256_vm8, %v4438_v46 }
  0x8a   : > { %3970 = vmatmul.mubr.msk.bf16.vlgmr.msra.gmra.mrb[0].mxu0 %vm464_vm1, %v5879_v50  ;;  %271 = vst.msk [vmem:[#allocation2 + $0x70] sm:$0xff] %vm256_vm8, %v4438_v46  ;;  %272 = vst.msk [vmem:[#allocation2 + $0x78] sm:$0xff] %vm256_vm8, %v4438_v46 }
  0x8b   : > { %4002 = vmatpush3.bf16.msra.mxu0 %v2687_v59  ;;  %3973 = vmatprep.mubr.msk.bf16.mxu0 %vm464_vm1, %v5880_v62  ;;  %273 = vst.msk [vmem:[#allocation2 + $0x80] sm:$0xff] %vm256_vm8, %v4438_v46  ;;  %274 = vst.msk [vmem:[#allocation2 + $0x88] sm:$0xff] %vm256_vm8, %v4438_v46  ;;  %v2663_v59 = vor.u32 %v2662_v36, %v2659_v3 }
  0x8c   : > { %4368 = vmatprep.subr.msk.bf16.mxu0 %vm513_vm0, %v5309_v30  ;;  %275 = vst.msk [vmem:[#allocation2 + $0x90] sm:$0xff] %vm256_vm8, %v4438_v46  ;;  %276 = vst.msk [vmem:[#allocation2 + $0x98] sm:$0xff] %vm256_vm8, %v4438_v46 }
  0x8d   : > { %277 = vst.msk [vmem:[#allocation2 + $0xa0] sm:$0xff] %vm256_vm8, %v4438_v46  ;;  %278 = vst.msk [vmem:[#allocation2 + $0xa8] sm:$0xff] %vm256_vm8, %v4438_v46 }
  0x8e   : > { %279 = vst.msk [vmem:[#allocation2 + $0xb0] sm:$0xff] %vm256_vm8, %v4438_v46  ;;  %280 = vst.msk [vmem:[#allocation2 + $0xb8] sm:$0xff] %vm256_vm8, %v4438_v46 }
  0x8f   : > { %281 = vst.msk [vmem:[#allocation2 + $0xc0] sm:$0xff] %vm256_vm8, %v4438_v46  ;;  %282 = vst.msk [vmem:[#allocation2 + $0xc8] sm:$0xff] %vm256_vm8, %v4438_v46 }
  0x90   : > { %3828 = vmatmul.mubr.msk.bf16.gmra.mrb[28].mxu1 %vm464_vm1, %v5304_v47  ;;  %283 = vst.msk [vmem:[#allocation2 + $0xd0] sm:$0xff] %vm256_vm8, %v4438_v46  ;;  %284 = vst.msk [vmem:[#allocation2 + $0xd8] sm:$0xff] %vm256_vm8, %v4438_v46 }
  0x91   : > { %3833 = vmatprep.mubr.msk.bf16.mxu1 %vm464_vm1, %v3470_v8  ;;  %v4413_v8 = vld [vmem:[%s5774_s1 + $0x8] sm:$0x3]  ;;  %285 = vst.msk [vmem:[#allocation2 + $0xe0] sm:$0xff] %vm256_vm8, %v4438_v46  ;;  %286 = vst.msk [vmem:[#allocation2 + $0xe8] sm:$0xff] %vm256_vm8, %v4438_v46 }
  0x92   : > { %3974 = vmatmul.mubr.msk.bf16.gmra.mrb[4].mxu0 %vm464_vm1, %v5881_v33  ;;  %287 = vst.msk [vmem:[#allocation2 + $0xf0] sm:$0xff] %vm256_vm8, %v4438_v46  ;;  %288 = vst.msk [vmem:[#allocation2 + $0xf8] sm:$0xff] %vm256_vm8, %v4438_v46  ;;  %v358_v46 = vld [vmem:[#allocation2 + $0x30] sm:$0xff] }
  0x93   : > { %3977 = vmatprep.mubr.msk.bf16.mxu0 %vm464_vm1, %v5882_v48 }
  0x98   : > { %3834 = vmatmul.mubr.msk.bf16.vlgmr.msra.gmra.mrb[0].mxu1 %vm464_vm1, %v4859_v63  ;;  %v5886_v63 = vld [vmem:[#allocation25_spill] sm:$0xff] }
  0x99   : > { %3837 = vmatprep.mubr.msk.bf16.mxu1 %vm464_vm1, %v4893_v31  ;;  %3866 = vmatpush3.bf16.msra.mxu1 %v1821_v56 }
  0x9a   : > { %4364 = vmatprep.subr.msk.bf16.mxu1 %vm513_vm0, %v4413_v8  ;;  %3978 = vmatmul.mubr.msk.bf16.gmra.mrb[8].mxu0 %vm464_vm1, %v5883_v14 }
  0x9b   : > { %3981 = vmatprep.mubr.msk.bf16.mxu0 %vm464_vm1, %v5884_v1 }
  0xa0   : > { %3838 = vmatmul.mubr.msk.bf16.gmra.mrb[4].mxu1 %vm464_vm1, %v5885_v54 }
  0xa1   : > { %3841 = vmatprep.mubr.msk.bf16.mxu1 %vm464_vm1, %v5886_v63 }
  0xa2   : > { %3982 = vmatmul.mubr.msk.bf16.gmra.mrb[12].mxu0 %vm464_vm1, %v5887_v19 }
  0xa3   : > { %3985 = vmatprep.mubr.msk.bf16.mxu0 %vm464_vm1, %v5888_v2 }
  0xa8   : > { %3842 = vmatmul.mubr.msk.bf16.gmra.mrb[8].mxu1 %vm464_vm1, %v5889_v41 }
  0xa9   : > { %3845 = vmatprep.mubr.msk.bf16.mxu1 %vm464_vm1, %v5890_v27 }
  0xaa   : > { %3986 = vmatmul.mubr.msk.bf16.gmra.mrb[16].mxu0 %vm464_vm1, %v5891_v35 }
  0xab   : > { %3989 = vmatprep.mubr.msk.bf16.mxu0 %vm464_vm1, %v5892_v18 }
  0xb0   : > { %3846 = vmatmul.mubr.msk.bf16.gmra.mrb[12].mxu1 %vm464_vm1, %v5893_v24 }
  0xb1   : > { %3849 = vmatprep.mubr.msk.bf16.mxu1 %vm464_vm1, %v5060_v43 }
  0xb2   : > { %3990 = vmatmul.mubr.msk.bf16.gmra.mrb[20].mxu0 %vm464_vm1, %v5894_v57 }
  0xb3   : > { %3993 = vmatprep.mubr.msk.bf16.mxu0 %vm464_vm1, %v5895_v38 }
  0xb8   : > { %3850 = vmatmul.mubr.msk.bf16.gmra.mrb[16].mxu1 %vm464_vm1, %v5064_v37 }
  0xb9   : > { %3853 = vmatprep.mubr.msk.bf16.mxu1 %vm464_vm1, %v5069_v16 }
  0xba   : > { %3994 = vmatmul.mubr.msk.bf16.gmra.mrb[24].mxu0 %vm464_vm1, %v5896_v45 }
  0xbb   : > { %3997 = vmatprep.mubr.msk.bf16.mxu0 %vm464_vm1, %v5368_v39 }
  0xc0   : > { %3854 = vmatmul.mubr.msk.bf16.gmra.mrb[20].mxu1 %vm464_vm1, %v5097_v0 }
  0xc1   : > { %3857 = vmatprep.mubr.msk.bf16.mxu1 %vm464_vm1, %v5099_v11 }
  0xc2   : > { %3998 = vmatmul.mubr.msk.bf16.gmra.mrb[28].mxu0 %vm464_vm1, %v3554_v13 }
  0xc3   : > { %4003 = vmatprep.mubr.msk.bf16.mxu0 %vm464_vm1, %v5897_v29 }
  0xc8   : > { %3858 = vmatmul.mubr.msk.bf16.gmra.mrb[24].mxu1 %vm464_vm1, %v5110_v4 }
  0xc9   : > { %3861 = vmatprep.mubr.msk.bf16.mxu1 %vm464_vm1, %v5143_v5 }
  0xca   : > { %4004 = vmatmul.mubr.msk.bf16.vlgmr.msra.gmra.mrb[0].mxu0 %vm464_vm1, %v4689_v32  ;;  %v5901_v32 = vld [vmem:[#allocation3_spill] sm:$0xff] }
  0xcb   : > { %4036 = vmatpush3.bf16.msra.mxu0 %v2897_v40  ;;  %4007 = vmatprep.mubr.msk.bf16.mxu0 %vm464_vm1, %v4697_v49  ;;  %v5902_v49 = vld [vmem:[#allocation18_spill] sm:$0xff] }
  0xd0   : > { %3862 = vmatmul.mubr.msk.bf16.gmra.mrb[28].mxu1 %vm464_vm1, %v5177_v55 }
  0xd1   : > { %3867 = vmatprep.mubr.msk.bf16.mxu1 %vm464_vm1, %v5898_v20  ;;  %v356_v20 = vld [vmem:[#allocation2 + $0x20] sm:$0xff] }
  0xd2   : > { %4008 = vmatmul.mubr.msk.bf16.gmra.mrb[4].mxu0 %vm464_vm1, %v5899_v6  ;;  %v359_v6 = vld [vmem:[#allocation2 + $0x38] sm:$0xff] }
  0xd3   : > { %4011 = vmatprep.mubr.msk.bf16.mxu0 %vm464_vm1, %v5900_v7 }
  0xd8   : > { %3868 = vmatmul.mubr.msk.bf16.vlgmr.msra.gmra.mrb[0].mxu1 %vm464_vm1, %v5878_v42  ;;  %v2668_v42 = vrot.slane %v2666_v22, 5 }
  0xd9   : > { %3871 = vmatprep.mubr.msk.bf16.mxu1 %vm464_vm1, %v5879_v50  ;;  %4070 = vmatpush3.bf16.msra.mxu1 %v5901_v32  ;;  %v2676_v50 = vshll.u32 %v342_v58, 16  ;;  %v357_v32 = vld [vmem:[#allocation2 + $0x28] sm:$0xff] }
  0xda   : > { %4012 = vmatmul.mubr.msk.bf16.gmra.mrb[8].mxu0 %vm464_vm1, %v5902_v49  ;;  %v2673_v30 = vor.u32 %v2672_v12, %v2668_v42 }
  0xdb   : > { %4015 = vmatprep.mubr.msk.bf16.mxu0 %vm464_vm1, %v5903_v28  ;;  %v5576_v28 = vld [vmem:[%s5775_s2] ss:$0 sm:$0xff] }
  0xe0   : > { %3872 = vmatmul.mubr.msk.bf16.gmra.mrb[4].mxu1 %vm464_vm1, %v5880_v62  ;;  %v2664_v62 = vrot.slane %v2663_v59, 4 }
  0xe1   : > { %3875 = vmatprep.mubr.msk.bf16.mxu1 %vm464_vm1, %v5881_v33  ;;  %v2674_v33 = vrot.slane %v2673_v30, 4 }
  0xe2   : > { %4016 = vmatmul.mubr.msk.bf16.gmra.mrb[12].mxu0 %vm464_vm1, %v5196_v34  ;;  %v2669_v56 = vsel %vm4597_vm4, %v2664_v62, %v2668_v42 }
  0xe3   : > { %4019 = vmatprep.mubr.msk.bf16.mxu0 %vm464_vm1, %v5204_v23 }
  0xe8   : > { %3876 = vmatmul.mubr.msk.bf16.gmra.mrb[8].mxu1 %vm464_vm1, %v5882_v48  ;;  %v2678_v48 = vrot.slane %v2676_v50, 5 }
  0xe9   : > { %3879 = vmatprep.mubr.msk.bf16.mxu1 %vm464_vm1, %v5883_v14 }
  0xea   : > { %4020 = vmatmul.mubr.msk.bf16.gmra.mrb[16].mxu0 %vm464_vm1, %v5240_v25  ;;  %v2679_v8 = vsel %vm4597_vm4, %v2674_v33, %v2678_v48  ;;  %v362_v33 = vld [vmem:[#allocation2 + $0x50] sm:$0xff] }
  0xeb   : > { %4023 = vmatprep.mubr.msk.bf16.mxu0 %vm464_vm1, %v5243_v26  ;;  %v3571_v14 = vcombine.low %v2669_v56, %v2679_v8 }
  0xf0   : > { %3880 = vmatmul.mubr.msk.bf16.gmra.mrb[12].mxu1 %vm464_vm1, %v5884_v1 }
  0xf1   : > { %3883 = vmatprep.mubr.msk.bf16.mxu1 %vm464_vm1, %v5887_v19  ;;  %v354_v19 = vld [vmem:[#allocation2 + $0x10] sm:$0xff] }
  0xf2   : > { %4024 = vmatmul.mubr.msk.bf16.gmra.mrb[20].mxu0 %vm464_vm1, %v5280_v51 }
  0xf3   : > { %4027 = vmatprep.mubr.msk.bf16.mxu0 %vm464_vm1, %v5286_v61 }
  0xf8   : > { %3884 = vmatmul.mubr.msk.bf16.gmra.mrb[16].mxu1 %vm464_vm1, %v5888_v2  ;;  %v352_v2 = vld [vmem:[#allocation2] sm:$0xff] }
  0xf9   : > { %3887 = vmatprep.mubr.msk.bf16.mxu1 %vm464_vm1, %v5891_v35  ;;  %v353_v35 = vld [vmem:[#allocation2 + $0x8] sm:$0xff] }
  0xfa   : > { %4028 = vmatmul.mubr.msk.bf16.gmra.mrb[24].mxu0 %vm464_vm1, %v5304_v47 }
  0xfb   : > { %4031 = vmatprep.mubr.msk.bf16.mxu0 %vm464_vm1, %v5292_v21 }
 0x100   : > { %3888 = vmatmul.mubr.msk.bf16.gmra.mrb[20].mxu1 %vm464_vm1, %v5892_v18 }
 0x101   : > { %3891 = vmatprep.mubr.msk.bf16.mxu1 %vm464_vm1, %v5894_v57 }
 0x102   : > { %4032 = vmatmul.mubr.msk.bf16.gmra.mrb[28].mxu0 %vm464_vm1, %v3571_v14 }
 0x103   : > { %4037 = vmatprep.mubr.msk.bf16.mxu0 %vm464_vm1, %v4893_v31  ;;  %v2888_v31 = vrot.slane %v342_v58, 5 }
 0x108   : > { %3892 = vmatmul.mubr.msk.bf16.gmra.mrb[24].mxu1 %vm464_vm1, %v5895_v38 }
 0x109   : > { %3895 = vmatprep.mubr.msk.bf16.mxu1 %vm464_vm1, %v5896_v45 }
 0x10a   : > { %4038 = vmatmul.mubr.msk.bf16.vlgmr.msra.gmra.mrb[0].mxu0 %vm464_vm1, %v5885_v54 }
 0x10b   : > { %4041 = vmatprep.mubr.msk.bf16.mxu0 %vm464_vm1, %v5886_v63 }
 0x110   : > { %3896 = vmatmul.mubr.msk.bf16.gmra.mrb[28].mxu1 %vm464_vm1, %v5368_v39 }
 0x111   : > { %3917 = vmatprep.mubr.msk.bf16.mxu1 %vm464_vm1, %v5196_v34  ;;  %v3588_v34 = vrot.slane %v5375_v9, 9 }
 0x112   : > { %4042 = vmatmul.mubr.msk.bf16.gmra.mrb[4].mxu0 %vm464_vm1, %v5889_v41  ;;  %v355_v41 = vld [vmem:[#allocation2 + $0x18] sm:$0xff] }
 0x113   : > { %4045 = vmatprep.mubr.msk.bf16.mxu0 %vm464_vm1, %v5890_v27 }
 0x118   : > { %3918 = vmatmul.mubr.msk.bf16.vlgmr.msra.gmra.mrb[16].mxu1 %vm464_vm1, %v5204_v23 }
 0x119   : > { %3921 = vmatprep.mubr.msk.bf16.mxu1 %vm464_vm1, %v5240_v25 }
 0x11a   : > { %4046 = vmatmul.mubr.msk.bf16.gmra.mrb[8].mxu0 %vm464_vm1, %v5893_v24 }
 0x11b   : > { %4049 = vmatprep.mubr.msk.bf16.mxu0 %vm464_vm1, %v5060_v43  ;;  %v2886_v43 = vsel %vm4808_vm7, %v3588_v34, %v2885_v53 }
 0x120   : > { %3922 = vmatmul.mubr.msk.bf16.gmra.mrb[20].mxu1 %vm464_vm1, %v5243_v26 }
 0x121   : > { %3925 = vmatprep.mubr.msk.bf16.mxu1 %vm464_vm1, %v5280_v51 }
 0x122   : > { %4050 = vmatmul.mubr.msk.bf16.gmra.mrb[12].mxu0 %vm464_vm1, %v5064_v37 }
 0x123   : > { %4053 = vmatprep.mubr.msk.bf16.mxu0 %vm464_vm1, %v5069_v16  ;;  %v2887_v16 = vrot.slane %v2885_v53, 4  ;;  %v360_v53 = vld [vmem:[#allocation2 + $0x40] sm:$0xff] }
 0x125   : > { %v2889_v37 = vsel %vm4808_vm7, %v2887_v16, %v2888_v31 }
 0x128   : > { %3926 = vmatmul.mubr.msk.bf16.gmra.mrb[24].mxu1 %vm464_vm1, %v5286_v61 }
 0x129   : > { %3929 = vmatprep.mubr.msk.bf16.mxu1 %vm464_vm1, %v5304_v47 }
 0x12a   : > { %4054 = vmatmul.mubr.msk.bf16.gmra.mrb[16].mxu0 %vm464_vm1, %v5097_v0  ;;  %v3589_v0 = vcombine.low %v2886_v43, %v2889_v37  ;;  %v363_v37 = vld [vmem:[#allocation2 + $0x58] sm:$0xff] }
 0x12b   : > { %4057 = vmatprep.mubr.msk.bf16.mxu0 %vm464_vm1, %v5099_v11 }
 0x130   : > { %3930 = vmatmul.mubr.msk.bf16.gmra.mrb[28].mxu1 %vm464_vm1, %v5292_v21 }
 0x132   : > { %4058 = vmatmul.mubr.msk.bf16.gmra.mrb[20].mxu0 %vm464_vm1, %v5110_v4 }
 0x133   : > { %4061 = vmatprep.mubr.msk.bf16.mxu0 %vm464_vm1, %v5143_v5 }
 0x13a   : > { %4062 = vmatmul.mubr.msk.bf16.gmra.mrb[24].mxu0 %vm464_vm1, %v5177_v55 }
 0x13b   : > { %4065 = vmatprep.mubr.msk.bf16.mxu0 %vm464_vm1, %v5264_v44 }
 0x142   : > { %4066 = vmatmul.mubr.msk.bf16.gmra.mrb[28].mxu0 %vm464_vm1, %v3589_v0 }
 0x1ab   : > { %v3869_v11 = vpop.f32.mrb[0].mxu1 }
 0x1ac   : > { %v1857_v4 = vpop.f32.mrb[1].mxu1  ;;  %v4071_v27 = vadd.f32 %v3869_v11, %v354_v19 }
 0x1ad   : > { %v3870_v5 = vpop.f32.mrb[2].mxu1  ;;  %v4073_v18 = vadd.f32 %v1857_v4, %v352_v2 }
 0x1ae   : > { %v1860_v23 = vpop.f32.mrb[3].mxu1  ;;  %v4075_v57 = vadd.f32 %v3870_v5, %v355_v41 }
 0x1af   : > { %v4077_v45 = vadd.f32 %v1860_v23, %v353_v35  ;;  %v361_v23 = vld [vmem:[#allocation2 + $0x48] sm:$0xff] }
 0x1b3   : > { %v3873_v25 = vpop.f32.mrb[4].mxu1 }
 0x1b4   : > { %v1873_v26 = vpop.f32.mrb[5].mxu1  ;;  %v4079_v7 = vadd.f32 %v3873_v25, %v358_v46 }
 0x1b5   : > { %v3874_v51 = vpop.f32.mrb[6].mxu1  ;;  %v4081_v49 = vadd.f32 %v1873_v26, %v356_v20 }
 0x1b6   : > { %v1876_v55 = vpop.f32.mrb[7].mxu1  ;;  %v4083_v10 = vadd.f32 %v3874_v51, %v359_v6  ;;  %v367_v6 = vld [vmem:[#allocation2 + $0x78] sm:$0xff] }
 0x1b7   : > { %v4085_v3 = vadd.f32 %v1876_v55, %v357_v32 }
 0x1bb   : > { %v5553_v61 = vpop.f32.mrb[8].mxu1 }
 0x1bc   : > { %v5555_v44 = vpop.f32.mrb[9].mxu1  ;;  %v4087_v5 = vadd.f32 %v5553_v61, %v362_v33 }
 0x1bd   : > { %v5557_v21 = vpop.f32.mrb[10].mxu1  ;;  %v4089_v26 = vadd.f32 %v5555_v44, %v360_v53 }
 0x1be   : > { %v5559_v47 = vpop.f32.mrb[11].mxu1  ;;  %v4091_v19 = vadd.f32 %v5557_v21, %v363_v37  ;;  %v366_v21 = vld [vmem:[#allocation2 + $0x70] sm:$0xff] }
 0x1c3   : > { %v5561_v60 = vpop.f32.mrb[12].mxu1 }
 0x1c4   : > { %v5563_v1 = vpop.f32.mrb[13].mxu1 }
 0x1c5   : > { %v5565_v54 = vpop.f32.mrb[14].mxu1 }
 0x1c6   : > { %v5567_v63 = vpop.f32.mrb[15].mxu1 }
 0x1dd   : > { %v4039_v24 = vpop.f32.mrb[0].mxu0 }
 0x1de   : > { %v4072_v38 = vadd.f32 %v4071_v27, %v4039_v24  ;;  %v2933_v39 = vpop.f32.mrb[1].mxu0  ;;  %v4093_v27 = vadd.f32 %v5559_v47, %v361_v23 }
 0x1df   : > { %v4074_v9 = vadd.f32 %v4073_v18, %v2933_v39  ;;  %v4040_v52 = vpop.f32.mrb[2].mxu0 }
 0x1e0   : > { %3095 = vst.msk [vmem:[#allocation2 + $0x10] sm:$0xff] %vm256_vm8, %v4072_v38  ;;  %v4076_v13 = vadd.f32 %v4075_v57, %v4040_v52  ;;  %v2936_v29 = vpop.f32.mrb[3].mxu0 }
 0x1e1   : > { %3093 = vst.msk [vmem:[#allocation2] sm:$0xff] %vm256_vm8, %v4074_v9  ;;  %v4078_v40 = vadd.f32 %v4077_v45, %v2936_v29 }
 0x1e2   : > { %3096 = vst.msk [vmem:[#allocation2 + $0x18] sm:$0xff] %vm256_vm8, %v4076_v13  ;;  %v364_v13 = vld [vmem:[#allocation2 + $0x60] sm:$0xff] }
 0x1e3   : > { %3094 = vst.msk [vmem:[#allocation2 + $0x8] sm:$0xff] %vm256_vm8, %v4078_v40 }
 0x1e5   : > { %v4043_v15 = vpop.f32.mrb[4].mxu0 }
 0x1e6   : > { %v4080_v17 = vadd.f32 %v4079_v7, %v4043_v15  ;;  %v2949_v22 = vpop.f32.mrb[5].mxu0  ;;  %v4095_v15 = vadd.f32 %v5561_v60, %v366_v21 }
 0x1e7   : > { %v3130_v36 = vld [vmem:[#allocation2 + $0x10] sm:$0xff]  ;;  %v4082_v42 = vadd.f32 %v4081_v49, %v2949_v22  ;;  %v4044_v12 = vpop.f32.mrb[6].mxu0  ;;  %v4097_v22 = vadd.f32 %v5563_v1, %v364_v13 }
 0x1e8   : > { %v3169_v58 = vadd.f32 %v5576_v28, %v3130_v36  ;;  %v3128_v59 = vld [vmem:[#allocation2] sm:$0xff]  ;;  %3099 = vst.msk [vmem:[#allocation2 + $0x30] sm:$0xff] %vm256_vm8, %v4080_v17  ;;  %v4084_v30 = vadd.f32 %v4083_v10, %v4044_v12  ;;  %v2952_v50 = vpop.f32.mrb[7].mxu0  ;;  %v365_v10 = vld [vmem:[#allocation2 + $0x68] sm:$0xff] }
 0x1e9   : > { %v3167_v48 = vadd.f32 %v5576_v28, %v3128_v59  ;;  %v3131_v56 = vld [vmem:[#allocation2 + $0x18] sm:$0xff]  ;;  %3097 = vst.msk [vmem:[#allocation2 + $0x20] sm:$0xff] %vm256_vm8, %v4082_v42  ;;  %v4086_v8 = vadd.f32 %v4085_v3, %v2952_v50  ;;  %v4099_v42 = vadd.f32 %v5565_v54, %v367_v6  ;;  %v4101_v59 = vadd.f32 %v5567_v63, %v365_v10 }
 0x1ea   : > { %v3201_v34 = vmax.f32 %v3169_v58, 0.0  ;;  %v3170_v16 = vadd.f32 %v5576_v28, %v3131_v56  ;;  %v3129_v31 = vld [vmem:[#allocation2 + $0x8] sm:$0xff]  ;;  %3100 = vst.msk [vmem:[#allocation2 + $0x38] sm:$0xff] %vm256_vm8, %v4084_v30 }
 0x1eb   : > { %v5581_v62 = vpop.f32.mrb[16].mxu1  ;;  %v3199_v0 = vmax.f32 %v3167_v48, 0.0  ;;  %v3168_v11 = vadd.f32 %v5576_v28, %v3129_v31  ;;  %3098 = vst.msk [vmem:[#allocation2 + $0x28] sm:$0xff] %vm256_vm8, %v4086_v8 }
 0x1ec   : > { %v5590_v14 = vpop.f32.mrb[17].mxu1  ;;  %3233 = vst.msk [vmem:[%s5586_s12 + $0x10] sm:$0xff] %vm256_vm8, %v3201_v34  ;;  %v3202_v25 = vmax.f32 %v3170_v16, 0.0  ;;  %v370_v34 = vld [vmem:[#allocation2 + $0x90] sm:$0xff] }
 0x1ed   : > { %v5594_v43 = vpop.f32.mrb[18].mxu1  ;;  %3231 = vst.msk [vmem:[%s5586_s12] sm:$0xff] %vm256_vm8, %v3199_v0  ;;  %v3200_v51 = vmax.f32 %v3168_v11, 0.0  ;;  %v4047_v55 = vpop.f32.mrb[8].mxu0  ;;  %v368_v11 = vld [vmem:[#allocation2 + $0x80] sm:$0xff] }
 0x1ee   : > { %v5598_v4 = vpop.f32.mrb[19].mxu1  ;;  %3234 = vst.msk [vmem:[%s5586_s12 + $0x18] sm:$0xff] %vm256_vm8, %v3202_v25  ;;  %v4088_v2 = vadd.f32 %v4087_v5, %v4047_v55  ;;  %v2965_v41 = vpop.f32.mrb[9].mxu0 }
 0x1ef   : > { %3232 = vst.msk [vmem:[%s5586_s12 + $0x8] sm:$0xff] %vm256_vm8, %v3200_v51  ;;  %v3134_v61 = vld [vmem:[#allocation2 + $0x30] sm:$0xff]  ;;  %v4090_v35 = vadd.f32 %v4089_v26, %v2965_v41  ;;  %v4048_v18 = vpop.f32.mrb[10].mxu0  ;;  %v371_v26 = vld [vmem:[#allocation2 + $0x98] sm:$0xff] }
 0x1f0   : > { %v3173_v24 = vadd.f32 %v5576_v28, %v3134_v61  ;;  %v3132_v44 = vld [vmem:[#allocation2 + $0x20] sm:$0xff]  ;;  %3103 = vst.msk [vmem:[#allocation2 + $0x50] sm:$0xff] %vm256_vm8, %v4088_v2  ;;  %v4092_v57 = vadd.f32 %v4091_v19, %v4048_v18  ;;  %v2968_v38 = vpop.f32.mrb[11].mxu0  ;;  %v4103_v19 = vadd.f32 %v5581_v62, %v370_v34  ;;  %v369_v2 = vld [vmem:[#allocation2 + $0x88] sm:$0xff] }
 0x1f1   : > { %v3171_v45 = vadd.f32 %v5576_v28, %v3132_v44  ;;  %v3135_v9 = vld [vmem:[#allocation2 + $0x38] sm:$0xff]  ;;  %3101 = vst.msk [vmem:[#allocation2 + $0x40] sm:$0xff] %vm256_vm8, %v4090_v35  ;;  %v4094_v47 = vadd.f32 %v4093_v27, %v2968_v38  ;;  %v4105_v27 = vadd.f32 %v5590_v14, %v368_v11  ;;  %v4107_v35 = vadd.f32 %v5594_v43, %v371_v26 }
 0x1f2   : > { %v3205_v29 = vmax.f32 %v3173_v24, 0.0  ;;  %v3174_v46 = vadd.f32 %v5576_v28, %v3135_v9  ;;  %v3133_v40 = vld [vmem:[#allocation2 + $0x28] sm:$0xff]  ;;  %3104 = vst.msk [vmem:[#allocation2 + $0x58] sm:$0xff] %vm256_vm8, %v4092_v57  ;;  %v4109_v57 = vadd.f32 %v5598_v4, %v369_v2 }
 0x1f3   : > { %v5614_v39 = vpop.f32.mrb[20].mxu1  ;;  %v3203_v7 = vmax.f32 %v3171_v45, 0.0  ;;  %v3172_v32 = vadd.f32 %v5576_v28, %v3133_v40  ;;  %3102 = vst.msk [vmem:[#allocation2 + $0x48] sm:$0xff] %vm256_vm8, %v4094_v47 }
 0x1f4   : > { %v5618_v52 = vpop.f32.mrb[21].mxu1  ;;  %3237 = vst.msk [vmem:[%s5586_s12 + $0x30] sm:$0xff] %vm256_vm8, %v3205_v29  ;;  %v3206_v17 = vmax.f32 %v3174_v46, 0.0  ;;  %v374_v29 = vld [vmem:[#allocation2 + $0xb0] sm:$0xff] }
 0x1f5   : > { %v5622_v20 = vpop.f32.mrb[22].mxu1  ;;  %3235 = vst.msk [vmem:[%s5586_s12 + $0x20] sm:$0xff] %vm256_vm8, %v3203_v7  ;;  %v3204_v3 = vmax.f32 %v3172_v32, 0.0  ;;  %v4051_v36 = vpop.f32.mrb[12].mxu0  ;;  %v372_v32 = vld [vmem:[#allocation2 + $0xa0] sm:$0xff] }
 0x1f6   : > { %v5626_v49 = vpop.f32.mrb[23].mxu1  ;;  %3238 = vst.msk [vmem:[%s5586_s12 + $0x38] sm:$0xff] %vm256_vm8, %v3206_v17  ;;  %v4096_v12 = vadd.f32 %v4095_v15, %v4051_v36  ;;  %v2981_v58 = vpop.f32.mrb[13].mxu0 }
 0x1f7   : > { %3236 = vst.msk [vmem:[%s5586_s12 + $0x28] sm:$0xff] %vm256_vm8, %v3204_v3  ;;  %v3138_v60 = vld [vmem:[#allocation2 + $0x50] sm:$0xff]  ;;  %v4098_v30 = vadd.f32 %v4097_v22, %v2981_v58  ;;  %v4052_v50 = vpop.f32.mrb[14].mxu0  ;;  %v375_v22 = vld [vmem:[#allocation2 + $0xb8] sm:$0xff] }
 0x1f8   : > { %v3177_v33 = vadd.f32 %v5576_v28, %v3138_v60  ;;  %v3136_v1 = vld [vmem:[#allocation2 + $0x40] sm:$0xff]  ;;  %3107 = vst.msk [vmem:[#allocation2 + $0x70] sm:$0xff] %vm256_vm8, %v4096_v12  ;;  %v4100_v48 = vadd.f32 %v4099_v42, %v4052_v50  ;;  %v2984_v56 = vpop.f32.mrb[15].mxu0  ;;  %v4111_v42 = vadd.f32 %v5614_v39, %v374_v29  ;;  %v373_v12 = vld [vmem:[#allocation2 + $0xa8] sm:$0xff] }
 0x1f9   : > { %v3175_v54 = vadd.f32 %v5576_v28, %v3136_v1  ;;  %v3139_v53 = vld [vmem:[#allocation2 + $0x58] sm:$0xff]  ;;  %3105 = vst.msk [vmem:[#allocation2 + $0x60] sm:$0xff] %vm256_vm8, %v4098_v30  ;;  %v4102_v63 = vadd.f32 %v4101_v59, %v2984_v56  ;;  %v4113_v59 = vadd.f32 %v5618_v52, %v372_v32  ;;  %v4115_v30 = vadd.f32 %v5622_v20, %v375_v22  ;;  %v381_v22 = vld [vmem:[#allocation2 + $0xe8] sm:$0xff] }
 0x1fa   : > { %v3209_v31 = vmax.f32 %v3177_v33, 0.0  ;;  %v3178_v37 = vadd.f32 %v5576_v28, %v3139_v53  ;;  %v3137_v0 = vld [vmem:[#allocation2 + $0x48] sm:$0xff]  ;;  %3108 = vst.msk [vmem:[#allocation2 + $0x78] sm:$0xff] %vm256_vm8, %v4100_v48  ;;  %v4117_v48 = vadd.f32 %v5626_v49, %v373_v12  ;;  %v383_v32 = vld [vmem:[#allocation2 + $0xf8] sm:$0xff] }
 0x1fb   : > { %v5642_v8 = vpop.f32.mrb[24].mxu1  ;;  %v3207_v23 = vmax.f32 %v3175_v54, 0.0  ;;  %v3176_v25 = vadd.f32 %v5576_v28, %v3137_v0  ;;  %3106 = vst.msk [vmem:[#allocation2 + $0x68] sm:$0xff] %vm256_vm8, %v4102_v63 }
 0x1fc   : > { %v5646_v16 = vpop.f32.mrb[25].mxu1  ;;  %3241 = vst.msk [vmem:[%s5586_s12 + $0x50] sm:$0xff] %vm256_vm8, %v3209_v31  ;;  %v3210_v55 = vmax.f32 %v3178_v37, 0.0  ;;  %v378_v31 = vld [vmem:[#allocation2 + $0xd0] sm:$0xff] }
 0x1fd   : > { %v5650_v5 = vpop.f32.mrb[26].mxu1  ;;  %3239 = vst.msk [vmem:[%s5586_s12 + $0x40] sm:$0xff] %vm256_vm8, %v3207_v23  ;;  %v3208_v41 = vmax.f32 %v3176_v25, 0.0  ;;  %v4055_v61 = vpop.f32.mrb[16].mxu0  ;;  %v376_v23 = vld [vmem:[#allocation2 + $0xc0] sm:$0xff]  ;;  %v4119_v2 = vadd.f32 %v5642_v8, %v378_v31 }
 0x1fe   : > { %v5654_v51 = vpop.f32.mrb[27].mxu1  ;;  %3242 = vst.msk [vmem:[%s5586_s12 + $0x58] sm:$0xff] %vm256_vm8, %v3210_v55  ;;  %v4104_v18 = vadd.f32 %v4103_v19, %v4055_v61  ;;  %v2997_v24 = vpop.f32.mrb[17].mxu0  ;;  %v379_v55 = vld [vmem:[#allocation2 + $0xd8] sm:$0xff]  ;;  %v4121_v61 = vadd.f32 %v5646_v16, %v376_v23 }
 0x1ff   : > { %3240 = vst.msk [vmem:[%s5586_s12 + $0x48] sm:$0xff] %vm256_vm8, %v3208_v41  ;;  %v3142_v44 = vld [vmem:[#allocation2 + $0x70] sm:$0xff]  ;;  %v4106_v38 = vadd.f32 %v4105_v27, %v2997_v24  ;;  %v4056_v62 = vpop.f32.mrb[18].mxu0  ;;  %v377_v41 = vld [vmem:[#allocation2 + $0xc8] sm:$0xff] }
 0x200   : > { %v3181_v21 = vadd.f32 %v5576_v28, %v3142_v44  ;;  %v3140_v45 = vld [vmem:[#allocation2 + $0x60] sm:$0xff]  ;;  %3111 = vst.msk [vmem:[#allocation2 + $0x90] sm:$0xff] %vm256_vm8, %v4104_v18  ;;  %v4108_v14 = vadd.f32 %v4107_v35, %v4056_v62  ;;  %v3000_v9 = vpop.f32.mrb[19].mxu0  ;;  %v4123_v18 = vadd.f32 %v5650_v5, %v379_v55 }
 0x201   : > { %v3179_v43 = vadd.f32 %v5576_v28, %v3140_v45  ;;  %v3143_v13 = vld [vmem:[#allocation2 + $0x78] sm:$0xff]  ;;  %3109 = vst.msk [vmem:[#allocation2 + $0x80] sm:$0xff] %vm256_vm8, %v4106_v38  ;;  %v4110_v46 = vadd.f32 %v4109_v57, %v3000_v9  ;;  %v4125_v38 = vadd.f32 %v5654_v51, %v377_v41 }
 0x202   : > { %v3213_v40 = vmax.f32 %v3181_v21, 0.0  ;;  %v3182_v6 = vadd.f32 %v5576_v28, %v3143_v13  ;;  %v3141_v7 = vld [vmem:[#allocation2 + $0x68] sm:$0xff]  ;;  %3112 = vst.msk [vmem:[#allocation2 + $0x98] sm:$0xff] %vm256_vm8, %v4108_v14 }
 0x203   : > { %v5670_v47 = vpop.f32.mrb[28].mxu1  ;;  %v3211_v10 = vmax.f32 %v3179_v43, 0.0  ;;  %v3180_v17 = vadd.f32 %v5576_v28, %v3141_v7  ;;  %3110 = vst.msk [vmem:[#allocation2 + $0x88] sm:$0xff] %vm256_vm8, %v4110_v46  ;;  %v382_v43 = vld [vmem:[#allocation2 + $0xf0] sm:$0xff] }
 0x204   : > { %v5674_v4 = vpop.f32.mrb[29].mxu1  ;;  %3245 = vst.msk [vmem:[%s5586_s12 + $0x70] sm:$0xff] %vm256_vm8, %v3213_v40  ;;  %v3214_v36 = vmax.f32 %v3182_v6, 0.0  ;;  %v380_v40 = vld [vmem:[#allocation2 + $0xe0] sm:$0xff] }
 0x205   : > { %v5678_v15 = vpop.f32.mrb[30].mxu1  ;;  %3243 = vst.msk [vmem:[%s5586_s12 + $0x60] sm:$0xff] %vm256_vm8, %v3211_v10  ;;  %v3212_v58 = vmax.f32 %v3180_v17, 0.0  ;;  %v4059_v60 = vpop.f32.mrb[20].mxu0  ;;  %v4127_v17 = vadd.f32 %v5670_v47, %v382_v43 }
 0x206   : > { %v5682_v3 = vpop.f32.mrb[31].mxu1  ;;  %3246 = vst.msk [vmem:[%s5586_s12 + $0x78] sm:$0xff] %vm256_vm8, %v3214_v36  ;;  %v4112_v50 = vadd.f32 %v4111_v42, %v4059_v60  ;;  %v3013_v33 = vpop.f32.mrb[21].mxu0  ;;  %v4129_v42 = vadd.f32 %v5674_v4, %v380_v40 }
 0x207   : > { %3244 = vst.msk [vmem:[%s5586_s12 + $0x68] sm:$0xff] %vm256_vm8, %v3212_v58  ;;  %v3146_v1 = vld [vmem:[#allocation2 + $0x90] sm:$0xff]  ;;  %v4114_v56 = vadd.f32 %v4113_v59, %v3013_v33  ;;  %v4060_v39 = vpop.f32.mrb[22].mxu0  ;;  %v4131_v58 = vadd.f32 %v5678_v15, %v383_v32 }
 0x208   : > { %v3185_v54 = vadd.f32 %v5576_v28, %v3146_v1  ;;  %v3144_v53 = vld [vmem:[#allocation2 + $0x80] sm:$0xff]  ;;  %3115 = vst.msk [vmem:[#allocation2 + $0xb0] sm:$0xff] %vm256_vm8, %v4112_v50  ;;  %v4116_v52 = vadd.f32 %v4115_v30, %v4060_v39  ;;  %v3016_v34 = vpop.f32.mrb[23].mxu0  ;;  %v4133_v50 = vadd.f32 %v5682_v3, %v381_v22 }
 0x209   : > { %v3183_v63 = vadd.f32 %v5576_v28, %v3144_v53  ;;  %v3147_v20 = vld [vmem:[#allocation2 + $0x98] sm:$0xff]  ;;  %3113 = vst.msk [vmem:[#allocation2 + $0xa0] sm:$0xff] %vm256_vm8, %v4114_v56  ;;  %v4118_v37 = vadd.f32 %v4117_v48, %v3016_v34 }
 0x20a   : > { %v3217_v0 = vmax.f32 %v3185_v54, 0.0  ;;  %v3186_v49 = vadd.f32 %v5576_v28, %v3147_v20  ;;  %v3145_v11 = vld [vmem:[#allocation2 + $0x88] sm:$0xff]  ;;  %3116 = vst.msk [vmem:[#allocation2 + $0xb8] sm:$0xff] %vm256_vm8, %v4116_v52 }
 0x20b   : > { %v3215_v25 = vmax.f32 %v3183_v63, 0.0  ;;  %v3184_v26 = vadd.f32 %v5576_v28, %v3145_v11  ;;  %3114 = vst.msk [vmem:[#allocation2 + $0xa8] sm:$0xff] %vm256_vm8, %v4118_v37 }
 0x20c   : > { %3249 = vst.msk [vmem:[%s5586_s12 + $0x90] sm:$0xff] %vm256_vm8, %v3217_v0  ;;  %v3218_v19 = vmax.f32 %v3186_v49, 0.0 }
 0x20d   : > { %3247 = vst.msk [vmem:[%s5586_s12 + $0x80] sm:$0xff] %vm256_vm8, %v3215_v25  ;;  %v3216_v27 = vmax.f32 %v3184_v26, 0.0  ;;  %v4063_v35 = vpop.f32.mrb[24].mxu0 }
 0x20e   : > { %3250 = vst.msk [vmem:[%s5586_s12 + $0x98] sm:$0xff] %vm256_vm8, %v3218_v19  ;;  %v4120_v24 = vadd.f32 %v4119_v2, %v4063_v35  ;;  %v3029_v44 = vpop.f32.mrb[25].mxu0 }
 0x20f   : > { %3248 = vst.msk [vmem:[%s5586_s12 + $0x88] sm:$0xff] %vm256_vm8, %v3216_v27  ;;  %v3150_v57 = vld [vmem:[#allocation2 + $0xb0] sm:$0xff]  ;;  %v4122_v62 = vadd.f32 %v4121_v61, %v3029_v44  ;;  %v4064_v8 = vpop.f32.mrb[26].mxu0 }
 0x210   : > { %v3189_v21 = vadd.f32 %v5576_v28, %v3150_v57  ;;  %v3148_v45 = vld [vmem:[#allocation2 + $0xa0] sm:$0xff]  ;;  %3119 = vst.msk [vmem:[#allocation2 + $0xd0] sm:$0xff] %vm256_vm8, %v4120_v24  ;;  %v4124_v16 = vadd.f32 %v4123_v18, %v4064_v8  ;;  %v3032_v14 = vpop.f32.mrb[27].mxu0 }
 0x211   : > { %v3187_v9 = vadd.f32 %v5576_v28, %v3148_v45  ;;  %v3151_v5 = vld [vmem:[#allocation2 + $0xb8] sm:$0xff]  ;;  %3117 = vst.msk [vmem:[#allocation2 + $0xc0] sm:$0xff] %vm256_vm8, %v4122_v62  ;;  %v4126_v13 = vadd.f32 %v4125_v38, %v3032_v14 }
 0x212   : > { %v3221_v29 = vmax.f32 %v3189_v21, 0.0  ;;  %v3190_v51 = vadd.f32 %v5576_v28, %v3151_v5  ;;  %v3149_v46 = vld [vmem:[#allocation2 + $0xa8] sm:$0xff]  ;;  %3120 = vst.msk [vmem:[#allocation2 + $0xd8] sm:$0xff] %vm256_vm8, %v4124_v16 }
 0x213   : > { %v3219_v6 = vmax.f32 %v3187_v9, 0.0  ;;  %v3188_v7 = vadd.f32 %v5576_v28, %v3149_v46  ;;  %3118 = vst.msk [vmem:[#allocation2 + $0xc8] sm:$0xff] %vm256_vm8, %v4126_v13 }
 0x214   : > { %3253 = vst.msk [vmem:[%s5586_s12 + $0xb0] sm:$0xff] %vm256_vm8, %v3221_v29  ;;  %v3222_v10 = vmax.f32 %v3190_v51, 0.0 }
 0x215   : > { %3251 = vst.msk [vmem:[%s5586_s12 + $0xa0] sm:$0xff] %vm256_vm8, %v3219_v6  ;;  %v3220_v36 = vmax.f32 %v3188_v7, 0.0  ;;  %v4067_v12 = vpop.f32.mrb[28].mxu0 }
 0x216   : > { %3254 = vst.msk [vmem:[%s5586_s12 + $0xb8] sm:$0xff] %vm256_vm8, %v3222_v10  ;;  %v4128_v59 = vadd.f32 %v4127_v17, %v4067_v12  ;;  %v3045_v60 = vpop.f32.mrb[29].mxu0 }
 0x217   : > { %3252 = vst.msk [vmem:[%s5586_s12 + $0xa8] sm:$0xff] %vm256_vm8, %v3220_v36  ;;  %v3154_v30 = vld [vmem:[#allocation2 + $0xd0] sm:$0xff]  ;;  %v4130_v33 = vadd.f32 %v4129_v42, %v3045_v60  ;;  %v4068_v47 = vpop.f32.mrb[30].mxu0 }
 0x218   : > { %v3193_v1 = vadd.f32 %v5576_v28, %v3154_v30  ;;  %v3152_v48 = vld [vmem:[#allocation2 + $0xc0] sm:$0xff]  ;;  %3123 = vst.msk [vmem:[#allocation2 + $0xf0] sm:$0xff] %vm256_vm8, %v4128_v59  ;;  %v4132_v4 = vadd.f32 %v4131_v58, %v4068_v47  ;;  %v3048_v56 = vpop.f32.mrb[31].mxu0 }
 0x219   : > { %v3191_v15 = vadd.f32 %v5576_v28, %v3152_v48  ;;  %v3155_v39 = vld [vmem:[#allocation2 + $0xd8] sm:$0xff]  ;;  %3121 = vst.msk [vmem:[#allocation2 + $0xe0] sm:$0xff] %vm256_vm8, %v4130_v33  ;;  %v4134_v54 = vadd.f32 %v4133_v50, %v3048_v56 }
 0x21a   : > { %v3225_v3 = vmax.f32 %v3193_v1, 0.0  ;;  %v3194_v53 = vadd.f32 %v5576_v28, %v3155_v39  ;;  %v3153_v52 = vld [vmem:[#allocation2 + $0xc8] sm:$0xff]  ;;  %3124 = vst.msk [vmem:[#allocation2 + $0xf8] sm:$0xff] %vm256_vm8, %v4132_v4 }
 0x21b   : > { %v3223_v34 = vmax.f32 %v3191_v15, 0.0  ;;  %v3192_v63 = vadd.f32 %v5576_v28, %v3153_v52  ;;  %3122 = vst.msk [vmem:[#allocation2 + $0xe8] sm:$0xff] %vm256_vm8, %v4134_v54 }
 0x21c   : > { %3257 = vst.msk [vmem:[%s5586_s12 + $0xd0] sm:$0xff] %vm256_vm8, %v3225_v3  ;;  %v3226_v20 = vmax.f32 %v3194_v53, 0.0 }
 0x21d   : > { %3255 = vst.msk [vmem:[%s5586_s12 + $0xc0] sm:$0xff] %vm256_vm8, %v3223_v34  ;;  %v3224_v31 = vmax.f32 %v3192_v63, 0.0 }
 0x21e   : > { %3258 = vst.msk [vmem:[%s5586_s12 + $0xd8] sm:$0xff] %vm256_vm8, %v3226_v20 }
 0x21f   : > { %3256 = vst.msk [vmem:[%s5586_s12 + $0xc8] sm:$0xff] %vm256_vm8, %v3224_v31  ;;  %v3158_v37 = vld [vmem:[#allocation2 + $0xf0] sm:$0xff] }
 0x220   : > { %v3197_v0 = vadd.f32 %v5576_v28, %v3158_v37  ;;  %v3156_v49 = vld [vmem:[#allocation2 + $0xe0] sm:$0xff] }
 0x221   : > { %v3195_v11 = vadd.f32 %v5576_v28, %v3156_v49  ;;  %v3159_v23 = vld [vmem:[#allocation2 + $0xf8] sm:$0xff] }
 0x222   : > { %v3229_v25 = vmax.f32 %v3197_v0, 0.0  ;;  %v3198_v26 = vadd.f32 %v5576_v28, %v3159_v23  ;;  %v3157_v55 = vld [vmem:[#allocation2 + $0xe8] sm:$0xff] }
 0x223   : > { %v3227_v19 = vmax.f32 %v3195_v11, 0.0  ;;  %v3196_v2 = vadd.f32 %v5576_v28, %v3157_v55 }
 0x224   : > { %3261 = vst.msk [vmem:[%s5586_s12 + $0xf0] sm:$0xff] %vm256_vm8, %v3229_v25  ;;  %v3230_v41 = vmax.f32 %v3198_v26, 0.0 }
 0x225   : > { %3259 = vst.msk [vmem:[%s5586_s12 + $0xe0] sm:$0xff] %vm256_vm8, %v3227_v19  ;;  %v3228_v27 = vmax.f32 %v3196_v2, 0.0 }
 0x226   : > { %3262 = vst.msk [vmem:[%s5586_s12 + $0xf8] sm:$0xff] %vm256_vm8, %v3230_v41 }
 0x227   : > { %3260 = vst.msk [vmem:[%s5586_s12 + $0xe8] sm:$0xff] %vm256_vm8, %v3228_v27 }
 0x228 PF: > { %s13_s14 = sadd.s32 1, %s4436_s14   ;;  %s5904_s12 = smov %s4432_s13 }
 0x229   : > { %p10_p5 = scmp.ge.s32.totalorder %s13_s14, 4   ;;  %s5905_s13 = smov %s5907_s15 }
 0x22b   :  { %12 = sbr.rel (!%p10_p5) target bundleno = 2 (0x2), region = 76 }

// kernel: double_conv_forward.3
= control target key start
LH: loop header
LB: loop body
LE: loop exit
PB: predicated region body
PF: predicated region fallthrough
CT: control target
= control target key end

     0   :  { %8 = vsyncpa [#allocation4], 0  ;;  %s6136_s0 = inlined_call_operand.vmem [shape: bf16[2,18,18,32], index: 0, kind: input, shape index: {}]   ;;  %s6137_s1 = inlined_call_operand.vmem [shape: bf16[3,3,32,32], index: 1, kind: input, shape index: {}]   ;;  %s6138_s2 = inlined_call_operand.vmem [shape: f32[1,32], index: 2, kind: input, shape index: {}]   ;;  %s6139_s3 = inlined_call_operand.hbm [shape: f32[2,16,16,32], index: 3, kind: output, shape index: {}]  }
   0x1   :  { %10 = vsyncpa [#allocation4 + $0x1], 0  ;;  %s4721_s12 = smov 0   ;;  %s4723_s13 = smov 0  }
   0x2   :  { %s4725_s14 = smov 0   ;;  %s4727_s15 = smov 0  }
   0x3   :  { %s4729_s16 = smov 0   ;;  %s4731_s17 = smov 0  }
   0x4 LB: > { %s3492_s18 = sadd.s32 4294967295, %s4695_s17   ;;  %s3493_s19 = sadd.s32 4294967294, %s4695_s17   ;;  %s4695_s17 = sphi %s4731_s17, %s16_s17   ;;  %s4691_s16 = sphi %s4729_s16, %s6269_s16   ;;  %s4687_s15 = sphi %s4727_s15, %s6268_s15   ;;  %s4683_s14 = sphi %s4725_s14, %s6267_s14   ;;  %s4679_s13 = sphi %s4723_s13, %s6266_s13   ;;  %s4675_s12 = sphi %s4721_s12, %s6265_s12  }
   0x5   : > { %s35_s20 = sadd.s32 1, %s4691_s16  ;;  %s126_s21 = sadd.s32 1, %s4683_s14 }
   0x6   : > { %p37_p0 = scmp.ge.s32.totalorder %s35_s20, 2  ;;  %p136_p1 = scmp.ne.s32.totalorder %s4683_s14, %s4679_s13 }
   0x7   : > { %p137_p2 = scmp.eq.s32.totalorder %s3492_s18, 1  ;;  %p142_p3 = scmp.ne.s32.totalorder %s4679_s13, %s4675_s12 }
   0x8   : > { %s6271_s20 = smov (%p37_p0, %s35_s20), 0  ;;  %p143_p5 = scmp.eq.s32.totalorder %s3493_s19, 1 }
   0x9   : > { %p4761_p4 = por %p137_p2, %p136_p1  ;;  %s121_s23 = ssub.s32 %s4691_s16, %s6271_s20 }
   0xa   : > { %p3498_p6 = scmp.ge.s32.totalorder %s4695_s17, 1  ;;  %p124_p7 = scmp.eq.s32.totalorder %s121_s23, 0 }
   0xb   : > { %p4768_p8 = por %p143_p5, %p142_p3  ;;  %p190_p9 = scmp.lt.s32.totalorder %s4695_s17, 3 }
   0xc   : > { %s4774_s25 = scalar_select %p124_p7, %s4683_s14, %s126_s21  }
   0xd   : > { %p191_p10 = pnand %p3498_p6, %p190_p9 }
   0xf   : > { %194 = sbr.rel (%p191_p10) target bundleno = 575 (0x23f), region = 32 }
  0x16   : > { %v4579_v0 = vld [vmem:[%s6137_s1] sm:$0xff]   ;;  %p228_p11 = scmp.lt.s32.totalorder %s4687_s15, 1  ;;  %v4580_v1 = vld [vmem:[%s6137_s1 + $0x8] sm:$0xff]   ;;  %v4585_v4 = vld [vmem:[%s6137_s1 + $0x10] sm:$0xff]   ;;  %vm253_vm0 = vcmask 261120   ;;  %vm1446_vm4 = vcmask 1042432  }
  0x17   : > { %3904 = vmatprep.subr.bf16.mxu1 %v4579_v0  ;;  %v4583_v2 = vld [vmem:[%s6137_s1 + $0x40] sm:$0xff]   ;;  %v4584_v3 = vld [vmem:[%s6137_s1 + $0x48] sm:$0xff]   ;;  %v4801_v5 = vld [vmem:[%s6137_s1 + $0x50] sm:$0xff]   ;;  %vm742_vm1 = vsmask.f32 3328  ;;  %vm1447_vm5 = vcmask 1046532  }
  0x18   : > { %s229_s30 = scalar_select %p228_p11, %s4687_s15, 1  ;;  %3905 = vmatpush3.bf16.msra.mxu1 %v4579_v0  ;;  %4048 = vmatprep.subr.bf16.mxu0 %v4583_v2  ;;  %v4596_v14 = vld [vmem:[%s6137_s1 + $0x18] sm:$0xff]   ;;  %vm743_vm2 = vsmask.f32 7440  ;;  %v4860_v26 = vld [vmem:[%s6137_s1 + $0x20] sm:$0xff]   ;;  %vm5109_vm6 = vmor %vm1446_vm4, %vm1447_vm5 }
  0x19   : > { %3906 = vmatprep.subr.bf16.mxu1 %v4580_v1  ;;  %4049 = vmatpush3.bf16.msra.mxu0 %v4583_v2  ;;  %vm4901_vm3 = vmor %vm742_vm1, %vm743_vm2  ;;  %s3741_s26 = sshll.u32 %s4687_s15, 12  ;;  %s4698_s5 = smov [#allocation3]  }
  0x1a   : > { %s4520_s8 = smul.u32 216, %s229_s30  ;;  %4050 = vmatprep.subr.bf16.mxu0 %v4584_v3  ;;  %s6078_s30 = scalar_lea.hbm %s6139_s3, %s3741_s26 }
  0x1b   : > { %s4621_s6 = sshll.u32 %s4698_s5, 4  ;;  %s4622_s6 = int_to_ptr.vmem [resolvable:$false] %s4621_s6 }
  0x1c   : > { %s4796_s19 = scalar_lea.vmem %s6136_s0, %s4520_s8  ;;  %3907 = vmatpush3.bf16.msra.mxu1 %v4580_v1  ;;  %s4623_s7 = scalar_lea.vmem %s4622_s6, 8192 }
  0x1d   : > { %v4804_v6 = vld [vmem:[%s4796_s19] sm:$0xf]  ;;  %v4807_v7 = vld [vmem:[%s4796_s19 + $0x4] sm:$0xf]  ;;  %v4810_v8 = vld [vmem:[%s4796_s19 + $0xc] sm:$0xf]  ;;  %3940 = vmatprep.subr.bf16.mxu1 %v4585_v4  ;;  %4051 = vmatpush3.bf16.msra.mxu0 %v4584_v3 }
  0x1e   : > { %v3501_v9 = vcombine.low %v4804_v6, %v4807_v7  ;;  %v4815_v10 = vld [vmem:[%s4796_s19 + $0x10] sm:$0xf]  ;;  %v746_v11 = vshrl.u32 %v4804_v6, 16  ;;  %v4823_v13 = vld [vmem:[%s4796_s19 + $0x18] sm:$0xf]  ;;  %v749_v15 = vshll.u32 %v4804_v6, 16  ;;  %4084 = vmatprep.subr.bf16.mxu0 %v4801_v5 }
  0x1f   : > { %v4820_v12 = vcombine.low %v4810_v8, %v4815_v10  ;;  %v755_v16 = vshll.u32 %v4807_v7, 16  ;;  %v4832_v17 = vld [vmem:[%s4796_s19 + $0x1c] sm:$0xf]  ;;  %v794_v19 = vshrl.u32 %v4823_v13, 16  ;;  %v4843_v20 = vld [vmem:[%s4796_s19 + $0x24] sm:$0xf] }
  0x20   : > { %3908 = vmatprep.mubr.msk.bf16.mxu1 %vm253_vm0, %v3501_v9  ;;  %v4839_v18 = vcombine.low %v4823_v13, %v4832_v17  ;;  %v4846_v21 = vld [vmem:[%s4796_s19 + $0x28] sm:$0xf]  ;;  %v4848_v22 = vrot.slane %v746_v11, 4  ;;  %v797_v24 = vshll.u32 %v4823_v13, 16  ;;  %v4855_v25 = vld [vmem:[%s4796_s19 + $0x14] sm:$0x1] }
  0x21   : > { %6186 = vst [vmem:[#allocation6_spill] sm:$0xff] %v4820_v12  ;;  %3909 = vmatmul.mubr.msk.bf16.vlgmr.msra.gmra.mrb[0].mxu1 %vm253_vm0, %v4820_v12  ;;  %v4862_v27 = vrot.slane %v749_v15, 5  ;;  %v4864_v28 = vrot.slane %v755_v16, 5  ;;  %v807_v29 = vshrl.u32 %v4832_v17, 16  ;;  %v770_v30 = vshrl.u32 %v4810_v8, 16 }
  0x22   : > { %6187 = vst [vmem:[#allocation7_spill] sm:$0xff] %v4839_v18  ;;  %3941 = vmatpush3.bf16.msra.mxu1 %v4585_v4  ;;  %3912 = vmatprep.mubr.msk.bf16.mxu1 %vm253_vm0, %v4839_v18  ;;  %v4870_v31 = vcombine.low %v4843_v20, %v4846_v21  ;;  %v773_v32 = vshll.u32 %v4810_v8, 16  ;;  %v779_v33 = vshll.u32 %v4815_v10, 16  ;;  %v783_v34 = vshrl.u32 %v4815_v10, 16  ;;  %v4876_v35 = vld [vmem:[%s4796_s19 + $0x20] sm:$0x1] }
  0x23   : > { %3942 = vmatprep.subr.bf16.mxu1 %v4596_v14  ;;  %v818_v36 = vshrl.u32 %v4843_v20, 16  ;;  %v772_v37 = vrot.slane %v770_v30, 4  ;;  %v789_v38 = vshll.u32 %v4855_v25, 16  ;;  %v796_v39 = vrot.slane %v794_v19, 4  ;;  %v4881_v44 = vld [vmem:[%s4796_s19 + $0x30] sm:$0xf] }
  0x24   : > { %6188 = vst [vmem:[#allocation8_spill] sm:$0xff] %v4870_v31  ;;  %v775_v40 = vrot.slane %v773_v32, 5  ;;  %v781_v41 = vrot.slane %v779_v33, 5  ;;  %v785_v42 = vrot.slane %v783_v34, 4  ;;  %v799_v43 = vrot.slane %v797_v24, 5 }
  0x25   : > { %v821_v45 = vshll.u32 %v4843_v20, 16  ;;  %v803_v46 = vshll.u32 %v4832_v17, 16  ;;  %v809_v47 = vrot.slane %v807_v29, 4  ;;  %v813_v48 = vshll.u32 %v4876_v35, 16  ;;  %v4888_v49 = vld [vmem:[%s4796_s19 + $0x34] sm:$0xf] }
  0x26   : > { %3943 = vmatpush3.bf16.msra.mxu1 %v4596_v14  ;;  %v776_v50 = vor.u32 %v775_v40, %v772_v37  ;;  %v786_v51 = vor.u32 %v785_v42, %v781_v41  ;;  %v791_v52 = vrot.slane %v789_v38, 5  ;;  %v800_v53 = vor.u32 %v799_v43, %v796_v39  ;;  %v4893_v54 = vld [vmem:[%s4796_s19 + $0x3c] sm:$0xf]  ;;  %v4896_v55 = vld [vmem:[%s4796_s19 + $0x40] sm:$0xf] }
  0x27   : > { %3976 = vmatprep.subr.bf16.mxu1 %v4860_v26  ;;  %v831_v56 = vshrl.u32 %v4846_v21, 16  ;;  %v805_v58 = vrot.slane %v803_v46, 5  ;;  %v815_v59 = vrot.slane %v813_v48, 5  ;;  %v4907_v60 = vcombine.low %v4881_v44, %v4888_v49  ;;  %v4919_v9 = vld [vmem:[%s4796_s19 + $0x2c] sm:$0x1]  ;;  %v4593_v43 = vld [vmem:[%s6137_s1 + $0x58] sm:$0xff]  }
  0x28   : > { %v777_v61 = vrot.slane %v776_v50, 4  ;;  %v787_v62 = vrot.slane %v786_v51, 4  ;;  %v801_v63 = vrot.slane %v800_v53, 4  ;;  %v842_v0 = vshrl.u32 %v4881_v44, 16  ;;  %v4934_v38 = vld [vmem:[%s4796_s19 + $0x38] sm:$0x1] }
  0x29   : > { %3913 = vmatmul.mubr.msk.bf16.gmra.mrb[4].mxu1 %vm253_vm0, %v4870_v31  ;;  %6191 = vst [vmem:[#allocation9_spill] sm:$0xff] %v4907_v60  ;;  %v810_v1 = vor.u32 %v809_v47, %v805_v58  ;;  %v845_v2 = vshll.u32 %v4881_v44, 16  ;;  %v855_v3 = vshrl.u32 %v4888_v49, 16  ;;  %v4916_v4 = vcombine.low %v4893_v54, %v4896_v55  ;;  %v4942_v42 = vld [vmem:[%s4796_s19 + $0x48] sm:$0xf] }
  0x2a   : > { %3916 = vmatprep.mubr.msk.bf16.mxu1 %vm253_vm0, %v4907_v60  ;;  %v782_v11 = vsel %vm4901_vm3, %v777_v61, %v781_v41  ;;  %v792_v14 = vsel %vm4901_vm3, %v787_v62, %v791_v52  ;;  %v806_v15 = vsel %vm4901_vm3, %v801_v63, %v805_v58  ;;  %v866_v16 = vshrl.u32 %v4893_v54, 16  ;;  %v4953_v50 = vld [vmem:[%s4796_s19 + $0x4c] sm:$0xf]  ;;  %v4956_v51 = vld [vmem:[%s4796_s19 + $0x54] sm:$0xf] }
  0x2b   : > { %6192 = vst [vmem:[#allocation10_spill] sm:$0xff] %v4916_v4  ;;  %v4928_v19 = vcombine.low %v782_v11, %v792_v14  ;;  %v811_v24 = vrot.slane %v810_v1, 4  ;;  %v869_v29 = vshll.u32 %v4893_v54, 16  ;;  %v820_v30 = vrot.slane %v818_v36, 4 }
  0x2c   : > { %v823_v32 = vrot.slane %v821_v45, 5  ;;  %v827_v33 = vshll.u32 %v4846_v21, 16  ;;  %v833_v34 = vrot.slane %v831_v56, 4  ;;  %v837_v37 = vshll.u32 %v4919_v9, 16 }
  0x2d   : > { %4052 = vmatprep.mubr.msk.bf16.mxu0 %vm253_vm0, %v4928_v19  ;;  %v816_v39 = vsel %vm4901_vm3, %v811_v24, %v815_v59  ;;  %v844_v40 = vrot.slane %v842_v0, 4  ;;  %v847_v41 = vrot.slane %v845_v2, 5  ;;  %v851_v36 = vshll.u32 %v4888_v49, 16  ;;  %v4960_v59 = vld [vmem:[%s4796_s19 + $0x58] sm:$0xf] }
  0x2e   : > { %v4947_v45 = vcombine.low %v806_v15, %v816_v39  ;;  %v879_v46 = vshrl.u32 %v4896_v55, 16  ;;  %v824_v47 = vor.u32 %v823_v32, %v820_v30  ;;  %v829_v48 = vrot.slane %v827_v33, 5  ;;  %v4989_v39 = vld [vmem:[%s4796_s19 + $0x44] sm:$0x1] }
  0x2f   : > { %v848_v52 = vor.u32 %v847_v41, %v844_v40  ;;  %v853_v53 = vrot.slane %v851_v36, 5  ;;  %v857_v56 = vrot.slane %v855_v3, 4  ;;  %v861_v58 = vshll.u32 %v4934_v38, 16 }
  0x30   : > { %6193 = vst [vmem:[#allocation11_spill] sm:$0xff] %v4947_v45  ;;  %4053 = vmatmul.mubr.msk.bf16.vlgmr.msra.gmra.mrb[0].mxu0 %vm253_vm0, %v4947_v45  ;;  %v825_v61 = vrot.slane %v824_v47, 4  ;;  %v834_v62 = vor.u32 %v833_v34, %v829_v48  ;;  %v839_v63 = vrot.slane %v837_v37, 5  ;;  %v4966_v0 = vcombine.low %v4942_v42, %v4953_v50 }
  0x31   : > { %3917 = vmatmul.mubr.msk.bf16.gmra.mrb[8].mxu1 %vm253_vm0, %v4916_v4  ;;  %4085 = vmatpush3.bf16.msra.mxu0 %v4801_v5  ;;  %v849_v1 = vrot.slane %v848_v52, 4  ;;  %v858_v2 = vor.u32 %v857_v56, %v853_v53  ;;  %v863_v3 = vrot.slane %v861_v58, 5  ;;  %v890_v11 = vshrl.u32 %v4942_v42, 16  ;;  %v4982_v5 = vld [vmem:[%s6137_s1 + $0x60] sm:$0xff]  }
  0x32   : > { %6194 = vst [vmem:[#allocation12_spill] sm:$0xff] %v4966_v0  ;;  %v830_v14 = vsel %vm4901_vm3, %v825_v61, %v829_v48  ;;  %v835_v15 = vrot.slane %v834_v62, 4  ;;  %3920 = vmatprep.mubr.msk.bf16.mxu1 %vm253_vm0, %v4966_v0  ;;  %v893_v24 = vshll.u32 %v4942_v42, 16  ;;  %v4977_v30 = vcombine.low %v4956_v51, %v4960_v59  ;;  %4086 = vmatprep.subr.bf16.mxu0 %v4593_v43  ;;  %v4995_v48 = vld [vmem:[%s4796_s19 + $0x50] sm:$0x1] }
  0x33   : > { %v854_v32 = vsel %vm4901_vm3, %v849_v1, %v853_v53  ;;  %v859_v33 = vrot.slane %v858_v2, 4  ;;  %v903_v34 = vshrl.u32 %v4953_v50, 16  ;;  %v914_v37 = vshrl.u32 %v4956_v51, 16  ;;  %v5011_v1 = vld [vmem:[%s4796_s19 + $0x64] sm:$0xf] }
  0x34   : > { %6195 = vst [vmem:[#allocation13_spill] sm:$0xff] %v4977_v30  ;;  %v840_v40 = vsel %vm4901_vm3, %v835_v15, %v839_v63  ;;  %v917_v41 = vshll.u32 %v4956_v51, 16  ;;  %v868_v36 = vrot.slane %v866_v16, 4  ;;  %v871_v47 = vrot.slane %v869_v29, 5  ;;  %v5008_v63 = vld [vmem:[%s4796_s19 + $0x60] sm:$0xf] }
  0x35   : > { %v4997_v52 = vcombine.low %v830_v14, %v840_v40  ;;  %v864_v53 = vsel %vm4901_vm3, %v859_v33, %v863_v3  ;;  %v875_v56 = vshll.u32 %v4896_v55, 16  ;;  %v881_v58 = vrot.slane %v879_v46, 4  ;;  %4087 = vmatpush3.bf16.msra.mxu0 %v4593_v43  ;;  %v5018_v14 = vld [vmem:[%s4796_s19 + $0x6c] sm:$0xf]  ;;  %v5029_v40 = vld [vmem:[%s4796_s19 + $0x70] sm:$0xf] }
  0x36   : > { %v5002_v61 = vcombine.low %v854_v32, %v864_v53  ;;  %v872_v62 = vor.u32 %v871_v47, %v868_v36  ;;  %v885_v16 = vshll.u32 %v4989_v39, 16  ;;  %v892_v29 = vrot.slane %v890_v11, 4  ;;  %4120 = vmatprep.subr.bf16.mxu0 %v4982_v5 }
  0x37   : > { %6196 = vst [vmem:[#allocation14_spill] sm:$0xff] %v4997_v52  ;;  %4056 = vmatprep.mubr.msk.bf16.mxu0 %vm253_vm0, %v4997_v52  ;;  %v877_v43 = vrot.slane %v875_v56, 5  ;;  %v895_v46 = vrot.slane %v893_v24, 5  ;;  %v899_v2 = vshll.u32 %v4953_v50, 16  ;;  %v905_v3 = vrot.slane %v903_v34, 4 }
  0x38   : > { %6197 = vst [vmem:[#allocation15_spill] sm:$0xff] %v5002_v61  ;;  %4057 = vmatmul.mubr.msk.bf16.gmra.mrb[4].mxu0 %vm253_vm0, %v5002_v61  ;;  %v927_v11 = vshrl.u32 %v4960_v59, 16  ;;  %v873_v15 = vrot.slane %v872_v62, 4  ;;  %v909_v32 = vshll.u32 %v4995_v48, 16  ;;  %v5026_v33 = vcombine.low %v5008_v63, %v5011_v1 }
  0x39   : > { %3921 = vmatmul.mubr.msk.bf16.gmra.mrb[12].mxu1 %vm253_vm0, %v4977_v30  ;;  %v882_v24 = vor.u32 %v881_v58, %v877_v43  ;;  %v887_v36 = vrot.slane %v885_v16, 5  ;;  %v896_v34 = vor.u32 %v895_v46, %v892_v29  ;;  %v901_v47 = vrot.slane %v899_v2, 5  ;;  %v5042_v46 = vld [vmem:[%s4796_s19 + $0x5c] sm:$0x1] }
  0x3a   : > { %6198 = vst [vmem:[#allocation16_spill] sm:$0xff] %v5026_v33  ;;  %v878_v53 = vsel %vm4901_vm3, %v873_v15, %v877_v43  ;;  %v911_v56 = vrot.slane %v909_v32, 5  ;;  %3924 = vmatprep.mubr.msk.bf16.mxu1 %vm253_vm0, %v5026_v33  ;;  %v938_v62 = vshrl.u32 %v5008_v63, 16  ;;  %v941_v23 = vshll.u32 %v5008_v63, 16  ;;  %v5046_v15 = vld [vmem:[%s4796_s19 + $0x68] sm:$0x1] }
  0x3b   : > { %v883_v12 = vrot.slane %v882_v24, 4  ;;  %v897_v58 = vrot.slane %v896_v34, 4  ;;  %v906_v16 = vor.u32 %v905_v3, %v901_v47  ;;  %v5039_v29 = vcombine.low %v5018_v14, %v5029_v40  ;;  %v5053_v33 = vld [vmem:[%s4796_s19 + $0x78] sm:$0xf] }
  0x3c   : > { %v951_v43 = vshrl.u32 %v5011_v1, 16  ;;  %v916_v2 = vrot.slane %v914_v37, 4  ;;  %v919_v3 = vrot.slane %v917_v41, 5  ;;  %v923_v37 = vshll.u32 %v4960_v59, 16 }
  0x3d   : > { %6199 = vst [vmem:[#allocation17_spill] sm:$0xff] %v5039_v29  ;;  %v888_v32 = vsel %vm4901_vm3, %v883_v12, %v887_v36  ;;  %v902_v24 = vsel %vm4901_vm3, %v897_v58, %v901_v47  ;;  %v907_v34 = vrot.slane %v906_v16, 4  ;;  %v929_v0 = vrot.slane %v927_v11, 4  ;;  %v5064_v58 = vld [vmem:[%s4796_s19 + $0x7c] sm:$0xf] }
  0x3e   : > { %v5055_v30 = vcombine.low %v878_v53, %v888_v32  ;;  %v933_v4 = vshll.u32 %v5042_v46, 16  ;;  %v920_v36 = vor.u32 %v919_v3, %v916_v2  ;;  %v940_v47 = vrot.slane %v938_v62, 4 }
  0x3f   : > { %v912_v12 = vsel %vm4901_vm3, %v907_v34, %v911_v56  ;;  %v943_v41 = vrot.slane %v941_v23, 5  ;;  %v1465_v53 = vrot.slane %v4832_v17, 5  ;;  %v925_v32 = vrot.slane %v923_v37, 5  ;;  %v5077_v23 = vld [vmem:[%s4796_s19 + $0x88] sm:$0xf] }
  0x40   : > { %6200 = vst [vmem:[#allocation18_spill] sm:$0xff] %v5055_v30  ;;  %4060 = vmatprep.mubr.msk.bf16.mxu0 %vm253_vm0, %v5055_v30  ;;  %v5069_v16 = vcombine.low %v902_v24, %v912_v12  ;;  %v947_v11 = vshll.u32 %v5011_v1, 16  ;;  %v921_v60 = vrot.slane %v920_v36, 4  ;;  %v953_v56 = vrot.slane %v951_v43, 4 }
  0x41   : > { %3925 = vmatmul.mubr.msk.bf16.gmra.mrb[16].mxu1 %vm253_vm0, %v5039_v29  ;;  %v5073_v29 = vld [vmem:[%s4796_s19 + $0x84] sm:$0xf]  ;;  %v944_v31 = vor.u32 %v943_v41, %v940_v47  ;;  %v957_v62 = vshll.u32 %v5046_v15, 16  ;;  %v930_v17 = vor.u32 %v929_v0, %v925_v32  ;;  %v935_v2 = vrot.slane %v933_v4, 5 }
  0x42   : > { %6201 = vst [vmem:[#allocation19_spill] sm:$0xff] %v5069_v16  ;;  %4061 = vmatmul.mubr.msk.bf16.gmra.mrb[8].mxu0 %vm253_vm0, %v5069_v16  ;;  %v949_v24 = vrot.slane %v947_v11, 5  ;;  %v5083_v34 = vcombine.low %v5053_v33, %v5064_v58  ;;  %v6203_v3 = vshrl.u32 %v4807_v7, 16  ;;  %v3571_v37 = vrot.slane %v4823_v13, 9  ;;  %v5099_v11 = vld [vmem:[%s4796_s19 + $0x90] sm:$0xf] }
  0x43   : > { %v926_v12 = vsel %vm4901_vm3, %v921_v60, %v925_v32  ;;  %v945_v36 = vrot.slane %v944_v31, 4  ;;  %v931_v47 = vrot.slane %v930_v17, 4  ;;  %v959_v4 = vrot.slane %v957_v62, 5  ;;  %v5114_v32 = vld [vmem:[%s4796_s19 + $0x9c] sm:$0xf] }
  0x44   : > { %6202 = vst [vmem:[#allocation20_spill] sm:$0xff] %v5083_v34  ;;  %v5087_v43 = vrot.slane %v6203_v3, 4  ;;  %v954_v0 = vor.u32 %v953_v56, %v949_v24  ;;  %3928 = vmatprep.mubr.msk.bf16.mxu1 %vm253_vm0, %v5083_v34  ;;  %v5096_v41 = vcombine.low %v5073_v29, %v5077_v23  ;;  %v5102_v3 = vld [vmem:[%s4796_s19 + $0x94] sm:$0xf]  ;;  %v1467_v18 = vrot.slane %v1465_v53, 4 }
  0x45   : > { %v1461_v13 = vrot.slane %v4855_v25, 5  ;;  %v950_v31 = vsel %vm4901_vm3, %v945_v36, %v949_v24  ;;  %v5117_v56 = vld [vmem:[%s4796_s19 + $0xa0] sm:$0xf]  ;;  %v936_v62 = vsel %vm4901_vm3, %v931_v47, %v935_v2  ;;  %v3570_v25 = vrot.slane %v4810_v8, 9 }
  0x46   : > { %6204 = vst [vmem:[#allocation21_spill] sm:$0xff] %v5096_v41  ;;  %v955_v17 = vrot.slane %v954_v0, 4  ;;  %v1458_v24 = vrot.slane %v4815_v10, 5  ;;  %v5125_v36 = vcombine.low %v926_v12, %v936_v62  ;;  %v5129_v34 = vcombine.low %v5099_v11, %v5102_v3  ;;  %v5152_v62 = vld [vmem:[%s4796_s19 + $0xa8] sm:$0xf] }
  0x47   : > { %v1468_v16 = vrot.slane %v4876_v35, 5  ;;  %v6161_v8 = vrot.slane %v4807_v7, 5  ;;  %v752_v35 = vor.u32 %v4862_v27, %v4848_v22  ;;  %v3572_v27 = vrot.slane %v4843_v20, 9 }
  0x48   : > { %6207 = vst [vmem:[#allocation22_spill] sm:$0xff] %v5125_v36  ;;  %6208 = vst [vmem:[#allocation23_spill] sm:$0xff] %v5129_v34  ;;  %v960_v2 = vsel %vm4901_vm3, %v955_v17, %v959_v4  ;;  %v1459_v47 = vsel %vm5109_vm6, %v3570_v25, %v1458_v24  ;;  %v1460_v0 = vrot.slane %v1458_v24, 4  ;;  %4064 = vmatprep.mubr.msk.bf16.mxu0 %vm253_vm0, %v5125_v36  ;;  %v5155_v17 = vld [vmem:[%s4796_s19 + $0xac] sm:$0xf] }
  0x49   : > { %3929 = vmatmul.mubr.msk.bf16.gmra.mrb[20].mxu1 %vm253_vm0, %v5096_v41  ;;  %v5139_v10 = vcombine.low %v950_v31, %v960_v2  ;;  %v5149_v4 = vcombine.low %v5114_v32, %v5117_v56  ;;  %v762_v31 = vor.u32 %v5087_v43, %v4864_v28  ;;  %v1466_v25 = vsel %vm5109_vm6, %v3571_v37, %v1465_v53  ;;  %v5181_v53 = vld [vmem:[%s4796_s19 + $0xb4] sm:$0xf] }
  0x4a   : > { %3932 = vmatprep.mubr.msk.bf16.mxu1 %vm253_vm0, %v5129_v34  ;;  %v1462_v12 = vsel %vm5109_vm6, %v1460_v0, %v1461_v13  ;;  %v1472_v13 = vrot.slane %v4846_v21, 5  ;;  %v1469_v24 = vsel %vm5109_vm6, %v1467_v18, %v1468_v16  ;;  %v1475_v2 = vrot.slane %v4919_v9, 5  ;;  %v5184_v18 = vld [vmem:[%s4796_s19 + $0xb8] sm:$0xf]  ;;  %v5194_v16 = vld [vmem:[%s4796_s19 + $0x8] sm:$0x1] }
  0x4b   : > { %6209 = vst [vmem:[#allocation24_spill] sm:$0xff] %v5139_v10  ;;  %6210 = vst [vmem:[#allocation25_spill] sm:$0xff] %v5149_v4  ;;  %4065 = vmatmul.mubr.msk.bf16.gmra.mrb[12].mxu0 %vm253_vm0, %v5139_v10  ;;  %v5161_v22 = vcombine.low %v1459_v47, %v1462_v12  ;;  %v1479_v43 = vrot.slane %v4888_v49, 5  ;;  %v5178_v21 = vcombine.low %v5152_v62, %v5155_v17  ;;  %v5188_v49 = vrot.slane %v6161_v8, 4 }
  0x4c   : > { %v1473_v20 = vsel %vm5109_vm6, %v3572_v27, %v1472_v13  ;;  %v1474_v47 = vrot.slane %v1472_v13, 4  ;;  %v3573_v9 = vrot.slane %v4881_v44, 9  ;;  %v5196_v37 = vcombine.low %v1466_v25, %v1469_v24 }
  0x4d   : > { %4088 = vmatprep.mubr.msk.bf16.mxu0 %vm253_vm0, %v5161_v22  ;;  %6211 = vst [vmem:[#allocation26_spill] sm:$0xff] %v5178_v21  ;;  %v1481_v27 = vrot.slane %v1479_v43, 4  ;;  %v1482_v13 = vrot.slane %v4934_v38, 5  ;;  %v753_v0 = vrot.slane %v752_v35, 4  ;;  %v763_v8 = vrot.slane %v762_v31, 4  ;;  %v4605_v38 = vld [vmem:[%s6137_s1 + $0x68] sm:$0xff]  }
  0x4e   : > { %v1476_v12 = vsel %vm5109_vm6, %v1474_v47, %v1475_v2  ;;  %v3574_v25 = vrot.slane %v4893_v54, 9  ;;  %v1486_v24 = vrot.slane %v4896_v55, 5  ;;  %v1489_v2 = vrot.slane %v4989_v39, 5 }
  0x4f   : > { %v5217_v31 = vcombine.low %v5181_v53, %v5184_v18  ;;  %v1480_v54 = vsel %vm5109_vm6, %v3573_v9, %v1479_v43  ;;  %v1483_v55 = vsel %vm5109_vm6, %v1481_v27, %v1482_v13  ;;  %v758_v47 = vsel %vm4901_vm3, %v753_v0, %v4864_v28  ;;  %v5244_v13 = vld [vmem:[%s6137_s1 + $0x70] sm:$0xff]  }
  0x50   : > { %v1488_v39 = vrot.slane %v1486_v24, 4  ;;  %v1500_v43 = vrot.slane %v4960_v59, 5  ;;  %v5247_v0 = vcombine.low %v1480_v54, %v1483_v55  ;;  %v3575_v59 = vrot.slane %v4942_v42, 9 }
  0x51   : > { %3933 = vmatmul.mubr.msk.bf16.gmra.mrb[24].mxu1 %vm253_vm0, %v5149_v4  ;;  %v5204_v4 = vcombine.low %v1473_v20, %v1476_v12  ;;  %6212 = vst [vmem:[#allocation27_spill] sm:$0xff] %v5217_v31  ;;  %v765_v20 = vshll.u32 %v5194_v16, 16  ;;  %v1493_v12 = vrot.slane %v4953_v50, 5  ;;  %v1487_v50 = vsel %vm5109_vm6, %v3574_v25, %v1486_v24 }
  0x52   : > { %3936 = vmatprep.mubr.msk.bf16.mxu1 %vm253_vm0, %v5178_v21  ;;  %v1502_v28 = vrot.slane %v1500_v43, 4  ;;  %v1503_v54 = vrot.slane %v5042_v46, 5  ;;  %v1507_v55 = vrot.slane %v5011_v1, 5  ;;  %v5283_v1 = vld [vmem:[%s4796_s19 + $0x80] sm:$0x1]  ;;  %v6219_v21 = vshll.u32 %v5053_v33, 16 }
  0x53   : > { %4089 = vmatmul.mubr.msk.bf16.vlgmr.msra.gmra.mrb[0].mxu0 %vm253_vm0, %v5196_v37  ;;  %v767_v44 = vrot.slane %v765_v20, 5  ;;  %v1495_v24 = vrot.slane %v1493_v12, 4 }
  0x54   : > { %4121 = vmatpush3.bf16.msra.mxu0 %v4982_v5  ;;  %4092 = vmatprep.mubr.msk.bf16.mxu0 %vm253_vm0, %v5204_v4  ;;  %v1490_v5 = vsel %vm5109_vm6, %v1488_v39, %v1489_v2  ;;  %v1496_v2 = vrot.slane %v4995_v48, 5  ;;  %v3576_v39 = vrot.slane %v4956_v51, 9  ;;  %v1514_v48 = vrot.slane %v5029_v40, 5 }
  0x55   : > { %4122 = vmatprep.subr.bf16.mxu0 %v4605_v38  ;;  %v768_v25 = vsel %vm4901_vm3, %v763_v8, %v767_v44  ;;  %v5256_v27 = vcombine.low %v1487_v50, %v1490_v5  ;;  %v1494_v50 = vsel %vm5109_vm6, %v3575_v59, %v1493_v12  ;;  %v1504_v46 = vsel %vm5109_vm6, %v1502_v28, %v1503_v54  ;;  %v5302_v54 = vld [vmem:[%s4796_s19 + $0x8c] sm:$0x1] }
  0x56   : > { %v3535_v20 = vcombine.low %v758_v47, %v768_v25  ;;  %v1521_v47 = vrot.slane %v5064_v58, 5  ;;  %v1497_v5 = vsel %vm5109_vm6, %v1495_v24, %v1496_v2  ;;  %v1501_v25 = vsel %vm5109_vm6, %v3576_v39, %v1500_v43  ;;  %v4606_v43 = vld [vmem:[%s6137_s1 + $0x28] sm:$0xff]  }
  0x57   : > { %v1509_v51 = vrot.slane %v1507_v55, 4  ;;  %v1510_v12 = vrot.slane %v5046_v15, 5  ;;  %v3578_v59 = vrot.slane %v5018_v14, 9  ;;  %v1516_v24 = vrot.slane %v1514_v48, 4 }
  0x58   : > { %4123 = vmatpush3.bf16.msra.mxu0 %v4605_v38  ;;  %v5270_v38 = vld [vmem:[%s4796_s19 + $0x74] sm:$0x1]  ;;  %v3579_v2 = vrot.slane %v5053_v33, 9  ;;  %v1528_v39 = vrot.slane %v5077_v23, 5  ;;  %v1523_v15 = vrot.slane %v1521_v47, 4  ;;  %v1524_v28 = vrot.slane %v5283_v1, 5 }
  0x59   : > { %3937 = vmatmul.mubr.msk.bf16.gmra.mrb[28].mxu1 %vm253_vm0, %v5217_v31  ;;  %4156 = vmatprep.subr.bf16.mxu0 %v5244_v13  ;;  %v1535_v8 = vrot.slane %v5102_v3, 5  ;;  %v5307_v35 = vcombine.low %v1494_v50, %v1497_v5  ;;  %v5309_v34 = vcombine.low %v1501_v25, %v1504_v46  ;;  %v1511_v31 = vsel %vm5109_vm6, %v1509_v51, %v1510_v12  ;;  %v5327_v46 = vld [vmem:[%s6137_s1 + $0x30] sm:$0xff]  }
  0x5a   : > { %3944 = vmatprep.mubr.msk.bf16.mxu1 %vm253_vm0, %v3535_v20  ;;  %v3577_v20 = vrot.slane %v5008_v63, 9  ;;  %v1517_v63 = vrot.slane %v5270_v38, 5  ;;  %v1515_v9 = vsel %vm5109_vm6, %v3578_v59, %v1514_v48  ;;  %v3580_v50 = vrot.slane %v5073_v29, 9 }
  0x5b   : > { %4093 = vmatmul.mubr.msk.bf16.gmra.mrb[4].mxu0 %vm253_vm0, %v5247_v0  ;;  %6213 = vst [vmem:[#allocation28_spill] sm:$0xff] %v5309_v34  ;;  %v1530_v5 = vrot.slane %v1528_v39, 4  ;;  %v1531_v51 = vrot.slane %v5302_v54, 5  ;;  %v1525_v48 = vsel %vm5109_vm6, %v1523_v15, %v1524_v28  ;;  %v3581_v25 = vrot.slane %v5099_v11, 9  ;;  %v5352_v28 = vld [vmem:[%s4796_s19 + $0xa4] sm:$0x1] }
  0x5c   : > { %4096 = vmatprep.mubr.msk.bf16.mxu0 %vm253_vm0, %v5256_v27  ;;  %v1508_v44 = vsel %vm5109_vm6, %v3577_v20, %v1507_v55  ;;  %v1522_v55 = vsel %vm5109_vm6, %v3579_v2, %v1521_v47  ;;  %v1537_v20 = vrot.slane %v1535_v8, 4  ;;  %v1542_v47 = vrot.slane %v5117_v56, 5 }
  0x5d   : > { %v5347_v2 = vcombine.low %v1508_v44, %v1511_v31  ;;  %v1529_v15 = vsel %vm5109_vm6, %v3580_v50, %v1528_v39  ;;  %v5358_v59 = vcombine.low %v1522_v55, %v1525_v48  ;;  %v1536_v31 = vsel %vm5109_vm6, %v3581_v25, %v1535_v8  ;;  %v5370_v39 = vld [vmem:[%s4796_s19 + $0xb0] sm:$0x1] }
  0x5e   : > { %v1549_v50 = vrot.slane %v5155_v17, 5  ;;  %v1545_v55 = vrot.slane %v5352_v28, 5  ;;  %v6216_v8 = vshll.u32 %v5018_v14, 16 }
  0x60   : > { %v967_v48 = vrot.slane %v6216_v8, 5  ;;  %v1551_v8 = vrot.slane %v1549_v50, 4 }
  0x61   : > { %3945 = vmatmul.mubr.msk.bf16.vlgmr.msra.gmra.mrb[0].mxu1 %vm253_vm0, %v4928_v19  ;;  %v5315_v19 = vld [vmem:[%s4796_s19 + $0x98] sm:$0x1] }
  0x62   : > { %3948 = vmatprep.mubr.msk.bf16.mxu1 %vm253_vm0, %v4947_v45  ;;  %3977 = vmatpush3.bf16.msra.mxu1 %v4860_v26  ;;  %v1518_v26 = vsel %vm5109_vm6, %v1516_v24, %v1517_v63  ;;  %v1538_v12 = vrot.slane %v5315_v19, 5  ;;  %v971_v24 = vshll.u32 %v5029_v40, 16  ;;  %v3582_v63 = vrot.slane %v5114_v32, 9 }
  0x63   : > { %3978 = vmatprep.subr.bf16.mxu1 %v4606_v43  ;;  %4097 = vmatmul.mubr.msk.bf16.gmra.mrb[8].mxu0 %vm253_vm0, %v5307_v35  ;;  %v5356_v42 = vcombine.low %v1515_v9, %v1518_v26  ;;  %v3583_v9 = vrot.slane %v5152_v62, 9  ;;  %v1544_v26 = vrot.slane %v1542_v47, 4 }
  0x64   : > { %4100 = vmatprep.mubr.msk.bf16.mxu0 %vm253_vm0, %v5309_v34  ;;  %v1539_v44 = vsel %vm5109_vm6, %v1537_v20, %v1538_v12  ;;  %v5381_v25 = vrot.slane %v971_v24, 5  ;;  %v6217_v20 = vshrl.u32 %v5029_v40, 16  ;;  %v1543_v24 = vsel %vm5109_vm6, %v3582_v63, %v1542_v47 }
  0x65   : > { %6214 = vst [vmem:[#allocation29_spill] sm:$0xff] %v5356_v42  ;;  %v5391_v41 = vcombine.low %v1536_v31, %v1539_v44  ;;  %v5399_v40 = vsel %vm5109_vm6, %v3583_v9, %v1549_v50  ;;  %v3584_v63 = vrot.slane %v5181_v53, 9  ;;  %v1005_v9 = vshll.u32 %v5283_v1, 16 }
  0x66   : > { %3979 = vmatpush3.bf16.msra.mxu1 %v4606_v43  ;;  %v1532_v43 = vsel %vm5109_vm6, %v1530_v5, %v1531_v51  ;;  %v6215_v5 = vshrl.u32 %v5018_v14, 16  ;;  %v977_v12 = vrot.slane %v6217_v20, 4  ;;  %v995_v14 = vshll.u32 %v5064_v58, 16 }
  0x67   : > { %4012 = vmatprep.subr.bf16.mxu1 %v5327_v46  ;;  %v5389_v34 = vcombine.low %v1529_v15, %v1532_v43  ;;  %v981_v43 = vshll.u32 %v5270_v38, 16  ;;  %v6222_v50 = vshrl.u32 %v5073_v29, 16  ;;  %v6223_v38 = vshll.u32 %v5073_v29, 16 }
  0x68   : > { %v964_v51 = vrot.slane %v6215_v5, 4  ;;  %v1552_v5 = vrot.slane %v5370_v39, 5  ;;  %v5408_v31 = vrot.slane %v995_v14, 5  ;;  %v978_v47 = vor.u32 %v977_v12, %v5381_v25  ;;  %v6225_v12 = vld [vmem:[#allocation19_spill] sm:$0xff] }
  0x69   : > { %3949 = vmatmul.mubr.msk.bf16.gmra.mrb[4].mxu1 %vm253_vm0, %v4997_v52  ;;  %v6218_v52 = vshrl.u32 %v5053_v33, 16  ;;  %6220 = vst [vmem:[#allocation30_spill] sm:$0xff] %v5389_v34  ;;  %v6224_v1 = vshrl.u32 %v5077_v23, 16 }
  0x6a   : > { %3952 = vmatprep.mubr.msk.bf16.mxu1 %vm253_vm0, %v5002_v61  ;;  %v991_v61 = vrot.slane %v6219_v21, 5  ;;  %v1546_v21 = vsel %vm5109_vm6, %v1544_v26, %v1545_v55  ;;  %v968_v15 = vor.u32 %v967_v48, %v964_v51  ;;  %v1012_v26 = vrot.slane %v6222_v50, 4 }
  0x6b   : > { %v988_v45 = vrot.slane %v6218_v52, 4  ;;  %v6221_v52 = vshrl.u32 %v5064_v58, 16  ;;  %4101 = vmatmul.mubr.msk.bf16.gmra.mrb[12].mxu0 %vm253_vm0, %v5347_v2  ;;  %v1556_v58 = vrot.slane %v5184_v18, 5  ;;  %v1015_v55 = vrot.slane %v6223_v38, 5  ;;  %v5441_v38 = vld [vmem:[%s4796_s19 + $0xbc] sm:$0x1] }
  0x6c   : > { %4104 = vmatprep.mubr.msk.bf16.mxu0 %vm253_vm0, %v5356_v42  ;;  %v1019_v51 = vshll.u32 %v5077_v23, 16  ;;  %v5423_v48 = vcombine.low %v1543_v24, %v1546_v21  ;;  %v1025_v20 = vrot.slane %v6224_v1, 4  ;;  %v969_v29 = vrot.slane %v968_v15, 4  ;;  %v5451_v42 = vld [vmem:[%s4796_s19 + $0xc4] sm:$0xf] }
  0x6d   : > { %v1001_v33 = vrot.slane %v6221_v52, 4  ;;  %v992_v44 = vor.u32 %v991_v61, %v988_v45  ;;  %v5427_v45 = vsel %vm5109_vm6, %v1551_v8, %v1552_v5  ;;  %v6226_v52 = vshrl.u32 %v5099_v11, 16 }
  0x6e   : > { %v5434_v14 = vrot.slane %v1019_v51, 5  ;;  %v6227_v21 = vshll.u32 %v5099_v11, 16  ;;  %v979_v5 = vrot.slane %v978_v47, 4  ;;  %v983_v8 = vrot.slane %v981_v43, 5 }
  0x6f   : > { %v1002_v61 = vor.u32 %v1001_v33, %v5408_v31  ;;  %v1036_v24 = vrot.slane %v6226_v52, 4  ;;  %v1043_v23 = vshll.u32 %v5102_v3, 16  ;;  %v6228_v33 = vshrl.u32 %v5102_v3, 16 }
  0x70   : > { %v1039_v50 = vrot.slane %v6227_v21, 5  ;;  %v993_v15 = vrot.slane %v992_v44, 4  ;;  %v1007_v51 = vrot.slane %v1005_v9, 5  ;;  %v1029_v52 = vshll.u32 %v5302_v54, 16 }
  0x71   : > { %3953 = vmatmul.mubr.msk.bf16.gmra.mrb[8].mxu1 %vm253_vm0, %v5055_v30  ;;  %v1049_v1 = vrot.slane %v6228_v33, 4  ;;  %v5447_v30 = vld [vmem:[%s4796_s19 + $0xc0] sm:$0xf]  ;;  %v1003_v11 = vrot.slane %v1002_v61, 4  ;;  %v1026_v43 = vor.u32 %v1025_v20, %v5434_v14  ;;  %v1045_v21 = vrot.slane %v1043_v23, 5 }
  0x72   : > { %3956 = vmatprep.mubr.msk.bf16.mxu1 %vm253_vm0, %v6225_v12  ;;  %v1016_v12 = vor.u32 %v1015_v55, %v1012_v26  ;;  %v1040_v47 = vor.u32 %v1039_v50, %v1036_v24  ;;  %v974_v3 = vsel %vm4901_vm3, %v969_v29, %v5381_v25  ;;  %v1557_v44 = vsel %vm5109_vm6, %v3584_v63, %v1556_v58  ;;  %v5466_v55 = vld [vmem:[%s4796_s19 + $0xc8] sm:$0x1] }
  0x73   : > { %4105 = vmatmul.mubr.msk.bf16.gmra.mrb[16].mxu0 %vm253_vm0, %v5358_v59  ;;  %v1558_v9 = vrot.slane %v1556_v58, 4  ;;  %v1053_v54 = vshll.u32 %v5315_v19, 16  ;;  %v1559_v26 = vrot.slane %v5441_v38, 5  ;;  %v3657_v61 = vrot.slane %v5447_v30, 9 }
  0x74   : > { %4108 = vmatprep.mubr.msk.bf16.mxu0 %vm253_vm0, %v5389_v34  ;;  %v1050_v20 = vor.u32 %v1049_v1, %v1045_v21  ;;  %v1067_v24 = vshll.u32 %v5117_v56, 16  ;;  %v984_v25 = vsel %vm4901_vm3, %v979_v5, %v983_v8  ;;  %v2313_v63 = vrot.slane %v5451_v42, 5 }
  0x75   : > { %v998_v19 = vsel %vm4901_vm3, %v993_v15, %v5408_v31  ;;  %v1017_v58 = vrot.slane %v1016_v12, 4  ;;  %v1008_v29 = vsel %vm4901_vm3, %v1003_v11, %v1007_v51  ;;  %v1027_v50 = vrot.slane %v1026_v43, 4 }
  0x76   : > { %v1031_v23 = vrot.slane %v1029_v52, 5  ;;  %v1041_v33 = vrot.slane %v1040_v47, 4  ;;  %v2316_v5 = vrot.slane %v5466_v55, 5  ;;  %v1055_v8 = vrot.slane %v1053_v54, 5 }
  0x77   : > { %v6229_v1 = vshrl.u32 %v5114_v32, 16  ;;  %v6230_v31 = vshll.u32 %v5114_v32, 16  ;;  %v1051_v15 = vrot.slane %v1050_v20, 4  ;;  %v6231_v51 = vshrl.u32 %v5117_v56, 16 }
  0x78   : > { %v1091_v52 = vshll.u32 %v5155_v17, 16  ;;  %v5492_v43 = vcombine.low %v974_v3, %v984_v25  ;;  %v1560_v47 = vsel %vm5109_vm6, %v1558_v9, %v1559_v26  ;;  %v2315_v54 = vrot.slane %v2313_v63, 4 }
  0x79   : > { %3957 = vmatmul.mubr.msk.bf16.gmra.mrb[12].mxu1 %vm253_vm0, %v5125_v36  ;;  %v1060_v34 = vrot.slane %v6229_v1, 4  ;;  %v1063_v12 = vrot.slane %v6230_v31, 5  ;;  %v5487_v36 = vrot.slane %v1067_v24, 5  ;;  %v1073_v11 = vrot.slane %v6231_v51, 4 }
  0x7a   : > { %3960 = vmatprep.mubr.msk.bf16.mxu1 %vm253_vm0, %v5139_v10  ;;  %v5496_v10 = vcombine.low %v998_v19, %v1008_v29  ;;  %v1022_v32 = vsel %vm4901_vm3, %v1017_v58, %v5434_v14  ;;  %v1032_v20 = vsel %vm4901_vm3, %v1027_v50, %v1031_v23  ;;  %v1046_v56 = vsel %vm4901_vm3, %v1041_v33, %v1045_v21 }
  0x7b   : > { %v1077_v24 = vshll.u32 %v5352_v28, 16  ;;  %4109 = vmatmul.mubr.msk.bf16.gmra.mrb[20].mxu0 %vm253_vm0, %v5391_v41  ;;  %v1064_v3 = vor.u32 %v1063_v12, %v1060_v34  ;;  %v6232_v9 = vshrl.u32 %v5152_v62, 16  ;;  %v6233_v25 = vshll.u32 %v5152_v62, 16 }
  0x7c   : > { %v6234_v14 = vshrl.u32 %v5155_v17, 16  ;;  %4112 = vmatprep.mubr.msk.bf16.mxu0 %vm253_vm0, %v5423_v48  ;;  %v1056_v21 = vsel %vm4901_vm3, %v1051_v15, %v1055_v8  ;;  %v1074_v28 = vor.u32 %v1073_v11, %v5487_v36  ;;  %v1093_v29 = vrot.slane %v1091_v52, 5 }
  0x7d   : > { %v1084_v26 = vrot.slane %v6232_v9, 4  ;;  %v1087_v19 = vrot.slane %v6233_v25, 5  ;;  %v6235_v34 = vrot.slane %v4807_v7, 5  ;;  %v6236_v50 = vrot.slane %v4804_v6, 9 }
  0x7e   : > { %v1097_v58 = vrot.slane %v6234_v14, 4  ;;  %v5529_v17 = vcombine.low %v5399_v40, %v5427_v45  ;;  %v5531_v23 = vcombine.low %v1557_v44, %v1560_v47  ;;  %v2314_v33 = vsel %vm5109_vm6, %v3657_v61, %v2313_v63 }
  0x7f   : > { %v5525_v62 = vsel %vm5109_vm6, %v6236_v50, %v6235_v34  ;;  %v1101_v8 = vshll.u32 %v5370_v39, 16  ;;  %v2317_v6 = vsel %vm5109_vm6, %v2315_v54, %v2316_v5  ;;  %v5540_v7 = vcombine.low %v1022_v32, %v1032_v20 }
  0x80   : > { %v1079_v1 = vrot.slane %v1077_v24, 5  ;;  %v1454_v31 = vrot.slane %v5194_v16, 5  ;;  %v5545_v40 = vcombine.low %v1046_v56, %v1056_v21  ;;  %v1065_v45 = vrot.slane %v1064_v3, 4 }
  0x81   : > { %3961 = vmatmul.mubr.msk.bf16.gmra.mrb[16].mxu1 %vm253_vm0, %v5492_v43  ;;  %v6237_v44 = vshrl.u32 %v5181_v53, 16  ;;  %v1115_v61 = vshll.u32 %v5184_v18, 16  ;;  %v1075_v63 = vrot.slane %v1074_v28, 4  ;;  %v1088_v12 = vor.u32 %v1087_v19, %v1084_v26 }
  0x82   : > { %3964 = vmatprep.mubr.msk.bf16.mxu1 %vm253_vm0, %v5496_v10  ;;  %v1098_v15 = vor.u32 %v1097_v58, %v1093_v29  ;;  %v1455_v5 = vsel %vm5109_vm6, %v5188_v49, %v1454_v31  ;;  %v1103_v51 = vrot.slane %v1101_v8, 5  ;;  %v2076_v11 = vshrl.u32 %v5447_v30, 16 }
  0x83   : > { %v1108_v39 = vrot.slane %v6237_v44, 4  ;;  %v3585_v16 = vcombine.low %v5525_v62, %v1455_v5  ;;  %v2079_v52 = vshll.u32 %v5447_v30, 16  ;;  %v6238_v47 = vshll.u32 %v5181_v53, 16  ;;  %4113 = vmatmul.mubr.msk.bf16.gmra.mrb[24].mxu0 %vm253_vm0, %v5529_v17 }
  0x84   : > { %v6239_v32 = vshrl.u32 %v5184_v18, 16  ;;  %v2085_v56 = vshll.u32 %v5451_v42, 16  ;;  %v2089_v24 = vshrl.u32 %v5451_v42, 16  ;;  %v1117_v49 = vrot.slane %v1115_v61, 5  ;;  %4116 = vmatprep.mubr.msk.bf16.mxu0 %vm253_vm0, %v5531_v23 }
  0x85   : > { %v1111_v54 = vrot.slane %v6238_v47, 5  ;;  %v2078_v3 = vrot.slane %v2076_v11, 4  ;;  %v2081_v9 = vrot.slane %v2079_v52, 5  ;;  %v2095_v26 = vshll.u32 %v5466_v55, 16  ;;  %v6241_v52 = vld [vmem:[#allocation8_spill] sm:$0xff]  ;;  %v6242_v47 = vld [vmem:[#allocation9_spill] sm:$0xff] }
  0x86   : > { %v1121_v20 = vrot.slane %v6239_v32, 4  ;;  %v1089_v53 = vrot.slane %v1088_v12, 4  ;;  %v1099_v25 = vrot.slane %v1098_v15, 4  ;;  %v2087_v19 = vrot.slane %v2085_v56, 5  ;;  %v6240_v12 = vld [vmem:[#allocation7_spill] sm:$0xff]  ;;  %v6243_v32 = vld [vmem:[#allocation10_spill] sm:$0xff] }
  0x87   : > { %v2091_v18 = vrot.slane %v2089_v24, 4  ;;  %v5567_v14 = vcombine.low %v2314_v33, %v2317_v6  ;;  %v2082_v58 = vor.u32 %v2081_v9, %v2078_v3  ;;  %v1070_v21 = vsel %vm4901_vm3, %v1065_v45, %v5487_v36  ;;  %v6246_v56 = vld [vmem:[#allocation16_spill] sm:$0xff]  ;;  %v5643_v24 = vld [vmem:[%s6137_s1 + $0x40] sm:$0xff]   ;;  %v6250_v3 = vld [vmem:[#allocation23_spill] sm:$0xff] }
  0x88   : > { %v1125_v28 = vshll.u32 %v5441_v38, 16  ;;  %v2097_v34 = vrot.slane %v2095_v26, 5  ;;  %v1080_v50 = vsel %vm4901_vm3, %v1075_v63, %v1079_v1  ;;  %v1112_v62 = vor.u32 %v1111_v54, %v1108_v39  ;;  %v5618_v54 = vld [vmem:[%s6137_s1 + $0x80] sm:$0xff]   ;;  %v6251_v9 = vld [vmem:[#allocation28_spill] sm:$0xff]  ;;  %v6252_v26 = vld [vmem:[#allocation25_spill] sm:$0xff] }
  0x89   : > { %3965 = vmatmul.mubr.msk.bf16.gmra.mrb[20].mxu1 %vm253_vm0, %v5540_v7  ;;  %v2092_v55 = vor.u32 %v2091_v18, %v2087_v19  ;;  %v1122_v33 = vor.u32 %v1121_v20, %v1117_v49  ;;  %v2083_v8 = vrot.slane %v2082_v58, 4  ;;  %v1094_v6 = vsel %vm4901_vm3, %v1089_v53, %v1093_v29  ;;  %v4612_v20 = vld [vmem:[%s6137_s1 + $0x38] sm:$0xff]   ;;  %v6253_v53 = vld [vmem:[#allocation26_spill] sm:$0xff]  ;;  %v6255_v18 = vld [vmem:[#allocation27_spill] sm:$0xff] }
  0x8a   : > { %3968 = vmatprep.mubr.msk.bf16.mxu1 %vm253_vm0, %v5545_v40  ;;  %v1104_v31 = vsel %vm4901_vm3, %v1099_v25, %v1103_v51  ;;  %v5585_v45 = vcombine.low %v1070_v21, %v1080_v50  ;;  %v1127_v44 = vrot.slane %v1125_v28, 5  ;;  %v1113_v39 = vrot.slane %v1112_v62, 4  ;;  %v4609_v51 = vld [vmem:[%s6137_s1 + $0x78] sm:$0xff]   ;;  %v5683_v58 = vld [vmem:[%s4796_s19 + $0xcc] sm:$0xf]  ;;  %v6256_v28 = vld [vmem:[#allocation30_spill] sm:$0xff] }
  0x8b   : > { %v2093_v36 = vrot.slane %v2092_v55, 4  ;;  %v2088_v38 = vsel %vm4901_vm3, %v2083_v8, %v2087_v19  ;;  %4117 = vmatmul.mubr.msk.bf16.gmra.mrb[28].mxu0 %vm253_vm0, %v5567_v14  ;;  %v5591_v1 = vcombine.low %v1094_v6, %v1104_v31  ;;  %v1123_v29 = vrot.slane %v1122_v33, 4  ;;  %v6254_v25 = vld [vmem:[#allocation29_spill] sm:$0xff]  ;;  %v5686_v21 = vld [vmem:[%s4796_s19 + $0xd0] sm:$0xf]  ;;  %v6258_v50 = vld [vmem:[#allocation14_spill] sm:$0xff] }
  0x8c   : > { %4124 = vmatprep.mubr.msk.bf16.mxu0 %vm253_vm0, %v6240_v12  ;;  %v1118_v15 = vsel %vm4901_vm3, %v1113_v39, %v1117_v49  ;;  %v6249_v49 = vld [vmem:[#allocation21_spill] sm:$0xff]  ;;  %v5676_v19 = vcombine.low %v5447_v30, %v5451_v42  ;;  %v3677_v55 = vcombine.low %v5683_v58, %v5686_v21  ;;  %v6257_v30 = vld [vmem:[#allocation11_spill] sm:$0xff]  ;;  %v4697_v42 = vmov 0.0   ;;  %v6260_v33 = vld [vmem:[#allocation6_spill] sm:$0xff] }
  0x8d   : > { %v2098_v61 = vsel %vm4901_vm3, %v2093_v36, %v2097_v34  ;;  %v1128_v5 = vsel %vm4901_vm3, %v1123_v29, %v1127_v44  ;;  %256 = vst.msk [vmem:[#allocation2 + $0x10] sm:$0xff] %vm253_vm0, %v4697_v42  ;;  %254 = vst.msk [vmem:[#allocation2] sm:$0xff] %vm253_vm0, %v4697_v42  ;;  %v4614_v34 = vld [vmem:[%s6137_s1 + $0x88] sm:$0xff]   ;;  %v6261_v8 = vld [vmem:[#allocation18_spill] sm:$0xff]  ;;  %v2743_v44 = vshrl.u32 %v5683_v58, 16  ;;  %v2756_v39 = vshrl.u32 %v5686_v21, 16 }
  0x8e   : > { %v5593_v63 = vcombine.low %v2088_v38, %v2098_v61  ;;  %v5608_v11 = vcombine.low %v1118_v15, %v1128_v5  ;;  %255 = vst.msk [vmem:[#allocation2 + $0x8] sm:$0xff] %vm253_vm0, %v4697_v42  ;;  %257 = vst.msk [vmem:[#allocation2 + $0x18] sm:$0xff] %vm253_vm0, %v4697_v42  ;;  %v6259_v62 = vld [vmem:[#allocation15_spill] sm:$0xff]  ;;  %v6263_v36 = vld [vmem:[#allocation22_spill] sm:$0xff]  ;;  %v2746_v61 = vshll.u32 %v5683_v58, 16  ;;  %v2752_v29 = vshll.u32 %v5686_v21, 16 }
  0x8f   : > { %258 = vst.msk [vmem:[#allocation2 + $0x20] sm:$0xff] %vm253_vm0, %v4697_v42  ;;  %259 = vst.msk [vmem:[#allocation2 + $0x28] sm:$0xff] %vm253_vm0, %v4697_v42  ;;  %v6262_v6 = vld [vmem:[#allocation19_spill] sm:$0xff]  ;;  %v6264_v38 = vld [vmem:[#allocation24_spill] sm:$0xff]  ;;  %v2980_v57 = vrot.slane %v5686_v21, 5 }
  0x90   : > { %260 = vst.msk [vmem:[#allocation2 + $0x30] sm:$0xff] %vm253_vm0, %v4697_v42  ;;  %261 = vst.msk [vmem:[#allocation2 + $0x38] sm:$0xff] %vm253_vm0, %v4697_v42  ;;  %v4616_v31 = vld [vmem:[%s6137_s1 + $0x48] sm:$0xff]   ;;  %v2748_v15 = vrot.slane %v2746_v61, 5  ;;  %v2754_v5 = vrot.slane %v2752_v29, 5 }
  0x91   : > { %3969 = vmatmul.mubr.msk.bf16.gmra.mrb[24].mxu1 %vm253_vm0, %v5585_v45  ;;  %262 = vst.msk [vmem:[#allocation2 + $0x40] sm:$0xff] %vm253_vm0, %v4697_v42  ;;  %263 = vst.msk [vmem:[#allocation2 + $0x48] sm:$0xff] %vm253_vm0, %v4697_v42 }
  0x92   : > { %3972 = vmatprep.mubr.msk.bf16.mxu1 %vm253_vm0, %v5591_v1  ;;  %264 = vst.msk [vmem:[#allocation2 + $0x50] sm:$0xff] %vm253_vm0, %v4697_v42  ;;  %265 = vst.msk [vmem:[#allocation2 + $0x58] sm:$0xff] %vm253_vm0, %v4697_v42 }
  0x93   : > { %4125 = vmatmul.mubr.msk.bf16.vlgmr.msra.gmra.mrb[0].mxu0 %vm253_vm0, %v6241_v52  ;;  %266 = vst.msk [vmem:[#allocation2 + $0x60] sm:$0xff] %vm253_vm0, %v4697_v42  ;;  %267 = vst.msk [vmem:[#allocation2 + $0x68] sm:$0xff] %vm253_vm0, %v4697_v42 }
  0x94   : > { %4157 = vmatpush3.bf16.msra.mxu0 %v5244_v13  ;;  %4128 = vmatprep.mubr.msk.bf16.mxu0 %vm253_vm0, %v6242_v47  ;;  %v6244_v13 = vld [vmem:[#allocation12_spill] sm:$0xff]  ;;  %268 = vst.msk [vmem:[#allocation2 + $0x70] sm:$0xff] %vm253_vm0, %v4697_v42  ;;  %269 = vst.msk [vmem:[#allocation2 + $0x78] sm:$0xff] %vm253_vm0, %v4697_v42 }
  0x95   : > { %4158 = vmatprep.subr.bf16.mxu0 %v4609_v51  ;;  %270 = vst.msk [vmem:[#allocation2 + $0x80] sm:$0xff] %vm253_vm0, %v4697_v42  ;;  %271 = vst.msk [vmem:[#allocation2 + $0x88] sm:$0xff] %vm253_vm0, %v4697_v42 }
  0x96   : > { %272 = vst.msk [vmem:[#allocation2 + $0x90] sm:$0xff] %vm253_vm0, %v4697_v42  ;;  %273 = vst.msk [vmem:[#allocation2 + $0x98] sm:$0xff] %vm253_vm0, %v4697_v42 }
  0x97   : > { %274 = vst.msk [vmem:[#allocation2 + $0xa0] sm:$0xff] %vm253_vm0, %v4697_v42  ;;  %275 = vst.msk [vmem:[#allocation2 + $0xa8] sm:$0xff] %vm253_vm0, %v4697_v42 }
  0x98   : > { %4159 = vmatpush3.bf16.msra.mxu0 %v4609_v51  ;;  %276 = vst.msk [vmem:[#allocation2 + $0xb0] sm:$0xff] %vm253_vm0, %v4697_v42  ;;  %277 = vst.msk [vmem:[#allocation2 + $0xb8] sm:$0xff] %vm253_vm0, %v4697_v42  ;;  %v2758_v51 = vrot.slane %v2756_v39, 4 }
  0x99   : > { %3973 = vmatmul.mubr.msk.bf16.gmra.mrb[28].mxu1 %vm253_vm0, %v5608_v11  ;;  %4192 = vmatprep.subr.bf16.mxu0 %v5618_v54  ;;  %278 = vst.msk [vmem:[#allocation2 + $0xc0] sm:$0xff] %vm253_vm0, %v4697_v42  ;;  %279 = vst.msk [vmem:[#allocation2 + $0xc8] sm:$0xff] %vm253_vm0, %v4697_v42 }
  0x9a   : > { %3980 = vmatprep.mubr.msk.bf16.mxu1 %vm253_vm0, %v3585_v16  ;;  %v6245_v16 = vld [vmem:[#allocation13_spill] sm:$0xff]  ;;  %280 = vst.msk [vmem:[#allocation2 + $0xd0] sm:$0xff] %vm253_vm0, %v4697_v42  ;;  %281 = vst.msk [vmem:[#allocation2 + $0xd8] sm:$0xff] %vm253_vm0, %v4697_v42 }
  0x9b   : > { %4129 = vmatmul.mubr.msk.bf16.gmra.mrb[4].mxu0 %vm253_vm0, %v6243_v32  ;;  %282 = vst.msk [vmem:[#allocation2 + $0xe0] sm:$0xff] %vm253_vm0, %v4697_v42  ;;  %283 = vst.msk [vmem:[#allocation2 + $0xe8] sm:$0xff] %vm253_vm0, %v4697_v42 }
  0x9c   : > { %4132 = vmatprep.mubr.msk.bf16.mxu0 %vm253_vm0, %v6244_v13  ;;  %284 = vst.msk [vmem:[#allocation2 + $0xf0] sm:$0xff] %vm253_vm0, %v4697_v42  ;;  %285 = vst.msk [vmem:[#allocation2 + $0xf8] sm:$0xff] %vm253_vm0, %v4697_v42 }
  0xa1   : > { %3981 = vmatmul.mubr.msk.bf16.vlgmr.msra.gmra.mrb[0].mxu1 %vm253_vm0, %v5161_v22  ;;  %v6247_v22 = vld [vmem:[#allocation17_spill] sm:$0xff] }
  0xa2   : > { %3984 = vmatprep.mubr.msk.bf16.mxu1 %vm253_vm0, %v5196_v37  ;;  %4013 = vmatpush3.bf16.msra.mxu1 %v5327_v46  ;;  %v6248_v46 = vld [vmem:[#allocation20_spill] sm:$0xff] }
  0xa3   : > { %4014 = vmatprep.subr.bf16.mxu1 %v4612_v20  ;;  %4133 = vmatmul.mubr.msk.bf16.gmra.mrb[8].mxu0 %vm253_vm0, %v6245_v16 }
  0xa4   : > { %4136 = vmatprep.mubr.msk.bf16.mxu0 %vm253_vm0, %v6246_v56 }
  0xa6   : > { %4015 = vmatpush3.bf16.msra.mxu1 %v4612_v20 }
  0xa7   : > { %4228 = vmatprep.subr.bf16.mxu1 %v5643_v24 }
  0xa9   : > { %3985 = vmatmul.mubr.msk.bf16.gmra.mrb[4].mxu1 %vm253_vm0, %v5204_v4 }
  0xaa   : > { %3988 = vmatprep.mubr.msk.bf16.mxu1 %vm253_vm0, %v5247_v0 }
  0xab   : > { %4137 = vmatmul.mubr.msk.bf16.gmra.mrb[12].mxu0 %vm253_vm0, %v6247_v22 }
  0xac   : > { %4140 = vmatprep.mubr.msk.bf16.mxu0 %vm253_vm0, %v6248_v46 }
  0xb1   : > { %3989 = vmatmul.mubr.msk.bf16.gmra.mrb[8].mxu1 %vm253_vm0, %v5256_v27 }
  0xb2   : > { %3992 = vmatprep.mubr.msk.bf16.mxu1 %vm253_vm0, %v5307_v35 }
  0xb3   : > { %4141 = vmatmul.mubr.msk.bf16.gmra.mrb[16].mxu0 %vm253_vm0, %v6249_v49 }
  0xb4   : > { %4144 = vmatprep.mubr.msk.bf16.mxu0 %vm253_vm0, %v6250_v3 }
  0xb9   : > { %3993 = vmatmul.mubr.msk.bf16.gmra.mrb[12].mxu1 %vm253_vm0, %v6251_v9 }
  0xba   : > { %3996 = vmatprep.mubr.msk.bf16.mxu1 %vm253_vm0, %v5347_v2 }
  0xbb   : > { %4145 = vmatmul.mubr.msk.bf16.gmra.mrb[20].mxu0 %vm253_vm0, %v6252_v26 }
  0xbc   : > { %4148 = vmatprep.mubr.msk.bf16.mxu0 %vm253_vm0, %v6253_v53 }
  0xc1   : > { %3997 = vmatmul.mubr.msk.bf16.gmra.mrb[16].mxu1 %vm253_vm0, %v6254_v25 }
  0xc2   : > { %4000 = vmatprep.mubr.msk.bf16.mxu1 %vm253_vm0, %v5358_v59 }
  0xc3   : > { %4149 = vmatmul.mubr.msk.bf16.gmra.mrb[24].mxu0 %vm253_vm0, %v6255_v18 }
  0xc4   : > { %4152 = vmatprep.mubr.msk.bf16.mxu0 %vm253_vm0, %v5676_v19 }
  0xc9   : > { %4001 = vmatmul.mubr.msk.bf16.gmra.mrb[20].mxu1 %vm253_vm0, %v6256_v28 }
  0xca   : > { %4004 = vmatprep.mubr.msk.bf16.mxu1 %vm253_vm0, %v5391_v41 }
  0xcb   : > { %4153 = vmatmul.mubr.msk.bf16.gmra.mrb[28].mxu0 %vm253_vm0, %v3677_v55 }
  0xcc   : > { %4160 = vmatprep.mubr.msk.bf16.mxu0 %vm253_vm0, %v6257_v30 }
  0xd1   : > { %4005 = vmatmul.mubr.msk.bf16.gmra.mrb[24].mxu1 %vm253_vm0, %v5423_v48 }
  0xd2   : > { %4008 = vmatprep.mubr.msk.bf16.mxu1 %vm253_vm0, %v5529_v17 }
  0xd3   : > { %4161 = vmatmul.mubr.msk.bf16.vlgmr.msra.gmra.mrb[0].mxu0 %vm253_vm0, %v6258_v50  ;;  %v382_v50 = vld [vmem:[#allocation2 + $0x30] sm:$0xff] }
  0xd4   : > { %4193 = vmatpush3.bf16.msra.mxu0 %v5618_v54  ;;  %4164 = vmatprep.mubr.msk.bf16.mxu0 %vm253_vm0, %v6259_v62  ;;  %v2759_v54 = vor.u32 %v2758_v51, %v2754_v5 }
  0xd5   : > { %4194 = vmatprep.subr.bf16.mxu0 %v4614_v34 }
  0xd6   : > { %v2760_v20 = vrot.slane %v2759_v54, 4 }
  0xd8   : > { %4195 = vmatpush3.bf16.msra.mxu0 %v4614_v34 }
  0xd9   : > { %4009 = vmatmul.mubr.msk.bf16.gmra.mrb[28].mxu1 %vm253_vm0, %v5531_v23 }
  0xda   : > { %4016 = vmatprep.mubr.msk.bf16.mxu1 %vm253_vm0, %v6260_v33  ;;  %v380_v33 = vld [vmem:[#allocation2 + $0x20] sm:$0xff] }
  0xdb   : > { %4165 = vmatmul.mubr.msk.bf16.gmra.mrb[4].mxu0 %vm253_vm0, %v6261_v8  ;;  %v383_v8 = vld [vmem:[#allocation2 + $0x38] sm:$0xff] }
  0xdc   : > { %4168 = vmatprep.mubr.msk.bf16.mxu0 %vm253_vm0, %v6262_v6 }
  0xe1   : > { %4017 = vmatmul.mubr.msk.bf16.vlgmr.msra.gmra.mrb[0].mxu1 %vm253_vm0, %v6240_v12  ;;  %v2745_v12 = vrot.slane %v2743_v44, 4 }
  0xe2   : > { %4020 = vmatprep.mubr.msk.bf16.mxu1 %vm253_vm0, %v6241_v52  ;;  %4230 = vmatpush3.bf16.msra.mxu1 %v5643_v24  ;;  %v339_v52 = vld [vmem:[%s4796_s19 + $0xd4] sm:$0x1]  ;;  %s225_s19 = sand.u32 1, %s4679_s13  }
  0xe3   : > { %4229 = vmatprep.subr.bf16.mxu1 %v4616_v31  ;;  %4169 = vmatmul.mubr.msk.bf16.gmra.mrb[8].mxu0 %vm253_vm0, %v6263_v36  ;;  %s5894_s21 = sshll.u32 %s225_s19, 8  ;;  %s6090_s15 = scalar_lea.sflag [#allocation4], %s225_s19 }
  0xe4   : > { %4172 = vmatprep.mubr.msk.bf16.mxu0 %vm253_vm0, %v6264_v38  ;;  %v5890_v38 = vld [vmem:[%s6138_s2] ss:$0 sm:$0xff]  ;;  %s5914_s23 = scalar_lea.vmem [#allocation3], %s5894_s21 }
  0xe5   : > { %s3381_s27 = sshll.u32 %s5914_s23, 4  ;;  %s6080_s27 = int_to_ptr.vmem [resolvable:$true] %s3381_s27 }
  0xe6   : > { %4231 = vmatpush3.bf16.msra.mxu1 %v4616_v31  ;;  %v381_v31 = vld [vmem:[#allocation2 + $0x28] sm:$0xff]  ;;  %s4617_s4 = scalar_lea.vmem %s6080_s27, 4096  ;;  %p4624_p1 = scmp.lt.s32.totalorder %s6080_s27, %s4622_s6 }
  0xe7   : > { %p4618_p12 = scmp.ne.s32.totalorder %s6080_s27, %s4617_s4  ;;  %p4625_p2 = scmp.lt.s32.totalorder %s4623_s7, %s4617_s4 }
  0xe9   : > { %4021 = vmatmul.mubr.msk.bf16.gmra.mrb[4].mxu1 %vm253_vm0, %v6242_v47  ;;  %v2749_v47 = vor.u32 %v2748_v15, %v2745_v12  ;;  %p4619_p13 = pnand %p4618_p12, %p4761_p4  ;;  %p4626_p3 = por %p4625_p2, %p4624_p1 }
  0xea   : > { %4024 = vmatprep.mubr.msk.bf16.mxu1 %vm253_vm0, %v6243_v32  ;;  %v2762_v32 = vshll.u32 %v339_v52, 16 }
  0xeb   : > { %4173 = vmatmul.mubr.msk.bf16.gmra.mrb[12].mxu0 %vm253_vm0, %v5492_v43  ;;  %p4620_p0 = pneg %p4619_p13 }
  0xec   : > { %4176 = vmatprep.mubr.msk.bf16.mxu0 %vm253_vm0, %v5496_v10 }
  0xed   : > { %p4627_p5 = pnand %p4626_p3, %p4620_p0 }
  0xf1   : > { %4025 = vmatmul.mubr.msk.bf16.gmra.mrb[8].mxu1 %vm253_vm0, %v6244_v13  ;;  %v2750_v13 = vrot.slane %v2749_v47, 4 }
  0xf2   : > { %4028 = vmatprep.mubr.msk.bf16.mxu1 %vm253_vm0, %v6245_v16  ;;  %v2764_v16 = vrot.slane %v2762_v32, 5 }
  0xf3   : > { %4177 = vmatmul.mubr.msk.bf16.gmra.mrb[16].mxu0 %vm253_vm0, %v5540_v7 }
  0xf4   : > { %4180 = vmatprep.mubr.msk.bf16.mxu0 %vm253_vm0, %v5545_v40  ;;  %v2765_v24 = vsel %vm4901_vm3, %v2760_v20, %v2764_v16  ;;  %v386_v20 = vld [vmem:[#allocation2 + $0x50] sm:$0xff] }
  0xf9   : > { %4029 = vmatmul.mubr.msk.bf16.gmra.mrb[12].mxu1 %vm253_vm0, %v6246_v56  ;;  %v2755_v56 = vsel %vm4901_vm3, %v2750_v13, %v2754_v5 }
  0xfa   : > { %4032 = vmatprep.mubr.msk.bf16.mxu1 %vm253_vm0, %v6247_v22  ;;  %v3696_v22 = vcombine.low %v2755_v56, %v2765_v24 }
  0xfb   : > { %4181 = vmatmul.mubr.msk.bf16.gmra.mrb[20].mxu0 %vm253_vm0, %v5585_v45 }
  0xfc   : > { %4184 = vmatprep.mubr.msk.bf16.mxu0 %vm253_vm0, %v5591_v1 }
 0x101   : > { %4033 = vmatmul.mubr.msk.bf16.gmra.mrb[16].mxu1 %vm253_vm0, %v6248_v46 }
 0x102   : > { %4036 = vmatprep.mubr.msk.bf16.mxu1 %vm253_vm0, %v6249_v49  ;;  %v378_v49 = vld [vmem:[#allocation2 + $0x10] sm:$0xff] }
 0x103   : > { %4185 = vmatmul.mubr.msk.bf16.gmra.mrb[24].mxu0 %vm253_vm0, %v5608_v11 }
 0x104   : > { %4188 = vmatprep.mubr.msk.bf16.mxu0 %vm253_vm0, %v5593_v63 }
 0x109   : > { %4037 = vmatmul.mubr.msk.bf16.gmra.mrb[20].mxu1 %vm253_vm0, %v6250_v3  ;;  %v376_v3 = vld [vmem:[#allocation2] sm:$0xff] }
 0x10a   : > { %4040 = vmatprep.mubr.msk.bf16.mxu1 %vm253_vm0, %v6252_v26 }
 0x10b   : > { %4189 = vmatmul.mubr.msk.bf16.gmra.mrb[28].mxu0 %vm253_vm0, %v3696_v22 }
 0x10c   : > { %4196 = vmatprep.mubr.msk.bf16.mxu0 %vm253_vm0, %v5196_v37  ;;  %v2983_v37 = vrot.slane %v339_v52, 5 }
 0x111   : > { %4041 = vmatmul.mubr.msk.bf16.gmra.mrb[24].mxu1 %vm253_vm0, %v6253_v53  ;;  %v377_v53 = vld [vmem:[#allocation2 + $0x8] sm:$0xff] }
 0x112   : > { %4044 = vmatprep.mubr.msk.bf16.mxu1 %vm253_vm0, %v6255_v18 }
 0x113   : > { %4197 = vmatmul.mubr.msk.bf16.vlgmr.msra.gmra.mrb[0].mxu0 %vm253_vm0, %v5204_v4  ;;  %v2982_v4 = vrot.slane %v2980_v57, 4 }
 0x114   : > { %4200 = vmatprep.mubr.msk.bf16.mxu0 %vm253_vm0, %v5247_v0 }
 0x119   : > { %4045 = vmatmul.mubr.msk.bf16.gmra.mrb[28].mxu1 %vm253_vm0, %v5676_v19 }
 0x11a   : > { %4068 = vmatprep.mubr.msk.bf16.mxu1 %vm253_vm0, %v5492_v43 }
 0x11b   : > { %4201 = vmatmul.mubr.msk.bf16.gmra.mrb[4].mxu0 %vm253_vm0, %v5256_v27 }
 0x11c   : > { %4204 = vmatprep.mubr.msk.bf16.mxu0 %vm253_vm0, %v5307_v35  ;;  %v2984_v35 = vsel %vm5109_vm6, %v2982_v4, %v2983_v37 }
 0x121   : > { %4069 = vmatmul.mubr.msk.bf16.vlgmr.msra.gmra.mrb[16].mxu1 %vm253_vm0, %v5496_v10  ;;  %v3715_v10 = vrot.slane %v5683_v58, 9 }
 0x122   : > { %4072 = vmatprep.mubr.msk.bf16.mxu1 %vm253_vm0, %v5540_v7 }
 0x123   : > { %4205 = vmatmul.mubr.msk.bf16.gmra.mrb[8].mxu0 %vm253_vm0, %v6251_v9  ;;  %v379_v9 = vld [vmem:[#allocation2 + $0x18] sm:$0xff] }
 0x124   : > { %4208 = vmatprep.mubr.msk.bf16.mxu0 %vm253_vm0, %v5347_v2 }
 0x129   : > { %4073 = vmatmul.mubr.msk.bf16.gmra.mrb[20].mxu1 %vm253_vm0, %v5545_v40 }
 0x12a   : > { %4076 = vmatprep.mubr.msk.bf16.mxu1 %vm253_vm0, %v5585_v45 }
 0x12b   : > { %4209 = vmatmul.mubr.msk.bf16.gmra.mrb[12].mxu0 %vm253_vm0, %v6254_v25 }
 0x12c   : > { %4212 = vmatprep.mubr.msk.bf16.mxu0 %vm253_vm0, %v5358_v59 }
 0x131   : > { %4077 = vmatmul.mubr.msk.bf16.gmra.mrb[24].mxu1 %vm253_vm0, %v5591_v1 }
 0x132   : > { %4080 = vmatprep.mubr.msk.bf16.mxu1 %vm253_vm0, %v5608_v11 }
 0x133   : > { %4213 = vmatmul.mubr.msk.bf16.gmra.mrb[16].mxu0 %vm253_vm0, %v6256_v28 }
 0x134   : > { %4216 = vmatprep.mubr.msk.bf16.mxu0 %vm253_vm0, %v5391_v41  ;;  %v2981_v41 = vsel %vm5109_vm6, %v3715_v10, %v2980_v57  ;;  %v384_v57 = vld [vmem:[#allocation2 + $0x40] sm:$0xff] }
 0x135   : > { %v3716_v27 = vcombine.low %v2981_v41, %v2984_v35  ;;  %v387_v35 = vld [vmem:[#allocation2 + $0x58] sm:$0xff] }
 0x139   : > { %4081 = vmatmul.mubr.msk.bf16.gmra.mrb[28].mxu1 %vm253_vm0, %v5593_v63 }
 0x13b   : > { %4217 = vmatmul.mubr.msk.bf16.gmra.mrb[20].mxu0 %vm253_vm0, %v5423_v48 }
 0x13c   : > { %4220 = vmatprep.mubr.msk.bf16.mxu0 %vm253_vm0, %v5529_v17 }
 0x143   : > { %4221 = vmatmul.mubr.msk.bf16.gmra.mrb[24].mxu0 %vm253_vm0, %v5531_v23 }
 0x144   : > { %4224 = vmatprep.mubr.msk.bf16.mxu0 %vm253_vm0, %v5567_v14 }
 0x14b   : > { %4225 = vmatmul.mubr.msk.bf16.gmra.mrb[28].mxu0 %vm253_vm0, %v3716_v27 }
 0x1b4   : > { %v4018_v0 = vpop.f32.mrb[0].mxu1 }
 0x1b5   : > { %v1916_v59 = vpop.f32.mrb[1].mxu1  ;;  %v4232_v26 = vadd.f32 %v4018_v0, %v378_v49 }
 0x1b6   : > { %v4019_v2 = vpop.f32.mrb[2].mxu1  ;;  %v4234_v25 = vadd.f32 %v1916_v59, %v376_v3 }
 0x1b7   : > { %v1919_v48 = vpop.f32.mrb[3].mxu1  ;;  %v4236_v18 = vadd.f32 %v4019_v2, %v379_v9 }
 0x1b8   : > { %v4238_v28 = vadd.f32 %v1919_v48, %v377_v53  ;;  %v385_v48 = vld [vmem:[#allocation2 + $0x48] sm:$0xff] }
 0x1bc   : > { %v4022_v43 = vpop.f32.mrb[4].mxu1 }
 0x1bd   : > { %v1932_v17 = vpop.f32.mrb[5].mxu1  ;;  %v4240_v6 = vadd.f32 %v4022_v43, %v382_v50 }
 0x1be   : > { %v4023_v7 = vpop.f32.mrb[6].mxu1  ;;  %v4242_v36 = vadd.f32 %v1932_v17, %v380_v33 }
 0x1bf   : > { %v1935_v23 = vpop.f32.mrb[7].mxu1  ;;  %v4244_v61 = vadd.f32 %v4023_v7, %v383_v8  ;;  %v391_v8 = vld [vmem:[#allocation2 + $0x78] sm:$0xff] }
 0x1c0   : > { %v4246_v12 = vadd.f32 %v1935_v23, %v381_v31 }
 0x1c4   : > { %v5866_v40 = vpop.f32.mrb[8].mxu1 }
 0x1c5   : > { %v5868_v14 = vpop.f32.mrb[9].mxu1  ;;  %v4248_v2 = vadd.f32 %v5866_v40, %v386_v20 }
 0x1c6   : > { %v5870_v45 = vpop.f32.mrb[10].mxu1  ;;  %v4250_v17 = vadd.f32 %v5868_v14, %v384_v57 }
 0x1c7   : > { %v5872_v1 = vpop.f32.mrb[11].mxu1  ;;  %v4252_v49 = vadd.f32 %v5870_v45, %v387_v35  ;;  %v390_v45 = vld [vmem:[#allocation2 + $0x70] sm:$0xff] }
 0x1c8   : > { %v4254_v9 = vadd.f32 %v5872_v1, %v385_v48 }
 0x1cc   : > { %v5874_v60 = vpop.f32.mrb[12].mxu1 }
 0x1cd   : > { %v5876_v63 = vpop.f32.mrb[13].mxu1 }
 0x1ce   : > { %v5878_v11 = vpop.f32.mrb[14].mxu1 }
 0x1cf   : > { %v5880_v46 = vpop.f32.mrb[15].mxu1 }
 0x1e6   : > { %v4198_v19 = vpop.f32.mrb[0].mxu0 }
 0x1e7   : > { %v4233_v58 = vadd.f32 %v4232_v26, %v4198_v19  ;;  %v3037_v21 = vpop.f32.mrb[1].mxu0 }
 0x1e8   : > { %v4235_v55 = vadd.f32 %v4234_v25, %v3037_v21  ;;  %v4199_v30 = vpop.f32.mrb[2].mxu0 }
 0x1e9   : > { %3198 = vst.msk [vmem:[#allocation2 + $0x10] sm:$0xff] %vm253_vm0, %v4233_v58  ;;  %v4237_v42 = vadd.f32 %v4236_v18, %v4199_v30  ;;  %v3040_v34 = vpop.f32.mrb[3].mxu0 }
 0x1ea   : > { %3196 = vst.msk [vmem:[#allocation2] sm:$0xff] %vm253_vm0, %v4235_v55  ;;  %v4239_v62 = vadd.f32 %v4238_v28, %v3040_v34 }
 0x1eb   : > { %3199 = vst.msk [vmem:[#allocation2 + $0x18] sm:$0xff] %vm253_vm0, %v4237_v42  ;;  %v388_v42 = vld [vmem:[#allocation2 + $0x60] sm:$0xff] }
 0x1ec   : > { %3197 = vst.msk [vmem:[#allocation2 + $0x8] sm:$0xff] %vm253_vm0, %v4239_v62 }
 0x1ee   : > { %v4202_v44 = vpop.f32.mrb[4].mxu0 }
 0x1ef   : > { %v4241_v39 = vadd.f32 %v4240_v6, %v4202_v44  ;;  %v3053_v29 = vpop.f32.mrb[5].mxu0  ;;  %v4256_v44 = vadd.f32 %v5874_v60, %v390_v45 }
 0x1f0   : > { %v3233_v15 = vld [vmem:[#allocation2 + $0x10] sm:$0xff]  ;;  %v4243_v5 = vadd.f32 %v4242_v36, %v3053_v29  ;;  %v4203_v51 = vpop.f32.mrb[6].mxu0  ;;  %v4258_v29 = vadd.f32 %v5876_v63, %v388_v42 }
 0x1f1   : > { %v3272_v52 = vadd.f32 %v5890_v38, %v3233_v15  ;;  %v3231_v47 = vld [vmem:[#allocation2] sm:$0xff]  ;;  %3202 = vst.msk [vmem:[#allocation2 + $0x30] sm:$0xff] %vm253_vm0, %v4241_v39  ;;  %v4245_v54 = vadd.f32 %v4244_v61, %v4203_v51  ;;  %v3056_v32 = vpop.f32.mrb[7].mxu0  ;;  %v389_v61 = vld [vmem:[#allocation2 + $0x68] sm:$0xff] }
 0x1f2   : > { %v3270_v16 = vadd.f32 %v5890_v38, %v3231_v47  ;;  %v3234_v56 = vld [vmem:[#allocation2 + $0x18] sm:$0xff]  ;;  %3200 = vst.msk [vmem:[#allocation2 + $0x20] sm:$0xff] %vm253_vm0, %v4243_v5  ;;  %v4247_v24 = vadd.f32 %v4246_v12, %v3056_v32  ;;  %v4260_v5 = vadd.f32 %v5878_v11, %v391_v8  ;;  %v4262_v47 = vadd.f32 %v5880_v46, %v389_v61 }
 0x1f3   : > { %v3304_v10 = vmax.f32 %v3272_v52, 0.0  ;;  %v3273_v4 = vadd.f32 %v5890_v38, %v3234_v56  ;;  %v3232_v37 = vld [vmem:[#allocation2 + $0x8] sm:$0xff]  ;;  %3203 = vst.msk [vmem:[#allocation2 + $0x38] sm:$0xff] %vm253_vm0, %v4245_v54 }
 0x1f4   : > { %v5898_v13 = vpop.f32.mrb[16].mxu1  ;;  %v3302_v27 = vmax.f32 %v3270_v16, 0.0  ;;  %v3271_v0 = vadd.f32 %v5890_v38, %v3232_v37  ;;  %3201 = vst.msk [vmem:[#allocation2 + $0x28] sm:$0xff] %vm253_vm0, %v4247_v24 }
 0x1f5   : > { %v5902_v22 = vpop.f32.mrb[17].mxu1  ;;  %3336 = vst.msk [vmem:[%s5914_s23 + $0x10] sm:$0xff] %vm253_vm0, %v3304_v10  ;;  %v3305_v43 = vmax.f32 %v3273_v4, 0.0  ;;  %v394_v10 = vld [vmem:[#allocation2 + $0x90] sm:$0xff] }
 0x1f6   : > { %v5906_v41 = vpop.f32.mrb[18].mxu1  ;;  %3334 = vst.msk [vmem:[%s5914_s23] sm:$0xff] %vm253_vm0, %v3302_v27  ;;  %v3303_v7 = vmax.f32 %v3271_v0, 0.0  ;;  %v4206_v23 = vpop.f32.mrb[8].mxu0  ;;  %v392_v0 = vld [vmem:[#allocation2 + $0x80] sm:$0xff] }
 0x1f7   : > { %v5910_v59 = vpop.f32.mrb[19].mxu1  ;;  %3337 = vst.msk [vmem:[%s5914_s23 + $0x18] sm:$0xff] %vm253_vm0, %v3305_v43  ;;  %v4249_v40 = vadd.f32 %v4248_v2, %v4206_v23  ;;  %v3069_v3 = vpop.f32.mrb[9].mxu0 }
 0x1f8   : > { %3335 = vst.msk [vmem:[%s5914_s23 + $0x8] sm:$0xff] %vm253_vm0, %v3303_v7  ;;  %v3237_v26 = vld [vmem:[#allocation2 + $0x30] sm:$0xff]  ;;  %v4251_v53 = vadd.f32 %v4250_v17, %v3069_v3  ;;  %v4207_v25 = vpop.f32.mrb[10].mxu0  ;;  %v395_v17 = vld [vmem:[#allocation2 + $0x98] sm:$0xff] }
 0x1f9   : > { %v3276_v19 = vadd.f32 %v5890_v38, %v3237_v26  ;;  %v3235_v14 = vld [vmem:[#allocation2 + $0x20] sm:$0xff]  ;;  %3206 = vst.msk [vmem:[#allocation2 + $0x50] sm:$0xff] %vm253_vm0, %v4249_v40  ;;  %v4253_v18 = vadd.f32 %v4252_v49, %v4207_v25  ;;  %v3072_v58 = vpop.f32.mrb[11].mxu0  ;;  %v4264_v49 = vadd.f32 %v5898_v13, %v394_v10  ;;  %v393_v40 = vld [vmem:[#allocation2 + $0x88] sm:$0xff] }
 0x1fa   : > { %v3274_v28 = vadd.f32 %v5890_v38, %v3235_v14  ;;  %v3238_v55 = vld [vmem:[#allocation2 + $0x38] sm:$0xff]  ;;  %3204 = vst.msk [vmem:[#allocation2 + $0x40] sm:$0xff] %vm253_vm0, %v4251_v53  ;;  %v4255_v1 = vadd.f32 %v4254_v9, %v3072_v58  ;;  %v4266_v9 = vadd.f32 %v5902_v22, %v392_v0  ;;  %v4268_v53 = vadd.f32 %v5906_v41, %v395_v17 }
 0x1fb   : > { %v3308_v34 = vmax.f32 %v3276_v19, 0.0  ;;  %v3277_v50 = vadd.f32 %v5890_v38, %v3238_v55  ;;  %v3236_v62 = vld [vmem:[#allocation2 + $0x28] sm:$0xff]  ;;  %3207 = vst.msk [vmem:[#allocation2 + $0x58] sm:$0xff] %vm253_vm0, %v4253_v18  ;;  %v4270_v18 = vadd.f32 %v5910_v59, %v393_v40 }
 0x1fc   : > { %v5929_v21 = vpop.f32.mrb[20].mxu1  ;;  %v3306_v6 = vmax.f32 %v3274_v28, 0.0  ;;  %v3275_v31 = vadd.f32 %v5890_v38, %v3236_v62  ;;  %3205 = vst.msk [vmem:[#allocation2 + $0x48] sm:$0xff] %vm253_vm0, %v4255_v1 }
 0x1fd   : > { %v5933_v30 = vpop.f32.mrb[21].mxu1  ;;  %3340 = vst.msk [vmem:[%s5914_s23 + $0x30] sm:$0xff] %vm253_vm0, %v3308_v34  ;;  %v3309_v39 = vmax.f32 %v3277_v50, 0.0  ;;  %v398_v34 = vld [vmem:[#allocation2 + $0xb0] sm:$0xff] }
 0x1fe   : > { %v5937_v33 = vpop.f32.mrb[22].mxu1  ;;  %3338 = vst.msk [vmem:[%s5914_s23 + $0x20] sm:$0xff] %vm253_vm0, %v3306_v6  ;;  %v3307_v12 = vmax.f32 %v3275_v31, 0.0  ;;  %v4210_v15 = vpop.f32.mrb[12].mxu0  ;;  %v396_v31 = vld [vmem:[#allocation2 + $0xa0] sm:$0xff] }
 0x1ff   : > { %v5941_v36 = vpop.f32.mrb[23].mxu1  ;;  %3341 = vst.msk [vmem:[%s5914_s23 + $0x38] sm:$0xff] %vm253_vm0, %v3309_v39  ;;  %v4257_v51 = vadd.f32 %v4256_v44, %v4210_v15  ;;  %v3085_v52 = vpop.f32.mrb[13].mxu0 }
 0x200   : > { %3339 = vst.msk [vmem:[%s5914_s23 + $0x28] sm:$0xff] %vm253_vm0, %v3307_v12  ;;  %v3241_v60 = vld [vmem:[#allocation2 + $0x50] sm:$0xff]  ;;  %v4259_v54 = vadd.f32 %v4258_v29, %v3085_v52  ;;  %v4211_v32 = vpop.f32.mrb[14].mxu0  ;;  %v399_v29 = vld [vmem:[#allocation2 + $0xb8] sm:$0xff] }
 0x201   : > { %v3280_v20 = vadd.f32 %v5890_v38, %v3241_v60  ;;  %v3239_v63 = vld [vmem:[#allocation2 + $0x40] sm:$0xff]  ;;  %3210 = vst.msk [vmem:[#allocation2 + $0x70] sm:$0xff] %vm253_vm0, %v4257_v51  ;;  %v4261_v16 = vadd.f32 %v4260_v5, %v4211_v32  ;;  %v3088_v56 = vpop.f32.mrb[15].mxu0  ;;  %v4272_v5 = vadd.f32 %v5929_v21, %v398_v34  ;;  %v397_v51 = vld [vmem:[#allocation2 + $0xa8] sm:$0xff] }
 0x202   : > { %v3278_v11 = vadd.f32 %v5890_v38, %v3239_v63  ;;  %v3242_v57 = vld [vmem:[#allocation2 + $0x58] sm:$0xff]  ;;  %3208 = vst.msk [vmem:[#allocation2 + $0x60] sm:$0xff] %vm253_vm0, %v4259_v54  ;;  %v4263_v46 = vadd.f32 %v4262_v47, %v3088_v56  ;;  %v4274_v47 = vadd.f32 %v5933_v30, %v396_v31  ;;  %v4276_v54 = vadd.f32 %v5937_v33, %v399_v29  ;;  %v405_v29 = vld [vmem:[#allocation2 + $0xe8] sm:$0xff] }
 0x203   : > { %v3312_v37 = vmax.f32 %v3280_v20, 0.0  ;;  %v3281_v35 = vadd.f32 %v5890_v38, %v3242_v57  ;;  %v3240_v27 = vld [vmem:[#allocation2 + $0x48] sm:$0xff]  ;;  %3211 = vst.msk [vmem:[#allocation2 + $0x78] sm:$0xff] %vm253_vm0, %v4261_v16  ;;  %v4278_v16 = vadd.f32 %v5941_v36, %v397_v51  ;;  %v407_v31 = vld [vmem:[#allocation2 + $0xf8] sm:$0xff] }
 0x204   : > { %v5957_v24 = vpop.f32.mrb[24].mxu1  ;;  %v3310_v48 = vmax.f32 %v3278_v11, 0.0  ;;  %v3279_v43 = vadd.f32 %v5890_v38, %v3240_v27  ;;  %3209 = vst.msk [vmem:[#allocation2 + $0x68] sm:$0xff] %vm253_vm0, %v4263_v46 }
 0x205   : > { %v5961_v4 = vpop.f32.mrb[25].mxu1  ;;  %3344 = vst.msk [vmem:[%s5914_s23 + $0x50] sm:$0xff] %vm253_vm0, %v3312_v37  ;;  %v3313_v23 = vmax.f32 %v3281_v35, 0.0  ;;  %v402_v37 = vld [vmem:[#allocation2 + $0xd0] sm:$0xff] }
 0x206   : > { %v5965_v2 = vpop.f32.mrb[26].mxu1  ;;  %3342 = vst.msk [vmem:[%s5914_s23 + $0x40] sm:$0xff] %vm253_vm0, %v3310_v48  ;;  %v3311_v3 = vmax.f32 %v3279_v43, 0.0  ;;  %v4214_v26 = vpop.f32.mrb[16].mxu0  ;;  %v400_v48 = vld [vmem:[#allocation2 + $0xc0] sm:$0xff]  ;;  %v4280_v40 = vadd.f32 %v5957_v24, %v402_v37 }
 0x207   : > { %v5969_v7 = vpop.f32.mrb[27].mxu1  ;;  %3345 = vst.msk [vmem:[%s5914_s23 + $0x58] sm:$0xff] %vm253_vm0, %v3313_v23  ;;  %v4265_v25 = vadd.f32 %v4264_v49, %v4214_v26  ;;  %v3101_v19 = vpop.f32.mrb[17].mxu0  ;;  %v403_v23 = vld [vmem:[#allocation2 + $0xd8] sm:$0xff]  ;;  %v4282_v26 = vadd.f32 %v5961_v4, %v400_v48 }
 0x208   : > { %3343 = vst.msk [vmem:[%s5914_s23 + $0x48] sm:$0xff] %vm253_vm0, %v3311_v3  ;;  %v3245_v14 = vld [vmem:[#allocation2 + $0x70] sm:$0xff]  ;;  %v4267_v58 = vadd.f32 %v4266_v9, %v3101_v19  ;;  %v4215_v13 = vpop.f32.mrb[18].mxu0  ;;  %v401_v3 = vld [vmem:[#allocation2 + $0xc8] sm:$0xff] }
 0x209   : > { %v3284_v45 = vadd.f32 %v5890_v38, %v3245_v14  ;;  %v3243_v28 = vld [vmem:[#allocation2 + $0x60] sm:$0xff]  ;;  %3214 = vst.msk [vmem:[#allocation2 + $0x90] sm:$0xff] %vm253_vm0, %v4265_v25  ;;  %v4269_v22 = vadd.f32 %v4268_v53, %v4215_v13  ;;  %v3104_v55 = vpop.f32.mrb[19].mxu0  ;;  %v4284_v25 = vadd.f32 %v5965_v2, %v403_v23 }
 0x20a   : > { %v3282_v41 = vadd.f32 %v5890_v38, %v3243_v28  ;;  %v3246_v42 = vld [vmem:[#allocation2 + $0x78] sm:$0xff]  ;;  %3212 = vst.msk [vmem:[#allocation2 + $0x80] sm:$0xff] %vm253_vm0, %v4267_v58  ;;  %v4271_v50 = vadd.f32 %v4270_v18, %v3104_v55  ;;  %v4286_v58 = vadd.f32 %v5969_v7, %v401_v3 }
 0x20b   : > { %v3316_v62 = vmax.f32 %v3284_v45, 0.0  ;;  %v3285_v8 = vadd.f32 %v5890_v38, %v3246_v42  ;;  %v3244_v6 = vld [vmem:[#allocation2 + $0x68] sm:$0xff]  ;;  %3215 = vst.msk [vmem:[#allocation2 + $0x98] sm:$0xff] %vm253_vm0, %v4269_v22 }
 0x20c   : > { %v5985_v1 = vpop.f32.mrb[28].mxu1  ;;  %v3314_v61 = vmax.f32 %v3282_v41, 0.0  ;;  %v3283_v39 = vadd.f32 %v5890_v38, %v3244_v6  ;;  %3213 = vst.msk [vmem:[#allocation2 + $0x88] sm:$0xff] %vm253_vm0, %v4271_v50  ;;  %v406_v41 = vld [vmem:[#allocation2 + $0xf0] sm:$0xff] }
 0x20d   : > { %v5989_v59 = vpop.f32.mrb[29].mxu1  ;;  %3348 = vst.msk [vmem:[%s5914_s23 + $0x70] sm:$0xff] %vm253_vm0, %v3316_v62  ;;  %v3317_v15 = vmax.f32 %v3285_v8, 0.0  ;;  %v404_v62 = vld [vmem:[#allocation2 + $0xe0] sm:$0xff] }
 0x20e   : > { %v5993_v44 = vpop.f32.mrb[30].mxu1  ;;  %3346 = vst.msk [vmem:[%s5914_s23 + $0x60] sm:$0xff] %vm253_vm0, %v3314_v61  ;;  %v3315_v52 = vmax.f32 %v3283_v39, 0.0  ;;  %v4218_v60 = vpop.f32.mrb[20].mxu0  ;;  %v4288_v39 = vadd.f32 %v5985_v1, %v406_v41 }
 0x20f   : > { %v5997_v12 = vpop.f32.mrb[31].mxu1  ;;  %3349 = vst.msk [vmem:[%s5914_s23 + $0x78] sm:$0xff] %vm253_vm0, %v3317_v15  ;;  %v4273_v32 = vadd.f32 %v4272_v5, %v4218_v60  ;;  %v3117_v20 = vpop.f32.mrb[21].mxu0  ;;  %v4290_v5 = vadd.f32 %v5989_v59, %v404_v62 }
 0x210   : > { %3347 = vst.msk [vmem:[%s5914_s23 + $0x68] sm:$0xff] %vm253_vm0, %v3315_v52  ;;  %v3249_v63 = vld [vmem:[#allocation2 + $0x90] sm:$0xff]  ;;  %v4275_v56 = vadd.f32 %v4274_v47, %v3117_v20  ;;  %v4219_v21 = vpop.f32.mrb[22].mxu0  ;;  %v4292_v52 = vadd.f32 %v5993_v44, %v407_v31 }
 0x211   : > { %v3288_v11 = vadd.f32 %v5890_v38, %v3249_v63  ;;  %v3247_v57 = vld [vmem:[#allocation2 + $0x80] sm:$0xff]  ;;  %3218 = vst.msk [vmem:[#allocation2 + $0xb0] sm:$0xff] %vm253_vm0, %v4273_v32  ;;  %v4277_v30 = vadd.f32 %v4276_v54, %v4219_v21  ;;  %v3120_v10 = vpop.f32.mrb[23].mxu0  ;;  %v4294_v32 = vadd.f32 %v5997_v12, %v405_v29 }
 0x212   : > { %v3286_v46 = vadd.f32 %v5890_v38, %v3247_v57  ;;  %v3250_v33 = vld [vmem:[#allocation2 + $0x98] sm:$0xff]  ;;  %3216 = vst.msk [vmem:[#allocation2 + $0xa0] sm:$0xff] %vm253_vm0, %v4275_v56  ;;  %v4279_v35 = vadd.f32 %v4278_v16, %v3120_v10 }
 0x213   : > { %v3320_v27 = vmax.f32 %v3288_v11, 0.0  ;;  %v3289_v36 = vadd.f32 %v5890_v38, %v3250_v33  ;;  %v3248_v0 = vld [vmem:[#allocation2 + $0x88] sm:$0xff]  ;;  %3219 = vst.msk [vmem:[#allocation2 + $0xb8] sm:$0xff] %vm253_vm0, %v4277_v30 }
 0x214   : > { %v3318_v43 = vmax.f32 %v3286_v46, 0.0  ;;  %v3287_v17 = vadd.f32 %v5890_v38, %v3248_v0  ;;  %3217 = vst.msk [vmem:[#allocation2 + $0xa8] sm:$0xff] %vm253_vm0, %v4279_v35 }
 0x215   : > { %3352 = vst.msk [vmem:[%s5914_s23 + $0x90] sm:$0xff] %vm253_vm0, %v3320_v27  ;;  %v3321_v49 = vmax.f32 %v3289_v36, 0.0 }
 0x216   : > { %3350 = vst.msk [vmem:[%s5914_s23 + $0x80] sm:$0xff] %vm253_vm0, %v3318_v43  ;;  %v3319_v9 = vmax.f32 %v3287_v17, 0.0  ;;  %v4222_v53 = vpop.f32.mrb[24].mxu0 }
 0x217   : > { %3353 = vst.msk [vmem:[%s5914_s23 + $0x98] sm:$0xff] %vm253_vm0, %v3321_v49  ;;  %v4281_v19 = vadd.f32 %v4280_v40, %v4222_v53  ;;  %v3133_v14 = vpop.f32.mrb[25].mxu0 }
 0x218   : > { %3351 = vst.msk [vmem:[%s5914_s23 + $0x88] sm:$0xff] %vm253_vm0, %v3319_v9  ;;  %v3253_v18 = vld [vmem:[#allocation2 + $0xb0] sm:$0xff]  ;;  %v4283_v13 = vadd.f32 %v4282_v26, %v3133_v14  ;;  %v4223_v24 = vpop.f32.mrb[26].mxu0 }
 0x219   : > { %v3292_v45 = vadd.f32 %v5890_v38, %v3253_v18  ;;  %v3251_v28 = vld [vmem:[#allocation2 + $0xa0] sm:$0xff]  ;;  %3222 = vst.msk [vmem:[#allocation2 + $0xd0] sm:$0xff] %vm253_vm0, %v4281_v19  ;;  %v4285_v4 = vadd.f32 %v4284_v25, %v4223_v24  ;;  %v3136_v22 = vpop.f32.mrb[27].mxu0 }
 0x21a   : > { %v3290_v55 = vadd.f32 %v5890_v38, %v3251_v28  ;;  %v3254_v2 = vld [vmem:[#allocation2 + $0xb8] sm:$0xff]  ;;  %3220 = vst.msk [vmem:[#allocation2 + $0xc0] sm:$0xff] %vm253_vm0, %v4283_v13  ;;  %v4287_v42 = vadd.f32 %v4286_v58, %v3136_v22 }
 0x21b   : > { %v3324_v34 = vmax.f32 %v3292_v45, 0.0  ;;  %v3293_v7 = vadd.f32 %v5890_v38, %v3254_v2  ;;  %v3252_v50 = vld [vmem:[#allocation2 + $0xa8] sm:$0xff]  ;;  %3223 = vst.msk [vmem:[#allocation2 + $0xd8] sm:$0xff] %vm253_vm0, %v4285_v4 }
 0x21c   : > { %v3322_v8 = vmax.f32 %v3290_v55, 0.0  ;;  %v3291_v6 = vadd.f32 %v5890_v38, %v3252_v50  ;;  %3221 = vst.msk [vmem:[#allocation2 + $0xc8] sm:$0xff] %vm253_vm0, %v4287_v42 }
 0x21d   : > { %3356 = vst.msk [vmem:[%s5914_s23 + $0xb0] sm:$0xff] %vm253_vm0, %v3324_v34  ;;  %v3325_v61 = vmax.f32 %v3293_v7, 0.0 }
 0x21e   : > { %3354 = vst.msk [vmem:[%s5914_s23 + $0xa0] sm:$0xff] %vm253_vm0, %v3322_v8  ;;  %v3323_v15 = vmax.f32 %v3291_v6, 0.0  ;;  %v4226_v51 = vpop.f32.mrb[28].mxu0 }
 0x21f   : > { %3357 = vst.msk [vmem:[%s5914_s23 + $0xb8] sm:$0xff] %vm253_vm0, %v3325_v61  ;;  %v4289_v47 = vadd.f32 %v4288_v39, %v4226_v51  ;;  %v3149_v60 = vpop.f32.mrb[29].mxu0 }
 0x220   : > { %3355 = vst.msk [vmem:[%s5914_s23 + $0xa8] sm:$0xff] %vm253_vm0, %v3323_v15  ;;  %v3257_v54 = vld [vmem:[#allocation2 + $0xd0] sm:$0xff]  ;;  %v4291_v20 = vadd.f32 %v4290_v5, %v3149_v60  ;;  %v4227_v1 = vpop.f32.mrb[30].mxu0 }
 0x221   : > { %v3296_v63 = vadd.f32 %v5890_v38, %v3257_v54  ;;  %v3255_v16 = vld [vmem:[#allocation2 + $0xc0] sm:$0xff]  ;;  %3226 = vst.msk [vmem:[#allocation2 + $0xf0] sm:$0xff] %vm253_vm0, %v4289_v47  ;;  %v4293_v59 = vadd.f32 %v4292_v52, %v4227_v1  ;;  %v3152_v56 = vpop.f32.mrb[31].mxu0 }
 0x222   : > { %v3294_v44 = vadd.f32 %v5890_v38, %v3255_v16  ;;  %v3258_v21 = vld [vmem:[#allocation2 + $0xd8] sm:$0xff]  ;;  %3224 = vst.msk [vmem:[#allocation2 + $0xe0] sm:$0xff] %vm253_vm0, %v4291_v20  ;;  %v4295_v11 = vadd.f32 %v4294_v32, %v3152_v56 }
 0x223   : > { %v3328_v12 = vmax.f32 %v3296_v63, 0.0  ;;  %v3297_v57 = vadd.f32 %v5890_v38, %v3258_v21  ;;  %v3256_v30 = vld [vmem:[#allocation2 + $0xc8] sm:$0xff]  ;;  %3227 = vst.msk [vmem:[#allocation2 + $0xf8] sm:$0xff] %vm253_vm0, %v4293_v59 }
 0x224   : > { %v3326_v10 = vmax.f32 %v3294_v44, 0.0  ;;  %v3295_v46 = vadd.f32 %v5890_v38, %v3256_v30  ;;  %3225 = vst.msk [vmem:[#allocation2 + $0xe8] sm:$0xff] %vm253_vm0, %v4295_v11 }
 0x225   : > { %3360 = vst.msk [vmem:[%s5914_s23 + $0xd0] sm:$0xff] %vm253_vm0, %v3328_v12  ;;  %v3329_v33 = vmax.f32 %v3297_v57, 0.0 }
 0x226   : > { %3358 = vst.msk [vmem:[%s5914_s23 + $0xc0] sm:$0xff] %vm253_vm0, %v3326_v10  ;;  %v3327_v37 = vmax.f32 %v3295_v46, 0.0 }
 0x227   : > { %3361 = vst.msk [vmem:[%s5914_s23 + $0xd8] sm:$0xff] %vm253_vm0, %v3329_v33 }
 0x228   : > { %3359 = vst.msk [vmem:[%s5914_s23 + $0xc8] sm:$0xff] %vm253_vm0, %v3327_v37  ;;  %v3261_v35 = vld [vmem:[#allocation2 + $0xf0] sm:$0xff] }
 0x229   : > { %v3300_v27 = vadd.f32 %v5890_v38, %v3261_v35  ;;  %v3259_v36 = vld [vmem:[#allocation2 + $0xe0] sm:$0xff] }
 0x22a   : > { %v3298_v0 = vadd.f32 %v5890_v38, %v3259_v36  ;;  %v3262_v48 = vld [vmem:[#allocation2 + $0xf8] sm:$0xff] }
 0x22b   : > { %v3332_v43 = vmax.f32 %v3300_v27, 0.0  ;;  %v3301_v17 = vadd.f32 %v5890_v38, %v3262_v48  ;;  %v3260_v23 = vld [vmem:[#allocation2 + $0xe8] sm:$0xff] }
 0x22c   : > { %v3330_v49 = vmax.f32 %v3298_v0, 0.0  ;;  %v3299_v40 = vadd.f32 %v5890_v38, %v3260_v23 }
 0x22d   : > { %3364 = vst.msk [vmem:[%s5914_s23 + $0xf0] sm:$0xff] %vm253_vm0, %v3332_v43  ;;  %v3333_v3 = vmax.f32 %v3301_v17, 0.0 }
 0x22e   : > { %3362 = vst.msk [vmem:[%s5914_s23 + $0xe0] sm:$0xff] %vm253_vm0, %v3330_v49  ;;  %v3331_v9 = vmax.f32 %v3299_v40, 0.0 }
 0x22f   : > { %3365 = vst.msk [vmem:[%s5914_s23 + $0xf8] sm:$0xff] %vm253_vm0, %v3333_v3 }
 0x230   : > { %3363 = vst.msk [vmem:[%s5914_s23 + $0xe8] sm:$0xff] %vm253_vm0, %v3331_v9 }
 0x231   : > { %4630 = shalt.err (!%p4627_p5)
}
 0x232   : > { %s4631_s8 = scalar_lea.hbm %s6078_s30, 4096  ;;  %s4635_s19 = scalar_lea.hbm %s6139_s3, 8192 }
 0x233   : > { %p4632_p6 = scmp.ne.s32.totalorder %s6078_s30, %s4631_s8  ;;  %p4636_p10 = scmp.lt.u32.totalorder %s6078_s30, %s6139_s3 }
 0x234   : > { %p4637_p11 = scmp.lt.u32.totalorder %s4635_s19, %s4631_s8  ;;  %p4639_p13 = scmp.lt.u32.totalorder %s4631_s8, %s6078_s30 }
 0x235   : > { %p4633_p7 = pnand %p4632_p6, %p4761_p4 }
 0x236   : > { %p4638_p12 = por %p4637_p11, %p4636_p10 }
 0x237   : > { %p4634_p9 = pneg %p4633_p7 }
 0x238   : > { %p4640_p0 = por %p4639_p13, %p4638_p12 }
 0x23a   : > { %p4641_p1 = pnand %p4640_p0, %p4634_p9 }
 0x23c   : > { %4644 = shalt.err (!%p4641_p1)
}
 0x23d   : > { %s4699_s21 = smov 128   ;;  %s4700_s23 = smov 8  }
 0x23e   : > { %4521 = dma.vmem_to_hbm [thread:$0]  (%p4761_p4), %s6080_s27, 4096, %s6078_s30, %s6090_s15, %s4699_s21, %s4699_s21, %s4700_s23  }
 0x23f PF: > { %p4527_p2 = scmp.ge.s32.totalorder %s4695_s17, 2  ;;  %s3396_s26 = sand.u32 1, %s4675_s12  }
 0x240   : > { %s3397_s28 = scalar_lea.sflag [#allocation4], %s3396_s26 }
 0x241   : > { %p4524_p3 = pnand %p4527_p2, %p4768_p8 }
 0x243   : > { %4670 = dma.done.wait (!%p4524_p3), %s3397_s28, 4096  }
 0x244   : > { %4672 = vsyncadd (!%p4524_p3), %s3397_s28, 4294963200  ;;  %s16_s17 = sadd.s32 1, %s4695_s17   ;;  %s6265_s12 = smov %s4679_s13 }
 0x245   : > { %p13_p5 = scmp.ge.s32.totalorder %s16_s17, 4   ;;  %s6266_s13 = smov %s4683_s14 }
 0x246   : > { %s6267_s14 = smov %s4774_s25  ;;  %s6268_s15 = smov %s4691_s16 }
 0x247   : > { %s6269_s16 = smov %s6271_s20  ;;  %15 = sbr.rel (!%p13_p5) target bundleno = 4 (0x4), region = 81 }
 0x24e   :  { %3402 = vsyncpa [#allocation4], 1 }
 0x24f   :  { %3404 = vsyncpa [#allocation4 + $0x1], 1 }

</bundles_post_ra>
